<compile_context>
chip_gen: v7x
topology: tpu7x:2x2x1
jax: 0.10.0
libtpu: 0.0.40
codegen_flags: <defaults>
</compile_context>

<pallas_src>
import functools
import math

import numpy as np
import jax
import jax.numpy as jnp
from jax.experimental import pallas as pl
from jax.experimental.pallas import tpu as pltpu  # noqa: F401


def _layernorm(x, gamma, beta, eps=1e-5):
    # torch.nn.LayerNorm: biased variance over the last dim, eps=1e-5.
    mean = jnp.mean(x, axis=-1, keepdims=True)
    var = jnp.mean((x - mean) ** 2, axis=-1, keepdims=True)
    return (x - mean) * jax.lax.rsqrt(var + eps) * gamma + beta


def _gelu_exact(x):
    # torch.nn.GELU() default = exact erf-based GELU.
    return 0.5 * x * (1.0 + jax.lax.erf(x / math.sqrt(2.0)))


def bert_kernel(tok_ref, seg_ref, maskb_ref, pe_ref, emb_ref,
                wqkv_ref, wo_ref, w1_ref, w2_ref, bqf_ref, vec_ref,
                o_ref, *, heads, n_layers, vocab):
    BL, D = pe_ref.shape
    dk = D // heads
    ff = w1_ref.shape[2]
    n_tab = emb_ref.shape[0]          # vocab + 8 (segment rows padded to 8)

    # ---- fused token + segment embedding: ONE one-hot @ combined-table matmul
    tok = tok_ref[...]                                   # (BL,1) i32 in [0, V)
    seg = seg_ref[...] + vocab                           # (BL,1) i32 in [V, V+3)
    lanes = jax.lax.broadcasted_iota(jnp.int32, (BL, n_tab), 1)
    oh = jnp.logical_or(lanes == tok, lanes == seg).astype(jnp.float32)
    x = jnp.dot(oh, emb_ref[...], preferred_element_type=jnp.float32) + pe_ref[...]
    # TODO(synk): dropout (p=0.1) is stochastic in torch train mode; identity here.

    # Additive attention mask (0 / -1e9), built once in the wrapper and reused
    # by every head and layer.  Masked entries underflow to exactly 0 in softmax.
    maskb = maskb_ref[...]                               # (BL, BL)

    for li in range(n_layers):                           # static unroll (small)
        vec = vec_ref[li]                                # (4, D): bo, b2, gamma, beta
        bo, b2 = vec[0:1], vec[1:2]
        gamma, beta = vec[2:3], vec[3:4]
        bqf = bqf_ref[li]                                # (2, max(3D, ff))
        bqkv = bqf[0:1, :3 * D]                          # (1, 3D)
        b1 = bqf[1:2, :ff]                               # (1, ff)

        # --- fused Q|K|V projection (1/sqrt(d_k) folded into Wq/bq at prep) ---
        qkv = jnp.dot(x, wqkv_ref[li], preferred_element_type=jnp.float32) + bqkv

        # --- per-head attention; contexts land in their dk-lane slot ----------
        ctx_parts = []
        for h in range(heads):                           # static unroll
            qh = qkv[:, h * dk:(h + 1) * dk]
            kh = qkv[:, D + h * dk:D + (h + 1) * dk]
            vh = qkv[:, 2 * D + h * dk:2 * D + (h + 1) * dk]
            # scores without materializing kh.T (contract on the dk axis)
            s = jax.lax.dot_general(qh, kh, (((1,), (1,)), ((), ())),
                                    preferred_element_type=jnp.float32)
            s = s + maskb
            s = s - jnp.max(s, axis=-1, keepdims=True)
            p = jnp.exp(s)
            p = p * pl.reciprocal(jnp.sum(p, axis=-1, keepdims=True))  # exact
            ctx_parts.append(jnp.dot(p, vh, preferred_element_type=jnp.float32))
        ctx = jnp.concatenate(ctx_parts, axis=-1)        # (BL, D), head-major lanes

        # --- single output projection against the unsplit Wo ------------------
        attn = jnp.dot(ctx, wo_ref[li], preferred_element_type=jnp.float32) + bo
        h1 = _layernorm(attn + x, gamma, beta)           # shared LN (as in ref)

        # --- feed-forward ------------------------------------------------------
        f = jnp.dot(h1, w1_ref[li], preferred_element_type=jnp.float32) + b1
        f = _gelu_exact(f)
        f = jnp.dot(f, w2_ref[li], preferred_element_type=jnp.float32) + b2
        x = _layernorm(f + h1, gamma, beta)

    o_ref[...] = x


def prepare_params(params, heads):
    """One-time (init) layout plumbing: fuse Wq|Wk|Wv, fold 1/sqrt(d_k) into
    Wq/bq, stack layers, pack the small per-layer vectors into lane-dense slabs
    and concatenate token+segment tables."""
    layers = params["layers"]
    D = layers[0]["wq"].shape[0]
    ff = layers[0]["w1"].shape[1]
    dk = D // heads
    scale = 1.0 / math.sqrt(dk)

    wqkv = jnp.stack([jnp.concatenate([lp["wq"] * scale, lp["wk"], lp["wv"]], axis=1)
                      for lp in layers])                          # (L, D, 3D)
    wo = jnp.stack([lp["wo"] for lp in layers])                   # (L, D, D)
    w1 = jnp.stack([lp["w1"] for lp in layers])                   # (L, D, ff)
    w2 = jnp.stack([lp["w2"] for lp in layers])                   # (L, ff, D)

    wide = max(3 * D, ff)

    def pad_to(b, w):
        return jnp.pad(b, ((0, 0), (0, w - b.shape[1])))

    bqf = jnp.stack([jnp.concatenate(
        [pad_to(jnp.concatenate([lp["bq"] * scale, lp["bk"], lp["bv"]], axis=1), wide),
         pad_to(lp["b1"], wide)], axis=0) for lp in layers])      # (L, 2, wide)

    vec = jnp.stack([jnp.concatenate(
        [lp["bo"], lp["b2"], lp["gamma"], lp["beta"]], axis=0)
        for lp in layers])                                        # (L, 4, D)

    seg_tab = params["segment"]
    seg_pad = jnp.zeros((8, D), jnp.float32).at[:seg_tab.shape[0]].set(seg_tab)
    emb = jnp.concatenate([params["token"], seg_pad], axis=0)     # (V+8, D)

    return dict(wqkv=wqkv, wo=wo, w1=w1, w2=w2, bqf=bqf, vec=vec,
                emb=emb, pe=params["pe"])


def make_positional_embedding(seq_len, d_model):
    # Exact reproduction of PositionalEmbedding.__init__ (note the off-standard
    # exponent: 2*i/d_model with i being the actual even index).
    pe = np.zeros((seq_len, d_model), dtype=np.float32)
    for pos in range(seq_len):
        for i in range(0, d_model, 2):
            pe[pos, i] = math.sin(pos / 10000 ** (2 * i / d_model))
            pe[pos, i + 1] = math.cos(pos / 10000 ** (2 * (i + 1) / d_model))
    return jnp.asarray(pe)


def init_params(key, vocab_size, d_model, n_layers, seq_len):
    ff = d_model * 4
    keys = jax.random.split(key, 2 + n_layers)

    token = jax.random.normal(keys[0], (vocab_size, d_model), jnp.float32) * 0.02
    token = token.at[0].set(0.0)                       # padding_idx=0
    segment = jax.random.normal(keys[1], (3, d_model), jnp.float32) * 0.02
    segment = segment.at[0].set(0.0)                   # padding_idx=0
    pe = make_positional_embedding(seq_len, d_model)

    layers = []
    for li in range(n_layers):
        ks = jax.random.split(keys[2 + li], 12)
        lp = dict(
            wq=jax.random.normal(ks[0], (d_model, d_model), jnp.float32) * 0.05,
            bq=jax.random.normal(ks[1], (1, d_model), jnp.float32) * 0.01,
            wk=jax.random.normal(ks[2], (d_model, d_model), jnp.float32) * 0.05,
            bk=jax.random.normal(ks[3], (1, d_model), jnp.float32) * 0.01,
            wv=jax.random.normal(ks[4], (d_model, d_model), jnp.float32) * 0.05,
            bv=jax.random.normal(ks[5], (1, d_model), jnp.float32) * 0.01,
            wo=jax.random.normal(ks[6], (d_model, d_model), jnp.float32) * 0.05,
            bo=jax.random.normal(ks[7], (1, d_model), jnp.float32) * 0.01,
            gamma=jnp.ones((1, d_model), jnp.float32),
            beta=jnp.zeros((1, d_model), jnp.float32),
            w1=jax.random.normal(ks[8], (d_model, ff), jnp.float32) * 0.05,
            b1=jax.random.normal(ks[9], (1, ff), jnp.float32) * 0.01,
            w2=jax.random.normal(ks[10], (ff, d_model), jnp.float32) * 0.05,
            b2=jax.random.normal(ks[11], (1, d_model), jnp.float32) * 0.01,
        )
        layers.append(lp)

    return dict(token=token, segment=segment, pe=pe, layers=layers)


@functools.partial(jax.jit, static_argnames=("heads",))
def bert_forward(tokens, segments, prep, *, heads):
    """BERT.forward: tokens/segments (B, L) int32 -> (B, L, D) float32.
    `prep` is the output of prepare_params() (computed once at init)."""
    B, L = tokens.shape
    D = prep["pe"].shape[1]
    n_layers = prep["wqkv"].shape[0]
    vocab = prep["emb"].shape[0] - 8
    BL = B * L

    tok_col = tokens.reshape(BL, 1).astype(jnp.int32)
    seg_col = segments.reshape(BL, 1).astype(jnp.int32)

    # Additive attention-mask bias over the flattened (BL, BL) score matrix:
    # query i may attend to key j iff same batch element AND token[j] != pad.
    tok_flat = tokens.reshape(BL).astype(jnp.int32)
    bid = jnp.repeat(jnp.arange(B, dtype=jnp.int32), L)
    allowed = (bid[:, None] == bid[None, :]) & (tok_flat[None, :] > 0)
    mask_bias = jnp.where(allowed, 0.0, -1e9).astype(jnp.float32)

    pe_tiled = jnp.tile(prep["pe"], (B, 1))                        # (BL, D)

    kernel = functools.partial(bert_kernel, heads=heads,
                               n_layers=n_layers, vocab=vocab)

    # Single grid-less invocation: every operand (activations + all stacked
    # layer weights) is fully VMEM-resident at this size.
    out2d = pl.pallas_call(
        kernel,
        out_shape=jax.ShapeDtypeStruct((BL, D), jnp.float32),
    )(tok_col, seg_col, mask_bias, pe_tiled, prep["emb"],
      prep["wqkv"], prep["wo"], prep["w1"], prep["w2"],
      prep["bqf"], prep["vec"])

    return out2d.reshape(B, L, D)


def bert_reference(tokens, segments, params, heads):
    """Pure-JAX mirror of the PyTorch module (eval mode) for correctness check."""
    hp = jax.lax.Precision.HIGHEST
    mm = functools.partial(jnp.matmul, precision=hp)
    B, L = tokens.shape
    D = params["token"].shape[1]
    dk = D // heads
    x = params["token"][tokens] + params["segment"][segments] + params["pe"][None]
    mask = (tokens > 0)[:, None, None, :]                          # (B,1,1,L)
    for lp in params["layers"]:
        q = (mm(x, lp["wq"]) + lp["bq"]).reshape(B, L, heads, dk).transpose(0, 2, 1, 3)
        k = (mm(x, lp["wk"]) + lp["bk"]).reshape(B, L, heads, dk).transpose(0, 2, 1, 3)
        v = (mm(x, lp["wv"]) + lp["bv"]).reshape(B, L, heads, dk).transpose(0, 2, 1, 3)
        s = mm(q, k.transpose(0, 1, 3, 2)) / math.sqrt(dk)
        s = jnp.where(mask, s, -1e9)
        w = jax.nn.softmax(s, axis=-1)
        ctx = mm(w, v).transpose(0, 2, 1, 3).reshape(B, L, D)
        attn = mm(ctx, lp["wo"]) + lp["bo"]
        h1 = _layernorm(attn + x, lp["gamma"], lp["beta"])
        f = _gelu_exact(mm(h1, lp["w1"]) + lp["b1"])
        f = mm(f, lp["w2"]) + lp["b2"]
        x = _layernorm(f + h1, lp["gamma"], lp["beta"])
    return x


if __name__ == "__main__":
    # small hyperparameters (stand-in for params.yaml in load_params)
    B, L = 2, 16
    vocab_size = 64
    d_model = 32
    heads = 4
    n_layers = 2

    key = jax.random.PRNGKey(0)
    k_tok, k_par = jax.random.split(key, 2)

    tokens = jax.random.randint(k_tok, (B, L), 1, vocab_size, dtype=jnp.int32)
    tokens = tokens.at[1, L - 4:].set(0)                   # some padding tokens
    segments = jnp.concatenate(
        [jnp.ones((B, L // 2), jnp.int32), 2 * jnp.ones((B, L // 2), jnp.int32)],
        axis=1)
    segments = jnp.where(tokens > 0, segments, 0)

    params = init_params(k_par, vocab_size, d_model, n_layers, seq_len=L)
    prep = prepare_params(params, heads)                   # hoisted: runs ONCE

    out = bert_forward(tokens, segments, prep, heads=heads)
    out = jax.block_until_ready(out)

    assert out.shape == (B, L, d_model) and out.dtype == jnp.float32
    assert bool(jnp.all(jnp.isfinite(out)))

    ref = bert_reference(tokens, segments, params, heads)
    max_err = float(jnp.max(jnp.abs(out - ref)))
    assert max_err < 1e-2, f"kernel/reference mismatch: max_err={max_err}"

    print("KERNEL_OK")
</pallas_src>

<mosaic_0001>
module attributes {stable_mosaic.version = 11 : i64} {
  func.func @bert_kernel(%arg0: memref<32x1xi32, #tpu.memory_space<vmem>>, %arg1: memref<32x1xi32, #tpu.memory_space<vmem>>, %arg2: memref<32x32xf32, #tpu.memory_space<vmem>>, %arg3: memref<32x32xf32, #tpu.memory_space<vmem>>, %arg4: memref<72x32xf32, #tpu.memory_space<vmem>>, %arg5: memref<2x32x96xf32, #tpu.memory_space<vmem>>, %arg6: memref<2x32x32xf32, #tpu.memory_space<vmem>>, %arg7: memref<2x32x128xf32, #tpu.memory_space<vmem>>, %arg8: memref<2x128x32xf32, #tpu.memory_space<vmem>>, %arg9: memref<2x2x128xf32, #tpu.memory_space<vmem>>, %arg10: memref<2x4x32xf32, #tpu.memory_space<vmem>>, %arg11: memref<32x32xf32, #tpu.memory_space<vmem>>) attributes {dimension_semantics = [], scalar_prefetch = 0 : i64, scratch_operands = 0 : i64, tpu.core_type = #tpu.core_type<tc>} {
    %c0 = arith.constant 0 : index
    %c0_0 = arith.constant 0 : index
    %0 = vector.load %arg0[%c0, %c0_0] : memref<32x1xi32, #tpu.memory_space<vmem>>, vector<32x1xi32>
    %c0_1 = arith.constant 0 : index
    %c0_2 = arith.constant 0 : index
    %1 = vector.load %arg1[%c0_1, %c0_2] : memref<32x1xi32, #tpu.memory_space<vmem>>, vector<32x1xi32>
    %c64_i32 = arith.constant 64 : i32
    %2 = vector.broadcast %c64_i32 : i32 to vector<32x1xi32>
    %3 = arith.addi %1, %2 : vector<32x1xi32>
    %4 = tpu.iota {dimensions = array<i32: 1>} : vector<32x72xi32>
    %5 = vector.broadcast %0 : vector<32x1xi32> to vector<32x72xi32>
    %6 = arith.cmpi eq, %4, %5 : vector<32x72xi32>
    %7 = vector.broadcast %3 : vector<32x1xi32> to vector<32x72xi32>
    %8 = arith.cmpi eq, %4, %7 : vector<32x72xi32>
    %9 = arith.ori %6, %8 : vector<32x72xi1>
    %10 = arith.extui %9 : vector<32x72xi1> to vector<32x72xi32>
    %11 = arith.sitofp %10 : vector<32x72xi32> to vector<32x72xf32>
    %c0_3 = arith.constant 0 : index
    %c0_4 = arith.constant 0 : index
    %12 = vector.load %arg4[%c0_3, %c0_4] : memref<72x32xf32, #tpu.memory_space<vmem>>, vector<72x32xf32>
    %cst = arith.constant dense<0.000000e+00> : vector<32x32xf32>
    %13 = tpu.matmul %11, %12, %cst {dimension_numbers = #tpu.dot_dimension_numbers<[1], [0], [0], [1], [0, 0, 1, 1], [], []>} : vector<32x72xf32>, vector<72x32xf32>, vector<32x32xf32> -> vector<32x32xf32>
    %c0_5 = arith.constant 0 : index
    %c0_6 = arith.constant 0 : index
    %14 = vector.load %arg3[%c0_5, %c0_6] : memref<32x32xf32, #tpu.memory_space<vmem>>, vector<32x32xf32>
    %15 = arith.addf %13, %14 : vector<32x32xf32>
    %c0_7 = arith.constant 0 : index
    %c0_8 = arith.constant 0 : index
    %16 = vector.load %arg2[%c0_7, %c0_8] : memref<32x32xf32, #tpu.memory_space<vmem>>, vector<32x32xf32>
    %c0_9 = arith.constant 0 : index
    %c0_10 = arith.constant 0 : index
    %c0_11 = arith.constant 0 : index
    %17 = vector.load %arg10[%c0_9, %c0_10, %c0_11] : memref<2x4x32xf32, #tpu.memory_space<vmem>>, vector<1x4x32xf32>
    %18 = vector.shape_cast %17 : vector<1x4x32xf32> to vector<4x32xf32>
    %19 = vector.extract_strided_slice %18 {offsets = [0, 0], sizes = [1, 32], strides = [1, 1]} : vector<4x32xf32> to vector<1x32xf32>
    %20 = vector.extract_strided_slice %18 {offsets = [1, 0], sizes = [1, 32], strides = [1, 1]} : vector<4x32xf32> to vector<1x32xf32>
    %21 = vector.extract_strided_slice %18 {offsets = [2, 0], sizes = [1, 32], strides = [1, 1]} : vector<4x32xf32> to vector<1x32xf32>
    %22 = vector.extract_strided_slice %18 {offsets = [3, 0], sizes = [1, 32], strides = [1, 1]} : vector<4x32xf32> to vector<1x32xf32>
    %c0_12 = arith.constant 0 : index
    %c0_13 = arith.constant 0 : index
    %c0_14 = arith.constant 0 : index
    %23 = vector.load %arg9[%c0_12, %c0_13, %c0_14] : memref<2x2x128xf32, #tpu.memory_space<vmem>>, vector<1x2x128xf32>
    %24 = vector.shape_cast %23 : vector<1x2x128xf32> to vector<2x128xf32>
    %25 = vector.extract_strided_slice %24 {offsets = [0, 0], sizes = [1, 96], strides = [1, 1]} : vector<2x128xf32> to vector<1x96xf32>
    %26 = vector.extract_strided_slice %24 {offsets = [1, 0], sizes = [1, 128], strides = [1, 1]} : vector<2x128xf32> to vector<1x128xf32>
    %c0_15 = arith.constant 0 : index
    %c0_16 = arith.constant 0 : index
    %c0_17 = arith.constant 0 : index
    %27 = vector.load %arg5[%c0_15, %c0_16, %c0_17] : memref<2x32x96xf32, #tpu.memory_space<vmem>>, vector<1x32x96xf32>
    %28 = vector.shape_cast %27 : vector<1x32x96xf32> to vector<32x96xf32>
    %cst_18 = arith.constant dense<0.000000e+00> : vector<32x96xf32>
    %29 = tpu.matmul %15, %28, %cst_18 {dimension_numbers = #tpu.dot_dimension_numbers<[1], [0], [0], [1], [0, 0, 1, 1], [], []>} : vector<32x32xf32>, vector<32x96xf32>, vector<32x96xf32> -> vector<32x96xf32>
    %30 = vector.broadcast %25 : vector<1x96xf32> to vector<32x96xf32>
    %31 = arith.addf %29, %30 : vector<32x96xf32>
    %32 = vector.extract_strided_slice %31 {offsets = [0, 0], sizes = [32, 8], strides = [1, 1]} : vector<32x96xf32> to vector<32x8xf32>
    %33 = vector.extract_strided_slice %31 {offsets = [0, 32], sizes = [32, 8], strides = [1, 1]} : vector<32x96xf32> to vector<32x8xf32>
    %34 = vector.extract_strided_slice %31 {offsets = [0, 64], sizes = [32, 8], strides = [1, 1]} : vector<32x96xf32> to vector<32x8xf32>
    %cst_19 = arith.constant dense<0.000000e+00> : vector<32x32xf32>
    %35 = tpu.matmul %32, %33, %cst_19 {dimension_numbers = #tpu.dot_dimension_numbers<[1], [1], [0], [0], [0, 0, 1, 0], [], []>} : vector<32x8xf32>, vector<32x8xf32>, vector<32x32xf32> -> vector<32x32xf32>
    %36 = arith.addf %35, %16 : vector<32x32xf32>
    %cst_20 = arith.constant dense<0xFF800000> : vector<32xf32>
    %37 = vector.multi_reduction <maximumf>, %36, %cst_20 [1] : vector<32x32xf32> to vector<32xf32>
    %38 = vector.shape_cast %37 : vector<32xf32> to vector<32x1xf32>
    %39 = vector.broadcast %38 : vector<32x1xf32> to vector<32x32xf32>
    %40 = arith.subf %36, %39 : vector<32x32xf32>
    %41 = math.exp %40 : vector<32x32xf32>
    %cst_21 = arith.constant dense<0.000000e+00> : vector<32xf32>
    %42 = vector.multi_reduction <add>, %41, %cst_21 [1] : vector<32x32xf32> to vector<32xf32>
    %43 = vector.shape_cast %42 : vector<32xf32> to vector<32x1xf32>
    %44 = tpu.reciprocal %43 : vector<32x1xf32> -> vector<32x1xf32>
    %45 = vector.broadcast %44 : vector<32x1xf32> to vector<32x32xf32>
    %46 = arith.mulf %41, %45 : vector<32x32xf32>
    %cst_22 = arith.constant dense<0.000000e+00> : vector<32x8xf32>
    %47 = tpu.matmul %46, %34, %cst_22 {dimension_numbers = #tpu.dot_dimension_numbers<[1], [0], [0], [1], [0, 0, 1, 1], [], []>} : vector<32x32xf32>, vector<32x8xf32>, vector<32x8xf32> -> vector<32x8xf32>
    %48 = vector.extract_strided_slice %31 {offsets = [0, 8], sizes = [32, 8], strides = [1, 1]} : vector<32x96xf32> to vector<32x8xf32>
    %49 = vector.extract_strided_slice %31 {offsets = [0, 40], sizes = [32, 8], strides = [1, 1]} : vector<32x96xf32> to vector<32x8xf32>
    %50 = vector.extract_strided_slice %31 {offsets = [0, 72], sizes = [32, 8], strides = [1, 1]} : vector<32x96xf32> to vector<32x8xf32>
    %cst_23 = arith.constant dense<0.000000e+00> : vector<32x32xf32>
    %51 = tpu.matmul %48, %49, %cst_23 {dimension_numbers = #tpu.dot_dimension_numbers<[1], [1], [0], [0], [0, 0, 1, 0], [], []>} : vector<32x8xf32>, vector<32x8xf32>, vector<32x32xf32> -> vector<32x32xf32>
    %52 = arith.addf %51, %16 : vector<32x32xf32>
    %cst_24 = arith.constant dense<0xFF800000> : vector<32xf32>
    %53 = vector.multi_reduction <maximumf>, %52, %cst_24 [1] : vector<32x32xf32> to vector<32xf32>
    %54 = vector.shape_cast %53 : vector<32xf32> to vector<32x1xf32>
    %55 = vector.broadcast %54 : vector<32x1xf32> to vector<32x32xf32>
    %56 = arith.subf %52, %55 : vector<32x32xf32>
    %57 = math.exp %56 : vector<32x32xf32>
    %cst_25 = arith.constant dense<0.000000e+00> : vector<32xf32>
    %58 = vector.multi_reduction <add>, %57, %cst_25 [1] : vector<32x32xf32> to vector<32xf32>
    %59 = vector.shape_cast %58 : vector<32xf32> to vector<32x1xf32>
    %60 = tpu.reciprocal %59 : vector<32x1xf32> -> vector<32x1xf32>
    %61 = vector.broadcast %60 : vector<32x1xf32> to vector<32x32xf32>
    %62 = arith.mulf %57, %61 : vector<32x32xf32>
    %cst_26 = arith.constant dense<0.000000e+00> : vector<32x8xf32>
    %63 = tpu.matmul %62, %50, %cst_26 {dimension_numbers = #tpu.dot_dimension_numbers<[1], [0], [0], [1], [0, 0, 1, 1], [], []>} : vector<32x32xf32>, vector<32x8xf32>, vector<32x8xf32> -> vector<32x8xf32>
    %64 = vector.extract_strided_slice %31 {offsets = [0, 16], sizes = [32, 8], strides = [1, 1]} : vector<32x96xf32> to vector<32x8xf32>
    %65 = vector.extract_strided_slice %31 {offsets = [0, 48], sizes = [32, 8], strides = [1, 1]} : vector<32x96xf32> to vector<32x8xf32>
    %66 = vector.extract_strided_slice %31 {offsets = [0, 80], sizes = [32, 8], strides = [1, 1]} : vector<32x96xf32> to vector<32x8xf32>
    %cst_27 = arith.constant dense<0.000000e+00> : vector<32x32xf32>
    %67 = tpu.matmul %64, %65, %cst_27 {dimension_numbers = #tpu.dot_dimension_numbers<[1], [1], [0], [0], [0, 0, 1, 0], [], []>} : vector<32x8xf32>, vector<32x8xf32>, vector<32x32xf32> -> vector<32x32xf32>
    %68 = arith.addf %67, %16 : vector<32x32xf32>
    %cst_28 = arith.constant dense<0xFF800000> : vector<32xf32>
    %69 = vector.multi_reduction <maximumf>, %68, %cst_28 [1] : vector<32x32xf32> to vector<32xf32>
    %70 = vector.shape_cast %69 : vector<32xf32> to vector<32x1xf32>
    %71 = vector.broadcast %70 : vector<32x1xf32> to vector<32x32xf32>
    %72 = arith.subf %68, %71 : vector<32x32xf32>
    %73 = math.exp %72 : vector<32x32xf32>
    %cst_29 = arith.constant dense<0.000000e+00> : vector<32xf32>
    %74 = vector.multi_reduction <add>, %73, %cst_29 [1] : vector<32x32xf32> to vector<32xf32>
    %75 = vector.shape_cast %74 : vector<32xf32> to vector<32x1xf32>
    %76 = tpu.reciprocal %75 : vector<32x1xf32> -> vector<32x1xf32>
    %77 = vector.broadcast %76 : vector<32x1xf32> to vector<32x32xf32>
    %78 = arith.mulf %73, %77 : vector<32x32xf32>
    %cst_30 = arith.constant dense<0.000000e+00> : vector<32x8xf32>
    %79 = tpu.matmul %78, %66, %cst_30 {dimension_numbers = #tpu.dot_dimension_numbers<[1], [0], [0], [1], [0, 0, 1, 1], [], []>} : vector<32x32xf32>, vector<32x8xf32>, vector<32x8xf32> -> vector<32x8xf32>
    %80 = vector.extract_strided_slice %31 {offsets = [0, 24], sizes = [32, 8], strides = [1, 1]} : vector<32x96xf32> to vector<32x8xf32>
    %81 = vector.extract_strided_slice %31 {offsets = [0, 56], sizes = [32, 8], strides = [1, 1]} : vector<32x96xf32> to vector<32x8xf32>
    %82 = vector.extract_strided_slice %31 {offsets = [0, 88], sizes = [32, 8], strides = [1, 1]} : vector<32x96xf32> to vector<32x8xf32>
    %cst_31 = arith.constant dense<0.000000e+00> : vector<32x32xf32>
    %83 = tpu.matmul %80, %81, %cst_31 {dimension_numbers = #tpu.dot_dimension_numbers<[1], [1], [0], [0], [0, 0, 1, 0], [], []>} : vector<32x8xf32>, vector<32x8xf32>, vector<32x32xf32> -> vector<32x32xf32>
    %84 = arith.addf %83, %16 : vector<32x32xf32>
    %cst_32 = arith.constant dense<0xFF800000> : vector<32xf32>
    %85 = vector.multi_reduction <maximumf>, %84, %cst_32 [1] : vector<32x32xf32> to vector<32xf32>
    %86 = vector.shape_cast %85 : vector<32xf32> to vector<32x1xf32>
    %87 = vector.broadcast %86 : vector<32x1xf32> to vector<32x32xf32>
    %88 = arith.subf %84, %87 : vector<32x32xf32>
    %89 = math.exp %88 : vector<32x32xf32>
    %cst_33 = arith.constant dense<0.000000e+00> : vector<32xf32>
    %90 = vector.multi_reduction <add>, %89, %cst_33 [1] : vector<32x32xf32> to vector<32xf32>
    %91 = vector.shape_cast %90 : vector<32xf32> to vector<32x1xf32>
    %92 = tpu.reciprocal %91 : vector<32x1xf32> -> vector<32x1xf32>
    %93 = vector.broadcast %92 : vector<32x1xf32> to vector<32x32xf32>
    %94 = arith.mulf %89, %93 : vector<32x32xf32>
    %cst_34 = arith.constant dense<0.000000e+00> : vector<32x8xf32>
    %95 = tpu.matmul %94, %82, %cst_34 {dimension_numbers = #tpu.dot_dimension_numbers<[1], [0], [0], [1], [0, 0, 1, 1], [], []>} : vector<32x32xf32>, vector<32x8xf32>, vector<32x8xf32> -> vector<32x8xf32>
    %96 = tpu.concatenate %47, %63, %79, %95 in 1 : vector<32x8xf32>, vector<32x8xf32>, vector<32x8xf32>, vector<32x8xf32> -> vector<32x32xf32>
    %c0_35 = arith.constant 0 : index
    %c0_36 = arith.constant 0 : index
    %c0_37 = arith.constant 0 : index
    %97 = vector.load %arg6[%c0_35, %c0_36, %c0_37] : memref<2x32x32xf32, #tpu.memory_space<vmem>>, vector<1x32x32xf32>
    %98 = vector.shape_cast %97 : vector<1x32x32xf32> to vector<32x32xf32>
    %cst_38 = arith.constant dense<0.000000e+00> : vector<32x32xf32>
    %99 = tpu.matmul %96, %98, %cst_38 {dimension_numbers = #tpu.dot_dimension_numbers<[1], [0], [0], [1], [0, 0, 1, 1], [], []>} : vector<32x32xf32>, vector<32x32xf32>, vector<32x32xf32> -> vector<32x32xf32>
    %100 = vector.broadcast %19 : vector<1x32xf32> to vector<32x32xf32>
    %101 = arith.addf %99, %100 : vector<32x32xf32>
    %102 = arith.addf %101, %15 : vector<32x32xf32>
    %cst_39 = arith.constant dense<0.000000e+00> : vector<32xf32>
    %103 = vector.multi_reduction <add>, %102, %cst_39 [1] : vector<32x32xf32> to vector<32xf32>
    %104 = vector.shape_cast %103 : vector<32xf32> to vector<32x1xf32>
    %cst_40 = arith.constant 3.200000e+01 : f32
    %105 = vector.broadcast %cst_40 : f32 to vector<32x1xf32>
    %106 = arith.divf %104, %105 : vector<32x1xf32>
    %107 = vector.broadcast %106 : vector<32x1xf32> to vector<32x32xf32>
    %108 = arith.subf %102, %107 : vector<32x32xf32>
    %109 = arith.mulf %108, %108 : vector<32x32xf32>
    %cst_41 = arith.constant dense<0.000000e+00> : vector<32xf32>
    %110 = vector.multi_reduction <add>, %109, %cst_41 [1] : vector<32x32xf32> to vector<32xf32>
    %111 = vector.shape_cast %110 : vector<32xf32> to vector<32x1xf32>
    %cst_42 = arith.constant 3.200000e+01 : f32
    %112 = vector.broadcast %cst_42 : f32 to vector<32x1xf32>
    %113 = arith.divf %111, %112 : vector<32x1xf32>
    %114 = vector.broadcast %106 : vector<32x1xf32> to vector<32x32xf32>
    %115 = arith.subf %102, %114 : vector<32x32xf32>
    %cst_43 = arith.constant 9.99999974E-6 : f32
    %116 = vector.broadcast %cst_43 : f32 to vector<32x1xf32>
    %117 = arith.addf %113, %116 : vector<32x1xf32>
    %118 = math.rsqrt %117 : vector<32x1xf32>
    %119 = vector.broadcast %118 : vector<32x1xf32> to vector<32x32xf32>
    %120 = arith.mulf %115, %119 : vector<32x32xf32>
    %121 = vector.broadcast %21 : vector<1x32xf32> to vector<32x32xf32>
    %122 = arith.mulf %120, %121 : vector<32x32xf32>
    %123 = vector.broadcast %22 : vector<1x32xf32> to vector<32x32xf32>
    %124 = arith.addf %122, %123 : vector<32x32xf32>
    %c0_44 = arith.constant 0 : index
    %c0_45 = arith.constant 0 : index
    %c0_46 = arith.constant 0 : index
    %125 = vector.load %arg7[%c0_44, %c0_45, %c0_46] : memref<2x32x128xf32, #tpu.memory_space<vmem>>, vector<1x32x128xf32>
    %126 = vector.shape_cast %125 : vector<1x32x128xf32> to vector<32x128xf32>
    %cst_47 = arith.constant dense<0.000000e+00> : vector<32x128xf32>
    %127 = tpu.matmul %124, %126, %cst_47 {dimension_numbers = #tpu.dot_dimension_numbers<[1], [0], [0], [1], [0, 0, 1, 1], [], []>} : vector<32x32xf32>, vector<32x128xf32>, vector<32x128xf32> -> vector<32x128xf32>
    %128 = vector.broadcast %26 : vector<1x128xf32> to vector<32x128xf32>
    %129 = arith.addf %127, %128 : vector<32x128xf32>
    %cst_48 = arith.constant 5.000000e-01 : f32
    %130 = vector.broadcast %cst_48 : f32 to vector<32x128xf32>
    %131 = arith.mulf %130, %129 : vector<32x128xf32>
    %cst_49 = arith.constant 1.41421354 : f32
    %132 = vector.broadcast %cst_49 : f32 to vector<32x128xf32>
    %133 = arith.divf %129, %132 : vector<32x128xf32>
    %134 = math.erf %133 : vector<32x128xf32>
    %cst_50 = arith.constant 1.000000e+00 : f32
    %135 = vector.broadcast %cst_50 : f32 to vector<32x128xf32>
    %136 = arith.addf %135, %134 : vector<32x128xf32>
    %137 = arith.mulf %131, %136 : vector<32x128xf32>
    %c0_51 = arith.constant 0 : index
    %c0_52 = arith.constant 0 : index
    %c0_53 = arith.constant 0 : index
    %138 = vector.load %arg8[%c0_51, %c0_52, %c0_53] : memref<2x128x32xf32, #tpu.memory_space<vmem>>, vector<1x128x32xf32>
    %139 = vector.shape_cast %138 : vector<1x128x32xf32> to vector<128x32xf32>
    %cst_54 = arith.constant dense<0.000000e+00> : vector<32x32xf32>
    %140 = tpu.matmul %137, %139, %cst_54 {dimension_numbers = #tpu.dot_dimension_numbers<[1], [0], [0], [1], [0, 0, 1, 1], [], []>} : vector<32x128xf32>, vector<128x32xf32>, vector<32x32xf32> -> vector<32x32xf32>
    %141 = vector.broadcast %20 : vector<1x32xf32> to vector<32x32xf32>
    %142 = arith.addf %140, %141 : vector<32x32xf32>
    %143 = arith.addf %142, %124 : vector<32x32xf32>
    %cst_55 = arith.constant dense<0.000000e+00> : vector<32xf32>
    %144 = vector.multi_reduction <add>, %143, %cst_55 [1] : vector<32x32xf32> to vector<32xf32>
    %145 = vector.shape_cast %144 : vector<32xf32> to vector<32x1xf32>
    %cst_56 = arith.constant 3.200000e+01 : f32
    %146 = vector.broadcast %cst_56 : f32 to vector<32x1xf32>
    %147 = arith.divf %145, %146 : vector<32x1xf32>
    %148 = vector.broadcast %147 : vector<32x1xf32> to vector<32x32xf32>
    %149 = arith.subf %143, %148 : vector<32x32xf32>
    %150 = arith.mulf %149, %149 : vector<32x32xf32>
    %cst_57 = arith.constant dense<0.000000e+00> : vector<32xf32>
    %151 = vector.multi_reduction <add>, %150, %cst_57 [1] : vector<32x32xf32> to vector<32xf32>
    %152 = vector.shape_cast %151 : vector<32xf32> to vector<32x1xf32>
    %cst_58 = arith.constant 3.200000e+01 : f32
    %153 = vector.broadcast %cst_58 : f32 to vector<32x1xf32>
    %154 = arith.divf %152, %153 : vector<32x1xf32>
    %155 = vector.broadcast %147 : vector<32x1xf32> to vector<32x32xf32>
    %156 = arith.subf %143, %155 : vector<32x32xf32>
    %cst_59 = arith.constant 9.99999974E-6 : f32
    %157 = vector.broadcast %cst_59 : f32 to vector<32x1xf32>
    %158 = arith.addf %154, %157 : vector<32x1xf32>
    %159 = math.rsqrt %158 : vector<32x1xf32>
    %160 = vector.broadcast %159 : vector<32x1xf32> to vector<32x32xf32>
    %161 = arith.mulf %156, %160 : vector<32x32xf32>
    %162 = vector.broadcast %21 : vector<1x32xf32> to vector<32x32xf32>
    %163 = arith.mulf %161, %162 : vector<32x32xf32>
    %164 = vector.broadcast %22 : vector<1x32xf32> to vector<32x32xf32>
    %165 = arith.addf %163, %164 : vector<32x32xf32>
    %c1 = arith.constant 1 : index
    %c0_60 = arith.constant 0 : index
    %c0_61 = arith.constant 0 : index
    %166 = vector.load %arg10[%c1, %c0_60, %c0_61] : memref<2x4x32xf32, #tpu.memory_space<vmem>>, vector<1x4x32xf32>
    %167 = vector.shape_cast %166 : vector<1x4x32xf32> to vector<4x32xf32>
    %168 = vector.extract_strided_slice %167 {offsets = [0, 0], sizes = [1, 32], strides = [1, 1]} : vector<4x32xf32> to vector<1x32xf32>
    %169 = vector.extract_strided_slice %167 {offsets = [1, 0], sizes = [1, 32], strides = [1, 1]} : vector<4x32xf32> to vector<1x32xf32>
    %170 = vector.extract_strided_slice %167 {offsets = [2, 0], sizes = [1, 32], strides = [1, 1]} : vector<4x32xf32> to vector<1x32xf32>
    %171 = vector.extract_strided_slice %167 {offsets = [3, 0], sizes = [1, 32], strides = [1, 1]} : vector<4x32xf32> to vector<1x32xf32>
    %c1_62 = arith.constant 1 : index
    %c0_63 = arith.constant 0 : index
    %c0_64 = arith.constant 0 : index
    %172 = vector.load %arg9[%c1_62, %c0_63, %c0_64] : memref<2x2x128xf32, #tpu.memory_space<vmem>>, vector<1x2x128xf32>
    %173 = vector.shape_cast %172 : vector<1x2x128xf32> to vector<2x128xf32>
    %174 = vector.extract_strided_slice %173 {offsets = [0, 0], sizes = [1, 96], strides = [1, 1]} : vector<2x128xf32> to vector<1x96xf32>
    %175 = vector.extract_strided_slice %173 {offsets = [1, 0], sizes = [1, 128], strides = [1, 1]} : vector<2x128xf32> to vector<1x128xf32>
    %c1_65 = arith.constant 1 : index
    %c0_66 = arith.constant 0 : index
    %c0_67 = arith.constant 0 : index
    %176 = vector.load %arg5[%c1_65, %c0_66, %c0_67] : memref<2x32x96xf32, #tpu.memory_space<vmem>>, vector<1x32x96xf32>
    %177 = vector.shape_cast %176 : vector<1x32x96xf32> to vector<32x96xf32>
    %cst_68 = arith.constant dense<0.000000e+00> : vector<32x96xf32>
    %178 = tpu.matmul %165, %177, %cst_68 {dimension_numbers = #tpu.dot_dimension_numbers<[1], [0], [0], [1], [0, 0, 1, 1], [], []>} : vector<32x32xf32>, vector<32x96xf32>, vector<32x96xf32> -> vector<32x96xf32>
    %179 = vector.broadcast %174 : vector<1x96xf32> to vector<32x96xf32>
    %180 = arith.addf %178, %179 : vector<32x96xf32>
    %181 = vector.extract_strided_slice %180 {offsets = [0, 0], sizes = [32, 8], strides = [1, 1]} : vector<32x96xf32> to vector<32x8xf32>
    %182 = vector.extract_strided_slice %180 {offsets = [0, 32], sizes = [32, 8], strides = [1, 1]} : vector<32x96xf32> to vector<32x8xf32>
    %183 = vector.extract_strided_slice %180 {offsets = [0, 64], sizes = [32, 8], strides = [1, 1]} : vector<32x96xf32> to vector<32x8xf32>
    %cst_69 = arith.constant dense<0.000000e+00> : vector<32x32xf32>
    %184 = tpu.matmul %181, %182, %cst_69 {dimension_numbers = #tpu.dot_dimension_numbers<[1], [1], [0], [0], [0, 0, 1, 0], [], []>} : vector<32x8xf32>, vector<32x8xf32>, vector<32x32xf32> -> vector<32x32xf32>
    %185 = arith.addf %184, %16 : vector<32x32xf32>
    %cst_70 = arith.constant dense<0xFF800000> : vector<32xf32>
    %186 = vector.multi_reduction <maximumf>, %185, %cst_70 [1] : vector<32x32xf32> to vector<32xf32>
    %187 = vector.shape_cast %186 : vector<32xf32> to vector<32x1xf32>
    %188 = vector.broadcast %187 : vector<32x1xf32> to vector<32x32xf32>
    %189 = arith.subf %185, %188 : vector<32x32xf32>
    %190 = math.exp %189 : vector<32x32xf32>
    %cst_71 = arith.constant dense<0.000000e+00> : vector<32xf32>
    %191 = vector.multi_reduction <add>, %190, %cst_71 [1] : vector<32x32xf32> to vector<32xf32>
    %192 = vector.shape_cast %191 : vector<32xf32> to vector<32x1xf32>
    %193 = tpu.reciprocal %192 : vector<32x1xf32> -> vector<32x1xf32>
    %194 = vector.broadcast %193 : vector<32x1xf32> to vector<32x32xf32>
    %195 = arith.mulf %190, %194 : vector<32x32xf32>
    %cst_72 = arith.constant dense<0.000000e+00> : vector<32x8xf32>
    %196 = tpu.matmul %195, %183, %cst_72 {dimension_numbers = #tpu.dot_dimension_numbers<[1], [0], [0], [1], [0, 0, 1, 1], [], []>} : vector<32x32xf32>, vector<32x8xf32>, vector<32x8xf32> -> vector<32x8xf32>
    %197 = vector.extract_strided_slice %180 {offsets = [0, 8], sizes = [32, 8], strides = [1, 1]} : vector<32x96xf32> to vector<32x8xf32>
    %198 = vector.extract_strided_slice %180 {offsets = [0, 40], sizes = [32, 8], strides = [1, 1]} : vector<32x96xf32> to vector<32x8xf32>
    %199 = vector.extract_strided_slice %180 {offsets = [0, 72], sizes = [32, 8], strides = [1, 1]} : vector<32x96xf32> to vector<32x8xf32>
    %cst_73 = arith.constant dense<0.000000e+00> : vector<32x32xf32>
    %200 = tpu.matmul %197, %198, %cst_73 {dimension_numbers = #tpu.dot_dimension_numbers<[1], [1], [0], [0], [0, 0, 1, 0], [], []>} : vector<32x8xf32>, vector<32x8xf32>, vector<32x32xf32> -> vector<32x32xf32>
    %201 = arith.addf %200, %16 : vector<32x32xf32>
    %cst_74 = arith.constant dense<0xFF800000> : vector<32xf32>
    %202 = vector.multi_reduction <maximumf>, %201, %cst_74 [1] : vector<32x32xf32> to vector<32xf32>
    %203 = vector.shape_cast %202 : vector<32xf32> to vector<32x1xf32>
    %204 = vector.broadcast %203 : vector<32x1xf32> to vector<32x32xf32>
    %205 = arith.subf %201, %204 : vector<32x32xf32>
    %206 = math.exp %205 : vector<32x32xf32>
    %cst_75 = arith.constant dense<0.000000e+00> : vector<32xf32>
    %207 = vector.multi_reduction <add>, %206, %cst_75 [1] : vector<32x32xf32> to vector<32xf32>
    %208 = vector.shape_cast %207 : vector<32xf32> to vector<32x1xf32>
    %209 = tpu.reciprocal %208 : vector<32x1xf32> -> vector<32x1xf32>
    %210 = vector.broadcast %209 : vector<32x1xf32> to vector<32x32xf32>
    %211 = arith.mulf %206, %210 : vector<32x32xf32>
    %cst_76 = arith.constant dense<0.000000e+00> : vector<32x8xf32>
    %212 = tpu.matmul %211, %199, %cst_76 {dimension_numbers = #tpu.dot_dimension_numbers<[1], [0], [0], [1], [0, 0, 1, 1], [], []>} : vector<32x32xf32>, vector<32x8xf32>, vector<32x8xf32> -> vector<32x8xf32>
    %213 = vector.extract_strided_slice %180 {offsets = [0, 16], sizes = [32, 8], strides = [1, 1]} : vector<32x96xf32> to vector<32x8xf32>
    %214 = vector.extract_strided_slice %180 {offsets = [0, 48], sizes = [32, 8], strides = [1, 1]} : vector<32x96xf32> to vector<32x8xf32>
    %215 = vector.extract_strided_slice %180 {offsets = [0, 80], sizes = [32, 8], strides = [1, 1]} : vector<32x96xf32> to vector<32x8xf32>
    %cst_77 = arith.constant dense<0.000000e+00> : vector<32x32xf32>
    %216 = tpu.matmul %213, %214, %cst_77 {dimension_numbers = #tpu.dot_dimension_numbers<[1], [1], [0], [0], [0, 0, 1, 0], [], []>} : vector<32x8xf32>, vector<32x8xf32>, vector<32x32xf32> -> vector<32x32xf32>
    %217 = arith.addf %216, %16 : vector<32x32xf32>
    %cst_78 = arith.constant dense<0xFF800000> : vector<32xf32>
    %218 = vector.multi_reduction <maximumf>, %217, %cst_78 [1] : vector<32x32xf32> to vector<32xf32>
    %219 = vector.shape_cast %218 : vector<32xf32> to vector<32x1xf32>
    %220 = vector.broadcast %219 : vector<32x1xf32> to vector<32x32xf32>
    %221 = arith.subf %217, %220 : vector<32x32xf32>
    %222 = math.exp %221 : vector<32x32xf32>
    %cst_79 = arith.constant dense<0.000000e+00> : vector<32xf32>
    %223 = vector.multi_reduction <add>, %222, %cst_79 [1] : vector<32x32xf32> to vector<32xf32>
    %224 = vector.shape_cast %223 : vector<32xf32> to vector<32x1xf32>
    %225 = tpu.reciprocal %224 : vector<32x1xf32> -> vector<32x1xf32>
    %226 = vector.broadcast %225 : vector<32x1xf32> to vector<32x32xf32>
    %227 = arith.mulf %222, %226 : vector<32x32xf32>
    %cst_80 = arith.constant dense<0.000000e+00> : vector<32x8xf32>
    %228 = tpu.matmul %227, %215, %cst_80 {dimension_numbers = #tpu.dot_dimension_numbers<[1], [0], [0], [1], [0, 0, 1, 1], [], []>} : vector<32x32xf32>, vector<32x8xf32>, vector<32x8xf32> -> vector<32x8xf32>
    %229 = vector.extract_strided_slice %180 {offsets = [0, 24], sizes = [32, 8], strides = [1, 1]} : vector<32x96xf32> to vector<32x8xf32>
    %230 = vector.extract_strided_slice %180 {offsets = [0, 56], sizes = [32, 8], strides = [1, 1]} : vector<32x96xf32> to vector<32x8xf32>
    %231 = vector.extract_strided_slice %180 {offsets = [0, 88], sizes = [32, 8], strides = [1, 1]} : vector<32x96xf32> to vector<32x8xf32>
    %cst_81 = arith.constant dense<0.000000e+00> : vector<32x32xf32>
    %232 = tpu.matmul %229, %230, %cst_81 {dimension_numbers = #tpu.dot_dimension_numbers<[1], [1], [0], [0], [0, 0, 1, 0], [], []>} : vector<32x8xf32>, vector<32x8xf32>, vector<32x32xf32> -> vector<32x32xf32>
    %233 = arith.addf %232, %16 : vector<32x32xf32>
    %cst_82 = arith.constant dense<0xFF800000> : vector<32xf32>
    %234 = vector.multi_reduction <maximumf>, %233, %cst_82 [1] : vector<32x32xf32> to vector<32xf32>
    %235 = vector.shape_cast %234 : vector<32xf32> to vector<32x1xf32>
    %236 = vector.broadcast %235 : vector<32x1xf32> to vector<32x32xf32>
    %237 = arith.subf %233, %236 : vector<32x32xf32>
    %238 = math.exp %237 : vector<32x32xf32>
    %cst_83 = arith.constant dense<0.000000e+00> : vector<32xf32>
    %239 = vector.multi_reduction <add>, %238, %cst_83 [1] : vector<32x32xf32> to vector<32xf32>
    %240 = vector.shape_cast %239 : vector<32xf32> to vector<32x1xf32>
    %241 = tpu.reciprocal %240 : vector<32x1xf32> -> vector<32x1xf32>
    %242 = vector.broadcast %241 : vector<32x1xf32> to vector<32x32xf32>
    %243 = arith.mulf %238, %242 : vector<32x32xf32>
    %cst_84 = arith.constant dense<0.000000e+00> : vector<32x8xf32>
    %244 = tpu.matmul %243, %231, %cst_84 {dimension_numbers = #tpu.dot_dimension_numbers<[1], [0], [0], [1], [0, 0, 1, 1], [], []>} : vector<32x32xf32>, vector<32x8xf32>, vector<32x8xf32> -> vector<32x8xf32>
    %245 = tpu.concatenate %196, %212, %228, %244 in 1 : vector<32x8xf32>, vector<32x8xf32>, vector<32x8xf32>, vector<32x8xf32> -> vector<32x32xf32>
    %c1_85 = arith.constant 1 : index
    %c0_86 = arith.constant 0 : index
    %c0_87 = arith.constant 0 : index
    %246 = vector.load %arg6[%c1_85, %c0_86, %c0_87] : memref<2x32x32xf32, #tpu.memory_space<vmem>>, vector<1x32x32xf32>
    %247 = vector.shape_cast %246 : vector<1x32x32xf32> to vector<32x32xf32>
    %cst_88 = arith.constant dense<0.000000e+00> : vector<32x32xf32>
    %248 = tpu.matmul %245, %247, %cst_88 {dimension_numbers = #tpu.dot_dimension_numbers<[1], [0], [0], [1], [0, 0, 1, 1], [], []>} : vector<32x32xf32>, vector<32x32xf32>, vector<32x32xf32> -> vector<32x32xf32>
    %249 = vector.broadcast %168 : vector<1x32xf32> to vector<32x32xf32>
    %250 = arith.addf %248, %249 : vector<32x32xf32>
    %251 = arith.addf %250, %165 : vector<32x32xf32>
    %cst_89 = arith.constant dense<0.000000e+00> : vector<32xf32>
    %252 = vector.multi_reduction <add>, %251, %cst_89 [1] : vector<32x32xf32> to vector<32xf32>
    %253 = vector.shape_cast %252 : vector<32xf32> to vector<32x1xf32>
    %cst_90 = arith.constant 3.200000e+01 : f32
    %254 = vector.broadcast %cst_90 : f32 to vector<32x1xf32>
    %255 = arith.divf %253, %254 : vector<32x1xf32>
    %256 = vector.broadcast %255 : vector<32x1xf32> to vector<32x32xf32>
    %257 = arith.subf %251, %256 : vector<32x32xf32>
    %258 = arith.mulf %257, %257 : vector<32x32xf32>
    %cst_91 = arith.constant dense<0.000000e+00> : vector<32xf32>
    %259 = vector.multi_reduction <add>, %258, %cst_91 [1] : vector<32x32xf32> to vector<32xf32>
    %260 = vector.shape_cast %259 : vector<32xf32> to vector<32x1xf32>
    %cst_92 = arith.constant 3.200000e+01 : f32
    %261 = vector.broadcast %cst_92 : f32 to vector<32x1xf32>
    %262 = arith.divf %260, %261 : vector<32x1xf32>
    %263 = vector.broadcast %255 : vector<32x1xf32> to vector<32x32xf32>
    %264 = arith.subf %251, %263 : vector<32x32xf32>
    %cst_93 = arith.constant 9.99999974E-6 : f32
    %265 = vector.broadcast %cst_93 : f32 to vector<32x1xf32>
    %266 = arith.addf %262, %265 : vector<32x1xf32>
    %267 = math.rsqrt %266 : vector<32x1xf32>
    %268 = vector.broadcast %267 : vector<32x1xf32> to vector<32x32xf32>
    %269 = arith.mulf %264, %268 : vector<32x32xf32>
    %270 = vector.broadcast %170 : vector<1x32xf32> to vector<32x32xf32>
    %271 = arith.mulf %269, %270 : vector<32x32xf32>
    %272 = vector.broadcast %171 : vector<1x32xf32> to vector<32x32xf32>
    %273 = arith.addf %271, %272 : vector<32x32xf32>
    %c1_94 = arith.constant 1 : index
    %c0_95 = arith.constant 0 : index
    %c0_96 = arith.constant 0 : index
    %274 = vector.load %arg7[%c1_94, %c0_95, %c0_96] : memref<2x32x128xf32, #tpu.memory_space<vmem>>, vector<1x32x128xf32>
    %275 = vector.shape_cast %274 : vector<1x32x128xf32> to vector<32x128xf32>
    %cst_97 = arith.constant dense<0.000000e+00> : vector<32x128xf32>
    %276 = tpu.matmul %273, %275, %cst_97 {dimension_numbers = #tpu.dot_dimension_numbers<[1], [0], [0], [1], [0, 0, 1, 1], [], []>} : vector<32x32xf32>, vector<32x128xf32>, vector<32x128xf32> -> vector<32x128xf32>
    %277 = vector.broadcast %175 : vector<1x128xf32> to vector<32x128xf32>
    %278 = arith.addf %276, %277 : vector<32x128xf32>
    %cst_98 = arith.constant 5.000000e-01 : f32
    %279 = vector.broadcast %cst_98 : f32 to vector<32x128xf32>
    %280 = arith.mulf %279, %278 : vector<32x128xf32>
    %cst_99 = arith.constant 1.41421354 : f32
    %281 = vector.broadcast %cst_99 : f32 to vector<32x128xf32>
    %282 = arith.divf %278, %281 : vector<32x128xf32>
    %283 = math.erf %282 : vector<32x128xf32>
    %cst_100 = arith.constant 1.000000e+00 : f32
    %284 = vector.broadcast %cst_100 : f32 to vector<32x128xf32>
    %285 = arith.addf %284, %283 : vector<32x128xf32>
    %286 = arith.mulf %280, %285 : vector<32x128xf32>
    %c1_101 = arith.constant 1 : index
    %c0_102 = arith.constant 0 : index
    %c0_103 = arith.constant 0 : index
    %287 = vector.load %arg8[%c1_101, %c0_102, %c0_103] : memref<2x128x32xf32, #tpu.memory_space<vmem>>, vector<1x128x32xf32>
    %288 = vector.shape_cast %287 : vector<1x128x32xf32> to vector<128x32xf32>
    %cst_104 = arith.constant dense<0.000000e+00> : vector<32x32xf32>
    %289 = tpu.matmul %286, %288, %cst_104 {dimension_numbers = #tpu.dot_dimension_numbers<[1], [0], [0], [1], [0, 0, 1, 1], [], []>} : vector<32x128xf32>, vector<128x32xf32>, vector<32x32xf32> -> vector<32x32xf32>
    %290 = vector.broadcast %169 : vector<1x32xf32> to vector<32x32xf32>
    %291 = arith.addf %289, %290 : vector<32x32xf32>
    %292 = arith.addf %291, %273 : vector<32x32xf32>
    %cst_105 = arith.constant dense<0.000000e+00> : vector<32xf32>
    %293 = vector.multi_reduction <add>, %292, %cst_105 [1] : vector<32x32xf32> to vector<32xf32>
    %294 = vector.shape_cast %293 : vector<32xf32> to vector<32x1xf32>
    %cst_106 = arith.constant 3.200000e+01 : f32
    %295 = vector.broadcast %cst_106 : f32 to vector<32x1xf32>
    %296 = arith.divf %294, %295 : vector<32x1xf32>
    %297 = vector.broadcast %296 : vector<32x1xf32> to vector<32x32xf32>
    %298 = arith.subf %292, %297 : vector<32x32xf32>
    %299 = arith.mulf %298, %298 : vector<32x32xf32>
    %cst_107 = arith.constant dense<0.000000e+00> : vector<32xf32>
    %300 = vector.multi_reduction <add>, %299, %cst_107 [1] : vector<32x32xf32> to vector<32xf32>
    %301 = vector.shape_cast %300 : vector<32xf32> to vector<32x1xf32>
    %cst_108 = arith.constant 3.200000e+01 : f32
    %302 = vector.broadcast %cst_108 : f32 to vector<32x1xf32>
    %303 = arith.divf %301, %302 : vector<32x1xf32>
    %304 = vector.broadcast %296 : vector<32x1xf32> to vector<32x32xf32>
    %305 = arith.subf %292, %304 : vector<32x32xf32>
    %cst_109 = arith.constant 9.99999974E-6 : f32
    %306 = vector.broadcast %cst_109 : f32 to vector<32x1xf32>
    %307 = arith.addf %303, %306 : vector<32x1xf32>
    %308 = math.rsqrt %307 : vector<32x1xf32>
    %309 = vector.broadcast %308 : vector<32x1xf32> to vector<32x32xf32>
    %310 = arith.mulf %305, %309 : vector<32x32xf32>
    %311 = vector.broadcast %170 : vector<1x32xf32> to vector<32x32xf32>
    %312 = arith.mulf %310, %311 : vector<32x32xf32>
    %313 = vector.broadcast %171 : vector<1x32xf32> to vector<32x32xf32>
    %314 = arith.addf %312, %313 : vector<32x32xf32>
    %c0_110 = arith.constant 0 : index
    %c0_111 = arith.constant 0 : index
    %315 = vector.load %arg11[%c0_110, %c0_111] : memref<32x32xf32, #tpu.memory_space<vmem>>, vector<32x32xf32>
    tpu.vector_store %arg11[%c0_110, %c0_111], %314 {strides = array<i32>} : memref<32x32xf32, #tpu.memory_space<vmem>>, vector<32x32xf32>,
    return
  }
}

</mosaic_0001>

<bundles_post_ra>
// kernel: eq.8
= control target key start
LH: loop header
LB: loop body
LE: loop exit
PB: predicated region body
PF: predicated region fallthrough
CT: control target
= control target key end

     0   :  { %vm7_vm0 = vcmask 130048   ;;  %vm13_vm1 = vcmask 261248   ;;  %s39_s0 = inlined_call_operand.vmem [shape: s32[2,16], index: 0, kind: input, shape index: {}]   ;;  %s40_s1 = inlined_call_operand.vmem [shape: s32[32], index: 1, kind: output, shape index: {}]  }
   0x1   :  { %v4_v0 = vld [vmem:[%s39_s0] sm:$0x3]  ;;  %s22_s0 = smov 16  }
   0x2   :  { %5 = vst [vmem:[#allocation1] sm:$0x3] %v4_v0 }
   0x9   :  { %v10_v1 = vld [vmem:[#allocation1 + $0x1] sm:$0x1]   ;;  %v6_v2 = vld [vmem:[#allocation1] sm:$0x1]  }
   0xa   :  { %11 = vrot.lane.b32.xlu0 %v10_v1, %s22_s0  ;;  %8 = vst.msk [vmem:[#allocation0] sm:$0x1] %vm7_vm0, %v6_v2  }
  0x7c   :  { %v12_v3 = vpop.permute.xlu0 %11  }
  0x7d   :  { %14 = vst.msk [vmem:[#allocation0] sm:$0x1] %vm13_vm1, %v12_v3  }
  0x84   :  { %v18_v4 = vld [vmem:[#allocation0] sm:$0x1] }
  0x85   :  { %20 = vst [vmem:[%s40_s1] sm:$0x1] %v18_v4 }

// kernel: bert_forward.1
= control target key start
LH: loop header
LB: loop body
LE: loop exit
PB: predicated region body
PF: predicated region fallthrough
CT: control target
= control target key end

     0   :  { %v5141_v3 = vmov 0   ;;  %s6315_s0 = inlined_call_operand.vmem [shape: s32[32,1], index: 0, kind: input, shape index: {}]   ;;  %s6316_s1 = inlined_call_operand.vmem [shape: s32[32,1], index: 1, kind: input, shape index: {}]   ;;  %s6317_s2 = inlined_call_operand.vmem [shape: f32[32,32], index: 2, kind: input, shape index: {}]   ;;  %s6318_s3 = inlined_call_operand.vmem [shape: f32[32,32], index: 3, kind: input, shape index: {}]   ;;  %s6319_s4 = inlined_call_operand.vmem [shape: f32[72,32], index: 4, kind: input, shape index: {}]   ;;  %s6320_s5 = inlined_call_operand.vmem [shape: f32[2,32,96], index: 5, kind: input, shape index: {}]   ;;  %s6321_s6 = inlined_call_operand.vmem [shape: f32[2,32,32], index: 6, kind: input, shape index: {}]   ;;  %s6322_s7 = inlined_call_operand.vmem [shape: f32[2,32,128], index: 7, kind: input, shape index: {}]   ;;  %s6323_s8 = inlined_call_operand.vmem [shape: f32[2,128,32], index: 8, kind: input, shape index: {}]   ;;  %s6324_s9 = inlined_call_operand.vmem [shape: f32[2,2,128], index: 9, kind: input, shape index: {}]   ;;  %s6325_s10 = inlined_call_operand.vmem [shape: f32[2,4,32], index: 10, kind: input, shape index: {}]   ;;  %s6326_s11 = inlined_call_operand.hbm [shape: f32[32,32], index: 11, kind: output, shape index: {}]  }
   0x1   :  { %v40_v0 = vld [vmem:[%s6315_s0 + $0x8] sm:$0xff]  ;;  %v39_v1 = vld [vmem:[%s6315_s0] sm:$0xff]  ;;  %4774 = vset.pattern.permute.xlu1 %v5141_v3  ;;  %4773 = vset.pattern.permute.xlu0 %v5141_v3  ;;  %v45_v7 = vld [vmem:[%s6316_s1 + $0x10] sm:$0xff] }
   0x2   :  { %v44_v2 = vld [vmem:[%s6316_s1 + $0x8] sm:$0xff]  ;;  %v43_v4 = vld [vmem:[%s6316_s1] sm:$0xff]  ;;  %57 = vperm.xlu1 %4774, %v40_v0   ;;  %54 = vperm.xlu0 %4773, %v39_v1   ;;  %v99_v10 = vld [vmem:[%s6319_s4 + $0x10] sm:$0xff] }
   0x3   :  { %v48_v5 = vadd.s32 64, %v44_v2  ;;  %v47_v6 = vadd.s32 64, %v43_v4  ;;  %v97_v8 = vld [vmem:[%s6319_s4] sm:$0xff]  ;;  %v98_v9 = vld [vmem:[%s6319_s4 + $0x8] sm:$0xff]  ;;  %v100_v11 = vld [vmem:[%s6319_s4 + $0x18] sm:$0xff] }
   0x4   :  { %v4467_v12 = vpack.c.bf16 %v98_v9, %v97_v8  ;;  %v4471_v13 = vpack.c.bf16 %v100_v11, %v99_v10 }
   0x5   :  { %16 = vsyncpa [#allocation3], 0  ;;  %v49_v14 = vadd.s32 64, %v45_v7  ;;  %v101_v15 = vld [vmem:[%s6319_s4 + $0x20] sm:$0xff]  ;;  %v102_v16 = vld [vmem:[%s6319_s4 + $0x28] sm:$0xff]  ;;  %v51_v29 = vlaneseq  ;;  %vm110_vm5 = vcmask 588800  }
   0x6   :  { %73 = vperm.xlu1 %4774, %v48_v5   ;;  %70 = vperm.xlu0 %4773, %v47_v6   ;;  %v41_v17 = vld [vmem:[%s6315_s0 + $0x10] sm:$0xff]  ;;  %v46_v18 = vld [vmem:[%s6316_s1 + $0x18] sm:$0xff]  ;;  %v4475_v19 = vpack.c.bf16 %v102_v16, %v101_v15  ;;  %v214_v25 = vld [vmem:[%s6320_s5] sm:$0xff]  ;;  %v5142_v35 = vmov 0.0   ;;  %vm222_vm13 = vcmask 261120   ;;  %vm332_vm14 = vcmask 64512  }
   0x7   :  { %4468 = vmatprep.subr.bf16.mxu0 %v4467_v12  ;;  %v50_v20 = vadd.s32 64, %v46_v18  ;;  %v103_v21 = vld [vmem:[%s6319_s4 + $0x30] sm:$0xff]  ;;  %v104_v22 = vld [vmem:[%s6319_s4 + $0x38] sm:$0xff]  ;;  %v215_v26 = vld [vmem:[%s6320_s5 + $0x8] sm:$0xff]  ;;  %v52_v32 = vand.u32 127, %v51_v29  ;;  %v5314_v59 = vshrl.u32 %v51_v29, 7 }
   0x8   :  { %4470 = vmatpush3.bf16.msra.mxu0 %v4467_v12  ;;  %v42_v23 = vld [vmem:[%s6315_s0 + $0x18] sm:$0xff]  ;;  %v4479_v24 = vpack.c.bf16 %v104_v22, %v103_v21  ;;  %v105_v27 = vld [vmem:[%s6319_s4 + $0x40] sm:$0xff]  ;;  %v4483_v28 = vpack.c.bf16 %v215_v26, %v214_v25  ;;  %v216_v44 = vld [vmem:[%s6320_s5 + $0x10] sm:$0xff]  ;;  %s5144_s28 = smov 88   ;;  %s5145_s29 = smov 120  }
   0x9   :  { %4472 = vmatprep.subr.bf16.mxu0 %v4471_v13  ;;  %v217_v45 = vld [vmem:[%s6320_s5 + $0x18] sm:$0xff]  ;;  %v106_v47 = vld [vmem:[%s6318_s3] sm:$0xff]  ;;  %v107_v48 = vld [vmem:[%s6318_s3 + $0x8] sm:$0xff]  ;;  %v5317_v60 = vsub.s32 0, %v5314_v59  ;;  %s5146_s1 = smov 64   ;;  %s5147_s17 = smov 56  }
   0xa   :  { %76 = vperm.xlu1 %4774, %v49_v14   ;;  %60 = vperm.xlu0 %4773, %v41_v17   ;;  %v4487_v46 = vpack.c.bf16 %v217_v45, %v216_v44  ;;  %v108_v53 = vld [vmem:[%s6318_s3 + $0x10] sm:$0xff]  ;;  %v109_v54 = vld [vmem:[%s6318_s3 + $0x18] sm:$0xff]  ;;  %v213_v61 = vld [vmem:[%s6324_s9] sm:$0x3]  ;;  %s5143_s3 = smov 96   ;;  %s5148_s18 = smov 80  }
   0xb   :  { %4484 = vmatprep.subr.bf16.mxu1 %v4483_v28  ;;  %v221_v62 = vrot.slane %v213_v61, %v5317_v60  ;;  %vm5361_vm15 = vmpackc.low %vm332_vm14, %vm332_vm14  ;;  %s5149_s19 = smov 112   ;;  %s5150_s20 = smov 48  }
   0xc   :  { %4474 = vmatpush3.bf16.msra.mxu0 %v4471_v13  ;;  %4486 = vmatpush3.bf16.msra.mxu1 %v4483_v28  ;;  %s5151_s21 = smov 72   ;;  %s5152_s22 = smov 104  }
   0xd   :  { %4476 = vmatprep.subr.bf16.mxu0 %v4475_v19  ;;  %4488 = vmatprep.subr.bf16.mxu1 %v4487_v46  ;;  %s5153_s23 = smov 40   ;;  %s5154_s24 = smov 8  }
   0xe   :  { %79 = vperm.xlu1 %4774, %v50_v20   ;;  %63 = vperm.xlu0 %4773, %v42_v23   ;;  %s5155_s25 = smov 16   ;;  %s6327_s4 = smov 24  }
  0x10   :  { %4478 = vmatpush3.bf16.msra.mxu0 %v4475_v19  ;;  %4490 = vmatpush3.bf16.msra.mxu1 %v4487_v46 }
  0x11   :  { %4480 = vmatprep.subr.bf16.mxu0 %v4479_v24 }
  0x14   :  { %4482 = vmatpush3.bf16.msra.mxu0 %v4479_v24 }
  0x15   :  { %4075 = vmatprep.subr.mxu0 %v105_v27 }
  0x18   :  { %4076 = vmatpush3.msra.mxu0 %v105_v27 }
  0x81   :  { %v58_v30 = vpop.permute.xlu1 %57  ;;  %v55_v31 = vpop.permute.xlu0 %54 }
  0x82   :  { %vm66_vm0 = vcmp.eq.s32.totalorder %v52_v32, %v58_v30  ;;  %vm65_vm3 = vcmp.eq.s32.totalorder %v52_v32, %v55_v31 }
  0x85   :  { %v74_v33 = vpop.permute.xlu1 %73  ;;  %v71_v34 = vpop.permute.xlu0 %70 }
  0x86   :  { %vm82_vm1 = vcmp.eq.s32.totalorder %v52_v32, %v74_v33  ;;  %vm81_vm2 = vcmp.eq.s32.totalorder %v52_v32, %v71_v34  ;;  %v5394_v34 = vld [vmem:[%s6317_s2 + $0x8] sm:$0xff] }
  0x87   :  { %vm86_vm4 = vmor %vm66_vm0, %vm82_vm1  ;;  %vm1449_vm0 = vcmask 130048   ;;  %vm1454_vm1 = vcmask 195584  }
  0x88   :  { %vm85_vm6 = vmor %vm65_vm3, %vm81_vm2  ;;  %v3673_v36 = vsel %vm86_vm4, 1.0, %v5142_v35 }
  0x89   :  { %v77_v37 = vpop.permute.xlu1 %76  ;;  %v3672_v38 = vsel %vm85_vm6, 1.0, %v5142_v35  ;;  %v61_v39 = vpop.permute.xlu0 %60 }
  0x8a   :  { %vm83_vm7 = vcmp.eq.s32.totalorder %v52_v32, %v77_v37  ;;  %4077 = vmatprep.mubr.msk.f32.mxu0 %vm110_vm5, %v3672_v38  ;;  %vm67_vm8 = vcmp.eq.s32.totalorder %v52_v32, %v61_v39  ;;  %v5401_v39 = vld [vmem:[%s6317_s2] sm:$0xff] }
  0x8b   :  { %vm87_vm9 = vmor %vm67_vm8, %vm83_vm7  ;;  %4078 = vmatmul.mubr.msk.f32.vlgmr.msra.gmra.mrb[0].mxu0 %vm110_vm5, %v3673_v36 }
  0x8c   :  { %v3674_v40 = vsel %vm87_vm9, 1.0, %v5142_v35 }
  0x8d   :  { %v80_v41 = vpop.permute.xlu1 %79  ;;  %4080 = vmatprep.mubr.msk.f32.mxu0 %vm110_vm5, %v3674_v40  ;;  %v64_v42 = vpop.permute.xlu0 %63 }
  0x8e   :  { %vm84_vm10 = vcmp.eq.s32.totalorder %v52_v32, %v80_v41  ;;  %vm68_vm11 = vcmp.eq.s32.totalorder %v52_v32, %v64_v42 }
  0x8f   :  { %vm88_vm12 = vmor %vm68_vm11, %vm84_vm10 }
  0x90   :  { %v3675_v43 = vsel %vm88_vm12, 1.0, %v5142_v35 }
  0x91   :  { %4081 = vmatmul.mubr.msk.f32.gmra.mrb[2].mxu0 %vm110_vm5, %v3675_v43 }
 0x15e   :  { %v4079_v49 = vpop.f32.mrb[0].mxu0 }
 0x15f   :  { %v189_v50 = vpop.f32.mrb[1].mxu0  ;;  %v5294_v52 = vadd.f32 %v4079_v49, %v107_v48  ;;  %v5410_v48 = vld [vmem:[%s6317_s2 + $0x18] sm:$0xff] }
 0x160   :  { %v5292_v51 = vadd.f32 %v189_v50, %v106_v47 }
 0x162   :  { %4091 = vmatprep.mubr.msk.f32.mxu1 %vm222_vm13, %v5292_v51 }
 0x163   :  { %4092 = vmatmul.mubr.msk.f32.vlgmr.msra.gmra.mrb[0].mxu1 %vm222_vm13, %v5294_v52 }
 0x164   :  { %v4082_v55 = vpop.f32.mrb[2].mxu0 }
 0x165   :  { %v199_v56 = vpop.f32.mrb[3].mxu0  ;;  %v5308_v58 = vadd.f32 %v4082_v55, %v109_v54 }
 0x166   :  { %v5306_v57 = vadd.f32 %v199_v56, %v108_v53 }
 0x168   :  { %4094 = vmatprep.mubr.msk.f32.mxu1 %vm222_vm13, %v5306_v57 }
 0x169   :  { %4095 = vmatmul.mubr.msk.f32.gmra.mrb[2].mxu1 %vm222_vm13, %v5308_v58 }
 0x236   :  { %v4093_v63 = vpop.f32.mrb[0].mxu1 }
 0x237   :  { %v5323_v0 = vadd.f32 %v4093_v63, %v221_v62  ;;  %v301_v1 = vpop.f32.mrb[1].mxu1 }
 0x238   :  { %v5325_v2 = vadd.f32 %v301_v1, %v221_v62 }
 0x23a   :  { %4105 = vmatprep.mubr.msk.f32.mxu0 %vm332_vm14, %v5325_v2  ;;  %v5331_v3 = vpack.i.bf16 %v5323_v0, %v5325_v2 }
 0x23c   :  { %4776 = vrot.lane.b32.xlu0 %v5331_v3, %s5143_s3  ;;  %v4096_v4 = vpop.f32.mrb[2].mxu1 }
 0x23d   :  { %v5335_v5 = vadd.f32 %v4096_v4, %v221_v62  ;;  %v311_v6 = vpop.f32.mrb[3].mxu1 }
 0x23e   :  { %v5337_v7 = vadd.f32 %v311_v6, %v221_v62  ;;  %v5422_v62 = vld [vmem:[%s6317_s2 + $0x10] sm:$0xff] }
 0x240   :  { %4786 = vrot.lane.b32.xlu0 %v5331_v3, %s5144_s28  ;;  %v5343_v8 = vpack.i.bf16 %v5335_v5, %v5337_v7 }
 0x242   :  { %4781 = vrot.lane.b32.xlu1 %v5343_v8, %s5143_s3 }
 0x244   :  { %587 = vrot.lane.b32.xlu0 %v5325_v2, %s5145_s29 }
 0x246   :  { %4791 = vrot.lane.b32.xlu1 %v5343_v8, %s5144_s28 }
 0x248   :  { %591 = vrot.lane.b32.xlu0 %v5337_v7, %s5145_s29 }
 0x24a   :  { %589 = vrot.lane.b32.xlu1 %v5323_v0, %s5145_s29 }
 0x24e   :  { %593 = vrot.lane.b32.xlu1 %v5335_v5, %s5145_s29 }
 0x252   :  { %4796 = vrot.lane.b32.xlu1 %v5331_v3, %s5146_s1 }
 0x2ae   :  { %v4777_v9 = vpop.permute.xlu0 %4776 }
 0x2af   :  { %v4779_v10 = vunpack.i.h.bf16 %v4777_v9  ;;  %v4778_v11 = vunpack.i.l.bf16 %v4777_v9 }
 0x2b1   :  { %v4491_v13 = vpack.c.bf16 %v4779_v10, %v4778_v11 }
 0x2b2   :  { %v4787_v14 = vpop.permute.xlu0 %4786 }
 0x2b3   :  { %v4789_v15 = vunpack.i.h.bf16 %v4787_v14  ;;  %v4788_v16 = vunpack.i.l.bf16 %v4787_v14  ;;  %4493 = vmatprep.subr.msk.bf16.mxu0 %vm5361_vm15, %v4491_v13 }
 0x2b4   :  { %4496 = vmatpush3.bf16.xpose.msk.msra.mxu0 %vm5361_vm15, %v4491_v13  ;;  %v4782_v17 = vpop.permute.xlu1 %4781 }
 0x2b5   :  { %v4511_v18 = vpack.c.bf16 %v4789_v15, %v4788_v16  ;;  %v4784_v19 = vunpack.i.h.bf16 %v4782_v17  ;;  %v4783_v20 = vunpack.i.l.bf16 %v4782_v17 }
 0x2b6   :  { %v588_v21 = vpop.permute.xlu0 %587 }
 0x2b7   :  { %v4497_v22 = vpack.c.bf16 %v4784_v19, %v4783_v20  ;;  %4513 = vmatprep.subr.msk.bf16.mxu1 %vm5361_vm15, %v4511_v18  ;;  %4133 = vmatprep.mubr.msk.f32.mxu1 %vm332_vm14, %v588_v21 }
 0x2b8   :  { %4516 = vmatpush3.bf16.xpose.msk.msra.mxu1 %vm5361_vm15, %v4511_v18  ;;  %v4792_v23 = vpop.permute.xlu1 %4791 }
 0x2b9   :  { %v4794_v24 = vunpack.i.h.bf16 %v4792_v23  ;;  %v4793_v25 = vunpack.i.l.bf16 %v4792_v23  ;;  %4499 = vmatprep.subr.msk.bf16.mxu0 %vm5361_vm15, %v4497_v22 }
 0x2ba   :  { %v592_v32 = vpop.permute.xlu0 %591 }
 0x2bb   :  { %v4517_v26 = vpack.c.bf16 %v4794_v24, %v4793_v25 }
 0x2bc   :  { %4502 = vmatpush3.bf16.xpose.msk.msra.mxu0 %vm5361_vm15, %v4497_v22  ;;  %v590_v27 = vpop.permute.xlu1 %589 }
 0x2bd   :  { %4519 = vmatprep.subr.msk.bf16.mxu1 %vm5361_vm15, %v4517_v26 }
 0x2c0   :  { %4522 = vmatpush3.bf16.xpose.msk.msra.mxu1 %vm5361_vm15, %v4517_v26  ;;  %v594_v28 = vpop.permute.xlu1 %593 }
 0x2c3   :  { %4106 = vmatmul.mubr.msk.f32.vlgmr.msra.gmra.mrb[4].mxu0 %vm332_vm14, %v5323_v0 }
 0x2c4   :  { %4108 = vmatprep.mubr.msk.f32.mxu0 %vm332_vm14, %v5337_v7  ;;  %v4797_v29 = vpop.permute.xlu1 %4796 }
 0x2c5   :  { %v4799_v30 = vunpack.i.h.bf16 %v4797_v29  ;;  %v4798_v31 = vunpack.i.l.bf16 %v4797_v29 }
 0x2c7   :  { %4109 = vmatmul.mubr.msk.f32.gmra.mrb[6].mxu0 %vm332_vm14, %v5335_v5  ;;  %4134 = vmatmul.mubr.msk.f32.vlgmr.msra.gmra.mrb[4].mxu1 %vm332_vm14, %v590_v27  ;;  %v4503_v33 = vpack.c.bf16 %v4799_v30, %v4798_v31 }
 0x2c8   :  { %4136 = vmatprep.mubr.msk.f32.mxu1 %vm332_vm14, %v592_v32 }
 0x2c9   :  { %4504 = vmatprep.subr.bf16.mxu0 %v4503_v33 }
 0x2ca   :  { %4506 = vmatpush3.bf16.msra.mxu0 %v4503_v33 }
 0x2cb   :  { %4137 = vmatmul.mubr.msk.f32.gmra.mrb[6].mxu1 %vm332_vm14, %v594_v28 }
 0x396   :  { %v4107_v35 = vpop.f32.mrb[4].mxu0 }
 0x397   :  { %v421_v36 = vadd.f32 %v4107_v35, %v5394_v34  ;;  %v415_v37 = vpop.f32.mrb[5].mxu0 }
 0x398   :  { %v416_v46 = vadd.f32 %v415_v37, %v5401_v39 }
 0x399   :  { %v437_v38 = vsel %vm222_vm13, %v421_v36, -inf }
 0x39a   :  { %v4135_v40 = vpop.f32.mrb[4].mxu1  ;;  %438 = vmax.xlane.f32.xlu1 %v437_v38  ;;  %v4110_v41 = vpop.f32.mrb[6].mxu0  ;;  %v434_v55 = vsel %vm222_vm13, %v416_v46, -inf }
 0x39b   :  { %v691_v42 = vadd.f32 %v4135_v40, %v5394_v34  ;;  %v425_v43 = vpop.f32.mrb[7].mxu0  ;;  %v685_v44 = vpop.f32.mrb[5].mxu1  ;;  %v431_v54 = vadd.f32 %v4110_v41, %v5410_v48 }
 0x39c   :  { %v686_v45 = vadd.f32 %v685_v44, %v5401_v39  ;;  %v5425_v63 = vadd.f32 %v425_v43, %v5422_v62 }
 0x39d   :  { %v707_v47 = vsel %vm222_vm13, %v691_v42, -inf  ;;  %v443_v61 = vsel %vm222_vm13, %v431_v54, -inf }
 0x39e   :  { %708 = vmax.xlane.f32.xlu0 %v707_v47  ;;  %v4138_v49 = vpop.f32.mrb[6].mxu1  ;;  %v704_v50 = vsel %vm222_vm13, %v686_v45, -inf  ;;  %v440_v4 = vsel %vm222_vm13, %v5425_v63, -inf }
 0x39f   :  { %v695_v53 = vpop.f32.mrb[7].mxu1  ;;  %705 = vmax.xlane.f32.xlu1 %v704_v50  ;;  %v5416_v56 = vadd.f32 %v4138_v49, %v5410_v48 }
 0x3a0   :  { %v5436_v6 = vadd.f32 %v695_v53, %v5422_v62 }
 0x3a1   :  { %v713_v1 = vsel %vm222_vm13, %v5416_v56, -inf }
 0x3a2   :  { %435 = vmax.xlane.f32.xlu0 %v434_v55  ;;  %v710_v9 = vsel %vm222_vm13, %v5436_v6, -inf }
 0x3a6   :  { %444 = vmax.xlane.f32.xlu0 %v443_v61 }
 0x3aa   :  { %714 = vmax.xlane.f32.xlu0 %v713_v1 }
 0x3ae   :  { %441 = vmax.xlane.f32.xlu0 %v440_v4 }
 0x3b0   :  { %4806 = vrot.lane.b32.xlu1 %v5331_v3, %s5147_s17 }
 0x3c4   :  { %4801 = vrot.lane.b32.xlu0 %v5343_v8, %s5146_s1 }
 0x3d4   :  { %711 = vmax.xlane.f32.xlu1 %v710_v9 }
 0x427   :  { %v439_v10 = vpop.xlane.xlu1 %438 }
 0x428   :  { %v447_v11 = vsub.f32 %v421_v36, %v439_v10 }
 0x42a   :  { %v452_v13 = vmul.f32 1.442695, %v447_v11 }
 0x42b   :  { %v709_v14 = vpop.xlane.xlu0 %708 }
 0x42c   :  { %4935 = vpow2.f32 %v452_v13  ;;  %v717_v15 = vsub.f32 %v691_v42, %v709_v14  ;;  %v706_v16 = vpop.xlane.xlu1 %705 }
 0x42d   :  { %v716_v18 = vsub.f32 %v686_v45, %v706_v16 }
 0x42e   :  { %v722_v17 = vmul.f32 1.442695, %v717_v15 }
 0x42f   :  { %v436_v19 = vpop.xlane.xlu0 %435  ;;  %v720_v21 = vmul.f32 1.442695, %v716_v18 }
 0x430   :  { %4937 = vpow2.f32 %v722_v17  ;;  %v446_v20 = vsub.f32 %v416_v46, %v436_v19  ;;  %v4807_v33 = vpop.permute.xlu1 %4806 }
 0x431   :  { %v4809_v41 = vunpack.i.h.bf16 %v4807_v33  ;;  %v4808_v42 = vunpack.i.l.bf16 %v4807_v33 }
 0x432   :  { %v450_v22 = vmul.f32 1.442695, %v446_v20 }
 0x433   :  { %v445_v23 = vpop.xlane.xlu0 %444  ;;  %v4523_v47 = vpack.c.bf16 %v4809_v41, %v4808_v42 }
 0x434   :  { %4939 = vpow2.f32 %v450_v22  ;;  %v449_v24 = vsub.f32 %v431_v54, %v445_v23 }
 0x435   :  { %4941 = vpow2.f32 %v720_v21 }
 0x436   :  { %v5440_v25 = vpop.eup %4935  ;;  %v456_v26 = vmul.f32 1.442695, %v449_v24 }
 0x437   :  { %v715_v27 = vpop.xlane.xlu0 %714  ;;  %v461_v28 = vsel %vm222_vm13, %v5440_v25, 0.0 }
 0x438   :  { %4943 = vpow2.f32 %v456_v26  ;;  %462 = vadd.xlane.f32.xlu0 %v461_v28  ;;  %v719_v49 = vsub.f32 %v5416_v56, %v715_v27 }
 0x43a   :  { %v5444_v29 = vpop.eup %4937  ;;  %v726_v53 = vmul.f32 1.442695, %v719_v49 }
 0x43b   :  { %v442_v30 = vpop.xlane.xlu0 %441  ;;  %v731_v31 = vsel %vm222_vm13, %v5444_v29, 0.0 }
 0x43c   :  { %732 = vadd.xlane.f32.xlu0 %v731_v31  ;;  %v448_v50 = vsub.f32 %v5425_v63, %v442_v30  ;;  %4945 = vpow2.f32 %v726_v53 }
 0x43e   :  { %v4940_v32 = vpop.eup %4939  ;;  %v454_v54 = vmul.f32 1.442695, %v448_v50 }
 0x43f   :  { %v4802_v35 = vpop.permute.xlu0 %4801  ;;  %v458_v36 = vsel %vm222_vm13, %v4940_v32, 0.0  ;;  %v5449_v37 = vpop.eup %4941 }
 0x440   :  { %v4804_v38 = vunpack.i.h.bf16 %v4802_v35  ;;  %v4803_v40 = vunpack.i.l.bf16 %v4802_v35  ;;  %459 = vadd.xlane.f32.xlu1 %v458_v36  ;;  %v728_v45 = vsel %vm222_vm13, %v5449_v37, 0.0  ;;  %4947 = vpow2.f32 %v454_v54 }
 0x442   :  { %v5451_v43 = vpop.eup %4943  ;;  %v4507_v44 = vpack.c.bf16 %v4804_v38, %v4803_v40 }
 0x443   :  { %v467_v46 = vsel %vm222_vm13, %v5451_v43, 0.0 }
 0x444   :  { %729 = vadd.xlane.f32.xlu1 %v728_v45  ;;  %468 = vadd.xlane.f32.xlu0 %v467_v46 }
 0x445   :  { %4508 = vmatprep.subr.bf16.mxu0 %v4507_v44 }
 0x446   :  { %4510 = vmatpush3.bf16.msra.mxu0 %v4507_v44  ;;  %v5463_v55 = vpop.eup %4945 }
 0x447   :  { %4524 = vmatprep.subr.bf16.mxu0 %v4523_v47  ;;  %v737_v1 = vsel %vm222_vm13, %v5463_v55, 0.0 }
 0x44a   :  { %v4948_v61 = vpop.eup %4947 }
 0x44b   :  { %v464_v4 = vsel %vm222_vm13, %v4948_v61, 0.0 }
 0x455   :  { %4816 = vrot.lane.b32.xlu1 %v5331_v3, %s5148_s18 }
 0x45a   :  { %4811 = vrot.lane.b32.xlu0 %v5343_v8, %s5147_s17 }
 0x461   :  { %v712_v56 = vpop.xlane.xlu1 %711 }
 0x462   :  { %v718_v63 = vsub.f32 %v5436_v6, %v712_v56 }
 0x464   :  { %v724_v9 = vmul.f32 1.442695, %v718_v63 }
 0x466   :  { %4949 = vpow2.f32 %v724_v9 }
 0x470   :  { %v4950_v10 = vpop.eup %4949 }
 0x471   :  { %v734_v11 = vsel %vm222_vm13, %v4950_v10, 0.0 }
 0x479   :  { %738 = vadd.xlane.f32.xlu0 %v737_v1  ;;  %465 = vadd.xlane.f32.xlu1 %v464_v4 }
 0x48a   :  { %4821 = vrot.lane.b32.xlu1 %v5343_v8, %s5148_s18 }
 0x48f   :  { %857 = vrot.lane.b32.xlu0 %v5325_v2, %s5149_s19 }
 0x493   :  { %861 = vrot.lane.b32.xlu0 %v5337_v7, %s5149_s19 }
 0x4ae   :  { %735 = vadd.xlane.f32.xlu1 %v734_v11 }
 0x4bf   :  { %859 = vrot.lane.b32.xlu1 %v5323_v0, %s5149_s19 }
 0x4c3   :  { %863 = vrot.lane.b32.xlu1 %v5335_v5, %s5149_s19 }
 0x4c5   :  { %v463_v13 = vpop.xlane.xlu0 %462 }
 0x4c6   :  { %4951 = vrcp.f32 %v463_v13 }
 0x4c9   :  { %v733_v14 = vpop.xlane.xlu0 %732 }
 0x4cd   :  { %v460_v15 = vpop.xlane.xlu1 %459 }
 0x4ce   :  { %4953 = vrcp.f32 %v460_v15 }
 0x4d0   :  { %v4952_v18 = vpop.eup %4951 }
 0x4d1   :  { %v469_v16 = vpop.xlane.xlu0 %468  ;;  %v730_v17 = vpop.xlane.xlu1 %729  ;;  %v475_v24 = vmul.f32 %v4952_v18, %v5440_v25 }
 0x4d2   :  { %4955 = vrcp.f32 %v730_v17 }
 0x4d3   :  { %4957 = vrcp.f32 %v469_v16 }
 0x4d5   :  { %v4812_v6 = vpop.permute.xlu0 %4811  ;;  %v4817_v22 = vpop.permute.xlu1 %4816 }
 0x4d6   :  { %v4814_v20 = vunpack.i.h.bf16 %v4812_v6  ;;  %v4813_v21 = vunpack.i.l.bf16 %v4812_v6  ;;  %v4819_v26 = vunpack.i.h.bf16 %v4817_v22  ;;  %v4818_v27 = vunpack.i.l.bf16 %v4817_v22 }
 0x4d8   :  { %v4954_v19 = vpop.eup %4953  ;;  %v4527_v28 = vpack.c.bf16 %v4814_v20, %v4813_v21  ;;  %v4531_v30 = vpack.c.bf16 %v4819_v26, %v4818_v27 }
 0x4d9   :  { %v474_v23 = vmul.f32 %v4954_v19, %v4940_v32 }
 0x4db   :  { %4119 = vmatprep.mubr.msk.f32.mxu0 %vm222_vm13, %v474_v23 }
 0x4dc   :  { %4120 = vmatmul.mubr.msk.f32.vlgmr.msra.gmra.mrb[8].mxu0 %vm222_vm13, %v475_v24  ;;  %v4956_v25 = vpop.eup %4955 }
 0x4dd   :  { %4526 = vmatpush3.bf16.msra.mxu0 %v4523_v47  ;;  %v4958_v32 = vpop.eup %4957  ;;  %v744_v41 = vmul.f32 %v4956_v25, %v5449_v37 }
 0x4de   :  { %4528 = vmatprep.subr.bf16.mxu0 %v4527_v28  ;;  %v477_v38 = vmul.f32 %v4958_v32, %v5451_v43 }
 0x4e1   :  { %4530 = vmatpush3.bf16.msra.mxu0 %v4527_v28 }
 0x4e2   :  { %4533 = vmatprep.subr.msk.bf16.mxu0 %vm5361_vm15, %v4531_v30 }
 0x506   :  { %v466_v31 = vpop.xlane.xlu1 %465  ;;  %v739_v37 = vpop.xlane.xlu0 %738 }
 0x507   :  { %4959 = vrcp.f32 %v466_v31 }
 0x508   :  { %4961 = vrcp.f32 %v733_v14 }
 0x509   :  { %4963 = vrcp.f32 %v739_v37 }
 0x50a   :  { %v4822_v35 = vpop.permute.xlu1 %4821 }
 0x50b   :  { %v4824_v42 = vunpack.i.h.bf16 %v4822_v35  ;;  %v4823_v44 = vunpack.i.l.bf16 %v4822_v35 }
 0x50d   :  { %v4537_v46 = vpack.c.bf16 %v4824_v42, %v4823_v44 }
 0x511   :  { %v4960_v33 = vpop.eup %4959 }
 0x512   :  { %v476_v36 = vmul.f32 %v4960_v33, %v4948_v61  ;;  %v4962_v40 = vpop.eup %4961 }
 0x513   :  { %v745_v45 = vmul.f32 %v4962_v40, %v5444_v29  ;;  %v4964_v47 = vpop.eup %4963  ;;  %v858_v29 = vpop.permute.xlu0 %857 }
 0x514   :  { %4122 = vmatprep.mubr.msk.f32.mxu0 %vm222_vm13, %v476_v36  ;;  %v747_v53 = vmul.f32 %v4964_v47, %v5463_v55 }
 0x515   :  { %4123 = vmatmul.mubr.msk.f32.gmra.mrb[10].mxu0 %vm222_vm13, %v477_v38 }
 0x516   :  { %4147 = vmatprep.mubr.msk.f32.mxu0 %vm222_vm13, %v744_v41 }
 0x517   :  { %v862_v61 = vpop.permute.xlu0 %861 }
 0x519   :  { %4148 = vmatmul.mubr.msk.f32.vlgmr.msra.gmra.mrb[12].mxu0 %vm222_vm13, %v745_v45 }
 0x51a   :  { %4536 = vmatpush3.bf16.xpose.msk.msra.mxu0 %vm5361_vm15, %v4531_v30 }
 0x51b   :  { %4539 = vmatprep.subr.msk.bf16.mxu0 %vm5361_vm15, %v4537_v46 }
 0x522   :  { %4542 = vmatpush3.bf16.xpose.msk.msra.mxu0 %vm5361_vm15, %v4537_v46 }
 0x53b   :  { %v736_v43 = vpop.xlane.xlu1 %735 }
 0x53c   :  { %4965 = vrcp.f32 %v736_v43 }
 0x53f   :  { %v860_v54 = vpop.permute.xlu1 %859 }
 0x543   :  { %v864_v1 = vpop.permute.xlu1 %863 }
 0x546   :  { %v4966_v49 = vpop.eup %4965 }
 0x547   :  { %v746_v50 = vmul.f32 %v4966_v49, %v4950_v10 }
 0x549   :  { %4150 = vmatprep.mubr.msk.f32.mxu0 %vm222_vm13, %v746_v50 }
 0x54a   :  { %4151 = vmatmul.mubr.msk.f32.gmra.mrb[14].mxu0 %vm222_vm13, %v747_v53 }
 0x54b   :  { %4161 = vmatprep.mubr.msk.f32.mxu0 %vm332_vm14, %v858_v29 }
 0x54e   :  { %4162 = vmatmul.mubr.msk.f32.vlgmr.msra.gmra.mrb[16].mxu0 %vm332_vm14, %v860_v54 }
 0x54f   :  { %4164 = vmatprep.mubr.msk.f32.mxu0 %vm332_vm14, %v862_v61 }
 0x552   :  { %4165 = vmatmul.mubr.msk.f32.gmra.mrb[18].mxu0 %vm332_vm14, %v864_v1 }
 0x5af   :  { %v5505_v4 = vpop.f32.mrb[8].mxu0 }
 0x5b0   :  { %v5507_v56 = vpop.f32.mrb[9].mxu0 }
 0x5e8   :  { %v5509_v55 = vpop.f32.mrb[10].mxu0 }
 0x5e9   :  { %v5511_v63 = vpop.f32.mrb[11].mxu0 }
 0x5ec   :  { %v5513_v9 = vpop.f32.mrb[12].mxu0 }
 0x5ed   :  { %v5515_v10 = vpop.f32.mrb[13].mxu0 }
 0x61d   :  { %v5517_v11 = vpop.f32.mrb[14].mxu0 }
 0x61e   :  { %v5519_v13 = vpop.f32.mrb[15].mxu0 }
 0x621   :  { %v4163_v14 = vpop.f32.mrb[16].mxu0 }
 0x622   :  { %v961_v15 = vadd.f32 %v4163_v14, %v5394_v34  ;;  %v955_v16 = vpop.f32.mrb[17].mxu0 }
 0x623   :  { %v956_v17 = vadd.f32 %v955_v16, %v5401_v39 }
 0x624   :  { %v977_v6 = vsel %vm222_vm13, %v961_v15, -inf }
 0x625   :  { %978 = vmax.xlane.f32.xlu1 %v977_v6  ;;  %v4166_v18 = vpop.f32.mrb[18].mxu0  ;;  %v974_v19 = vsel %vm222_vm13, %v956_v17, -inf }
 0x626   :  { %v965_v20 = vpop.f32.mrb[19].mxu0  ;;  %975 = vmax.xlane.f32.xlu0 %v974_v19  ;;  %v971_v22 = vadd.f32 %v4166_v18, %v5410_v48 }
 0x627   :  { %v966_v21 = vadd.f32 %v965_v20, %v5422_v62 }
 0x628   :  { %v983_v24 = vsel %vm222_vm13, %v971_v22, -inf }
 0x629   :  { %v980_v23 = vsel %vm222_vm13, %v966_v21, -inf }
 0x62a   :  { %981 = vmax.xlane.f32.xlu0 %v980_v23 }
 0x62e   :  { %984 = vmax.xlane.f32.xlu0 %v983_v24 }
 0x636   :  { %4826 = vrot.lane.b32.xlu1 %v5331_v3, %s5150_s20 }
 0x63a   :  { %4836 = vrot.lane.b32.xlu1 %v5331_v3, %s5151_s21 }
 0x6b2   :  { %v979_v26 = vpop.xlane.xlu1 %978 }
 0x6b3   :  { %v987_v27 = vsub.f32 %v961_v15, %v979_v26  ;;  %v976_v28 = vpop.xlane.xlu0 %975 }
 0x6b4   :  { %v986_v30 = vsub.f32 %v956_v17, %v976_v28 }
 0x6b5   :  { %v992_v31 = vmul.f32 1.442695, %v987_v27 }
 0x6b6   :  { %v990_v25 = vmul.f32 1.442695, %v986_v30  ;;  %v4827_v32 = vpop.permute.xlu1 %4826 }
 0x6b7   :  { %4967 = vpow2.f32 %v992_v31  ;;  %v4829_v33 = vunpack.i.h.bf16 %v4827_v32  ;;  %v4828_v35 = vunpack.i.l.bf16 %v4827_v32  ;;  %v982_v44 = vpop.xlane.xlu0 %981 }
 0x6b8   :  { %4969 = vpow2.f32 %v990_v25  ;;  %v988_v37 = vsub.f32 %v966_v21, %v982_v44 }
 0x6b9   :  { %v4543_v36 = vpack.c.bf16 %v4829_v33, %v4828_v35 }
 0x6ba   :  { %v994_v47 = vmul.f32 1.442695, %v988_v37  ;;  %v4837_v54 = vpop.permute.xlu1 %4836 }
 0x6bb   :  { %4544 = vmatprep.subr.bf16.mxu1 %v4543_v36  ;;  %v985_v45 = vpop.xlane.xlu0 %984  ;;  %v4839_v15 = vunpack.i.h.bf16 %v4837_v54  ;;  %v4838_v16 = vunpack.i.l.bf16 %v4837_v54 }
 0x6bc   :  { %4546 = vmatpush3.bf16.msra.mxu1 %v4543_v36  ;;  %v989_v46 = vsub.f32 %v971_v22, %v985_v45 }
 0x6bd   :  { %v4551_v18 = vpack.c.bf16 %v4839_v15, %v4838_v16 }
 0x6be   :  { %v996_v43 = vmul.f32 1.442695, %v989_v46 }
 0x6c0   :  { %4971 = vpow2.f32 %v996_v43 }
 0x6c1   :  { %v4968_v38 = vpop.eup %4967  ;;  %4973 = vpow2.f32 %v994_v47 }
 0x6c2   :  { %v4970_v40 = vpop.eup %4969  ;;  %v1001_v41 = vsel %vm222_vm13, %v4968_v38, 0.0 }
 0x6c3   :  { %1002 = vadd.xlane.f32.xlu0 %v1001_v41  ;;  %v998_v42 = vsel %vm222_vm13, %v4970_v40, 0.0 }
 0x6c4   :  { %999 = vadd.xlane.f32.xlu1 %v998_v42 }
 0x6ca   :  { %v4972_v49 = vpop.eup %4971 }
 0x6cb   :  { %v4974_v50 = vpop.eup %4973  ;;  %v1007_v29 = vsel %vm222_vm13, %v4972_v49, 0.0 }
 0x6cc   :  { %v1004_v53 = vsel %vm222_vm13, %v4974_v50, 0.0 }
 0x6d5   :  { %4841 = vrot.lane.b32.xlu1 %v5343_v8, %s5151_s21 }
 0x6d9   :  { %4831 = vrot.lane.b32.xlu0 %v5343_v8, %s5150_s20 }
 0x6f8   :  { %1008 = vadd.xlane.f32.xlu0 %v1007_v29 }
 0x6f9   :  { %1005 = vadd.xlane.f32.xlu1 %v1004_v53 }
 0x70a   :  { %1129 = vrot.lane.b32.xlu1 %v5323_v0, %s5152_s22 }
 0x70e   :  { %1133 = vrot.lane.b32.xlu1 %v5335_v5, %s5152_s22  ;;  %1127 = vrot.lane.b32.xlu0 %v5325_v2, %s5152_s22 }
 0x712   :  { %1131 = vrot.lane.b32.xlu0 %v5337_v7, %s5152_s22 }
 0x750   :  { %v1003_v61 = vpop.xlane.xlu0 %1002 }
 0x751   :  { %4975 = vrcp.f32 %v1003_v61  ;;  %v1000_v1 = vpop.xlane.xlu1 %999 }
 0x752   :  { %4977 = vrcp.f32 %v1000_v1 }
 0x754   :  { %v4832_v14 = vpop.permute.xlu0 %4831 }
 0x755   :  { %v4834_v17 = vunpack.i.h.bf16 %v4832_v14  ;;  %v4833_v6 = vunpack.i.l.bf16 %v4832_v14  ;;  %v4842_v19 = vpop.permute.xlu1 %4841 }
 0x756   :  { %v4844_v21 = vunpack.i.h.bf16 %v4842_v19  ;;  %v4843_v22 = vunpack.i.l.bf16 %v4842_v19 }
 0x757   :  { %v4547_v0 = vpack.c.bf16 %v4834_v17, %v4833_v6 }
 0x758   :  { %v4557_v23 = vpack.c.bf16 %v4844_v21, %v4843_v22 }
 0x759   :  { %4548 = vmatprep.subr.bf16.mxu1 %v4547_v0 }
 0x75a   :  { %4550 = vmatpush3.bf16.msra.mxu1 %v4547_v0 }
 0x75b   :  { %v4976_v5 = vpop.eup %4975  ;;  %4553 = vmatprep.subr.msk.bf16.mxu1 %vm5361_vm15, %v4551_v18 }
 0x75c   :  { %v4978_v2 = vpop.eup %4977  ;;  %v1015_v20 = vmul.f32 %v4976_v5, %v4968_v38 }
 0x75d   :  { %v1014_v7 = vmul.f32 %v4978_v2, %v4970_v40 }
 0x75f   :  { %4175 = vmatprep.mubr.msk.f32.mxu1 %vm222_vm13, %v1014_v7 }
 0x760   :  { %4176 = vmatmul.mubr.msk.f32.vlgmr.msra.gmra.mrb[8].mxu1 %vm222_vm13, %v1015_v20 }
 0x763   :  { %4556 = vmatpush3.bf16.xpose.msk.msra.mxu1 %vm5361_vm15, %v4551_v18 }
 0x764   :  { %4559 = vmatprep.subr.msk.bf16.mxu1 %vm5361_vm15, %v4557_v23 }
 0x76b   :  { %4562 = vmatpush3.bf16.xpose.msk.msra.mxu1 %vm5361_vm15, %v4557_v23 }
 0x785   :  { %v1009_v24 = vpop.xlane.xlu0 %1008 }
 0x786   :  { %4979 = vrcp.f32 %v1009_v24  ;;  %v1006_v26 = vpop.xlane.xlu1 %1005 }
 0x787   :  { %4981 = vrcp.f32 %v1006_v26 }
 0x789   :  { %v1128_v31 = vpop.permute.xlu0 %1127 }
 0x78a   :  { %v1130_v32 = vpop.permute.xlu1 %1129 }
 0x78d   :  { %v1132_v33 = vpop.permute.xlu0 %1131 }
 0x78e   :  { %v1134_v35 = vpop.permute.xlu1 %1133 }
 0x790   :  { %v4980_v27 = vpop.eup %4979 }
 0x791   :  { %v4982_v28 = vpop.eup %4981  ;;  %v1017_v25 = vmul.f32 %v4980_v27, %v4972_v49 }
 0x792   :  { %v1016_v30 = vmul.f32 %v4982_v28, %v4974_v50 }
 0x794   :  { %4178 = vmatprep.mubr.msk.f32.mxu1 %vm222_vm13, %v1016_v30 }
 0x795   :  { %4179 = vmatmul.mubr.msk.f32.gmra.mrb[10].mxu1 %vm222_vm13, %v1017_v25 }
 0x796   :  { %4189 = vmatprep.mubr.msk.f32.mxu1 %vm332_vm14, %v1128_v31 }
 0x799   :  { %4190 = vmatmul.mubr.msk.f32.vlgmr.msra.gmra.mrb[12].mxu1 %vm332_vm14, %v1130_v32 }
 0x79a   :  { %4192 = vmatprep.mubr.msk.f32.mxu1 %vm332_vm14, %v1132_v33 }
 0x79d   :  { %4193 = vmatmul.mubr.msk.f32.gmra.mrb[14].mxu1 %vm332_vm14, %v1134_v35 }
 0x833   :  { %v4177_v36 = vpop.f32.mrb[8].mxu1 }
 0x834   :  { %v1108_v38 = vpop.f32.mrb[9].mxu1 }
 0x868   :  { %v5565_v40 = vpop.f32.mrb[10].mxu1 }
 0x869   :  { %v5567_v41 = vpop.f32.mrb[11].mxu1 }
 0x86c   :  { %v4191_v42 = vpop.f32.mrb[12].mxu1 }
 0x86d   :  { %v1231_v44 = vadd.f32 %v4191_v42, %v5394_v34  ;;  %v1225_v45 = vpop.f32.mrb[13].mxu1 }
 0x86e   :  { %v1226_v46 = vadd.f32 %v1225_v45, %v5401_v39  ;;  %v1460_v45 = vld [vmem:[%s6321_s6 + $0x8] sm:$0xff] }
 0x86f   :  { %v1247_v37 = vsel %vm222_vm13, %v1231_v44, -inf }
 0x870   :  { %1248 = vmax.xlane.f32.xlu1 %v1247_v37  ;;  %v4194_v43 = vpop.f32.mrb[14].mxu1  ;;  %v1244_v47 = vsel %vm222_vm13, %v1226_v46, -inf }
 0x871   :  { %v1235_v49 = vpop.f32.mrb[15].mxu1  ;;  %1245 = vmax.xlane.f32.xlu0 %v1244_v47  ;;  %v1241_v29 = vadd.f32 %v4194_v43, %v5410_v48  ;;  %v1462_v43 = vld [vmem:[%s6321_s6 + $0x18] sm:$0xff] }
 0x872   :  { %v1236_v50 = vadd.f32 %v1235_v49, %v5422_v62 }
 0x873   :  { %v1253_v34 = vsel %vm222_vm13, %v1241_v29, -inf }
 0x874   :  { %v1250_v53 = vsel %vm222_vm13, %v1236_v50, -inf }
 0x875   :  { %1251 = vmax.xlane.f32.xlu0 %v1250_v53 }
 0x879   :  { %1254 = vmax.xlane.f32.xlu0 %v1253_v34 }
 0x8fd   :  { %v1249_v54 = vpop.xlane.xlu1 %1248 }
 0x8fe   :  { %v1257_v39 = vsub.f32 %v1231_v44, %v1249_v54  ;;  %v1246_v61 = vpop.xlane.xlu0 %1245  ;;  %v1459_v44 = vld [vmem:[%s6321_s6] sm:$0xff] }
 0x8ff   :  { %v1256_v1 = vsub.f32 %v1226_v46, %v1246_v61  ;;  %v1461_v46 = vld [vmem:[%s6321_s6 + $0x10] sm:$0xff]  ;;  %v4571_v37 = vpack.c.bf16 %v1460_v45, %v1459_v44 }
 0x900   :  { %v1262_v14 = vmul.f32 1.442695, %v1257_v39  ;;  %v4575_v47 = vpack.c.bf16 %v1462_v43, %v1461_v46 }
 0x901   :  { %v1260_v15 = vmul.f32 1.442695, %v1256_v1 }
 0x902   :  { %4983 = vpow2.f32 %v1262_v14  ;;  %v1252_v16 = vpop.xlane.xlu0 %1251 }
 0x903   :  { %4985 = vpow2.f32 %v1260_v15  ;;  %v1258_v17 = vsub.f32 %v1236_v50, %v1252_v16 }
 0x905   :  { %v1264_v6 = vmul.f32 1.442695, %v1258_v17 }
 0x906   :  { %v1255_v62 = vpop.xlane.xlu0 %1254 }
 0x907   :  { %4987 = vpow2.f32 %v1264_v6  ;;  %v1259_v48 = vsub.f32 %v1241_v29, %v1255_v62 }
 0x909   :  { %v1266_v0 = vmul.f32 1.442695, %v1259_v48 }
 0x90b   :  { %4989 = vpow2.f32 %v1266_v0 }
 0x90c   :  { %v4984_v18 = vpop.eup %4983 }
 0x90d   :  { %v4986_v5 = vpop.eup %4985  ;;  %v1271_v19 = vsel %vm222_vm13, %v4984_v18, 0.0 }
 0x90e   :  { %1272 = vadd.xlane.f32.xlu0 %v1271_v19  ;;  %v1268_v2 = vsel %vm222_vm13, %v4986_v5, 0.0 }
 0x90f   :  { %1269 = vadd.xlane.f32.xlu1 %v1268_v2 }
 0x911   :  { %v4988_v7 = vpop.eup %4987 }
 0x912   :  { %v1274_v20 = vsel %vm222_vm13, %v4988_v7, 0.0 }
 0x913   :  { %1275 = vadd.xlane.f32.xlu1 %v1274_v20 }
 0x915   :  { %v4990_v21 = vpop.eup %4989 }
 0x916   :  { %v1277_v22 = vsel %vm222_vm13, %v4990_v21, 0.0 }
 0x917   :  { %1278 = vadd.xlane.f32.xlu0 %v1277_v22 }
 0x924   :  { %4846 = vrot.lane.b32.xlu1 %v5331_v3, %s5153_s23 }
 0x928   :  { %1401 = vrot.lane.b32.xlu1 %v5515_v10, %s5154_s24 }
 0x92c   :  { %1403 = vrot.lane.b32.xlu1 %v5513_v9, %s5154_s24 }
 0x92d   :  { %4851 = vrot.lane.b32.xlu0 %v5343_v8, %s5153_s23 }
 0x930   :  { %1419 = vrot.lane.b32.xlu1 %v4177_v36, %s5155_s25 }
 0x931   :  { %1417 = vrot.lane.b32.xlu0 %v1108_v38, %s5155_s25 }
 0x934   :  { %1407 = vrot.lane.b32.xlu1 %v5517_v11, %s5154_s24 }
 0x935   :  { %1405 = vrot.lane.b32.xlu0 %v5519_v13, %s5154_s24 }
 0x99b   :  { %v1273_v10 = vpop.xlane.xlu0 %1272 }
 0x99c   :  { %v1270_v3 = vpop.xlane.xlu1 %1269 }
 0x99d   :  { %4991 = vrcp.f32 %v1270_v3 }
 0x99e   :  { %4993 = vrcp.f32 %v1273_v10 }
 0x9a0   :  { %v1276_v23 = vpop.xlane.xlu1 %1275 }
 0x9a1   :  { %4995 = vrcp.f32 %v1276_v23 }
 0x9a4   :  { %v4847_v9 = vpop.permute.xlu1 %4846  ;;  %v1279_v24 = vpop.xlane.xlu0 %1278 }
 0x9a5   :  { %v4849_v8 = vunpack.i.h.bf16 %v4847_v9  ;;  %v4848_v26 = vunpack.i.l.bf16 %v4847_v9  ;;  %4997 = vrcp.f32 %v1279_v24 }
 0x9a7   :  { %v4992_v27 = vpop.eup %4991  ;;  %v4563_v28 = vpack.c.bf16 %v4849_v8, %v4848_v26 }
 0x9a8   :  { %v4852_v30 = vpop.permute.xlu0 %4851  ;;  %v1284_v31 = vmul.f32 %v4992_v27, %v4986_v5  ;;  %v4994_v32 = vpop.eup %4993 }
 0x9a9   :  { %v4854_v25 = vunpack.i.h.bf16 %v4852_v30  ;;  %v4853_v11 = vunpack.i.l.bf16 %v4852_v30  ;;  %4564 = vmatprep.subr.bf16.mxu0 %v4563_v28  ;;  %v1285_v35 = vmul.f32 %v4994_v32, %v4984_v18  ;;  %v1402_v34 = vpop.permute.xlu1 %1401 }
 0x9aa   :  { %4566 = vmatpush3.bf16.msra.mxu0 %v4563_v28  ;;  %4203 = vmatprep.mubr.msk.f32.mxu0 %vm222_vm13, %v1284_v31  ;;  %v1445_v15 = vsel %vm332_vm14, %v5507_v56, %v1402_v34 }
 0x9ab   :  { %v4567_v13 = vpack.c.bf16 %v4854_v25, %v4853_v11  ;;  %v4996_v33 = vpop.eup %4995 }
 0x9ac   :  { %v1286_v38 = vmul.f32 %v4996_v33, %v4988_v7  ;;  %v1418_v61 = vpop.permute.xlu0 %1417 }
 0x9ad   :  { %4568 = vmatprep.subr.bf16.mxu0 %v4567_v13  ;;  %v1404_v54 = vpop.permute.xlu1 %1403 }
 0x9ae   :  { %4570 = vmatpush3.bf16.msra.mxu0 %v4567_v13  ;;  %v1446_v16 = vsel %vm332_vm14, %v5505_v4, %v1404_v54  ;;  %v1637_v54 = vld [vmem:[%s6322_s7] sm:$0xff] }
 0x9af   :  { %v4998_v36 = vpop.eup %4997  ;;  %4572 = vmatprep.subr.bf16.mxu0 %v4571_v37 }
 0x9b0   :  { %v1287_v42 = vmul.f32 %v4998_v36, %v4990_v21  ;;  %v1406_v14 = vpop.permute.xlu0 %1405 }
 0x9b1   :  { %4204 = vmatmul.mubr.msk.f32.vlgmr.msra.gmra.mrb[20].mxu0 %vm222_vm13, %v1285_v35  ;;  %v1420_v39 = vpop.permute.xlu1 %1419  ;;  %v1447_v56 = vsel %vm332_vm14, %v5511_v63, %v1406_v14  ;;  %v5642_v63 = vld [vmem:[%s6325_s10] sm:$0xf]  ;;  %v1640_v14 = vld [vmem:[%s6322_s7 + $0x18] sm:$0xff] }
 0x9b2   :  { %4206 = vmatprep.mubr.msk.f32.mxu0 %vm222_vm13, %v1286_v38  ;;  %4574 = vmatpush3.bf16.msra.mxu0 %v4571_v37  ;;  %v1451_v6 = vsel %vm1449_vm0, %v1446_v16, %v1420_v39  ;;  %v1638_v39 = vld [vmem:[%s6322_s7 + $0x8] sm:$0xff] }
 0x9b3   :  { %4576 = vmatprep.subr.bf16.mxu0 %v4575_v47  ;;  %v1764_v16 = vld [vmem:[%s6323_s8 + $0x8] sm:$0xff] }
 0x9b5   :  { %4207 = vmatmul.mubr.msk.f32.gmra.mrb[22].mxu0 %vm222_vm13, %v1287_v42  ;;  %v1408_v1 = vpop.permute.xlu1 %1407 }
 0x9b6   :  { %4578 = vmatpush3.bf16.msra.mxu0 %v4575_v47  ;;  %v1448_v4 = vsel %vm332_vm14, %v5509_v55, %v1408_v1  ;;  %v1466_v55 = vrot.slane %v5642_v63, %v5317_v60  ;;  %v1639_v1 = vld [vmem:[%s6322_s7 + $0x10] sm:$0xff] }
 0xa84   :  { %v4205_v49 = vpop.f32.mrb[20].mxu0 }
 0xa85   :  { %1435 = vrot.lane.b32.xlu1 %v4205_v49, %s6327_s4  ;;  %v1378_v50 = vpop.f32.mrb[21].mxu0 }
 0xa86   :  { %1433 = vrot.lane.b32.xlu0 %v1378_v50, %s6327_s4 }
 0xa88   :  { %v4208_v29 = vpop.f32.mrb[22].mxu0 }
 0xa89   :  { %1423 = vrot.lane.b32.xlu1 %v5565_v40, %s5155_s25  ;;  %v1388_v53 = vpop.f32.mrb[23].mxu0 }
 0xa8a   :  { %1421 = vrot.lane.b32.xlu0 %v5567_v41, %s5155_s25  ;;  %v1450_v41 = vsel %vm1449_vm0, %v1445_v15, %v1418_v61  ;;  %v4579_v61 = vpack.c.bf16 %v1638_v39, %v1637_v54  ;;  %v4583_v15 = vpack.c.bf16 %v1640_v14, %v1639_v1  ;;  %v1778_v54 = vld [vmem:[%s6323_s8 + $0x78] sm:$0xff]  ;;  %v5111_v1 = vld [vmem:[%s6324_s9] sm:$0x3] }
 0xa8c   :  { %4580 = vmatprep.subr.bf16.mxu1 %v4579_v61 }
 0xa8d   :  { %1439 = vrot.lane.b32.xlu1 %v4208_v29, %s6327_s4  ;;  %4582 = vmatpush3.bf16.msra.mxu1 %v4579_v61  ;;  %v5775_v61 = vsub.s32 1, %v5314_v59 }
 0xa8e   :  { %1437 = vrot.lane.b32.xlu0 %v1388_v53, %s6327_s4  ;;  %4584 = vmatprep.subr.bf16.mxu1 %v4583_v15 }
 0xa8f   :  { %v1644_v14 = vrot.slane %v5111_v1, %v5775_v61 }
 0xa91   :  { %4586 = vmatpush3.bf16.msra.mxu1 %v4583_v15 }
 0xaf7   :  { %v1436_v40 = vpop.permute.xlu1 %1435 }
 0xaf8   :  { %v1434_v17 = vpop.permute.xlu0 %1433  ;;  %v1456_v48 = vsel %vm1454_vm1, %v1451_v6, %v1436_v40  ;;  %v1763_v40 = vld [vmem:[%s6323_s8] sm:$0xff]  ;;  %v1766_v6 = vld [vmem:[%s6323_s8 + $0x18] sm:$0xff] }
 0xaf9   :  { %v1455_v62 = vsel %vm1454_vm1, %v1450_v41, %v1434_v17  ;;  %v1765_v41 = vld [vmem:[%s6323_s8 + $0x10] sm:$0xff]  ;;  %v4587_v17 = vpack.c.bf16 %v1764_v16, %v1763_v40 }
 0xafa   :  { %4217 = vmatprep.mubr.msk.f32.mxu0 %vm222_vm13, %v1455_v62  ;;  %v4591_v62 = vpack.c.bf16 %v1766_v6, %v1765_v41 }
 0xafb   :  { %v1424_v0 = vpop.permute.xlu1 %1423  ;;  %4218 = vmatmul.mubr.msk.f32.vlgmr.msra.gmra.mrb[24].mxu0 %vm222_vm13, %v1456_v48  ;;  %v1767_v48 = vld [vmem:[%s6323_s8 + $0x20] sm:$0xff]  ;;  %4588 = vmatprep.subr.bf16.mxu0 %v4587_v17 }
 0xafc   :  { %v1422_v18 = vpop.permute.xlu0 %1421  ;;  %v1453_v7 = vsel %vm1449_vm0, %v1448_v4, %v1424_v0  ;;  %v1768_v0 = vld [vmem:[%s6323_s8 + $0x28] sm:$0xff]  ;;  %4590 = vmatpush3.bf16.msra.mxu0 %v4587_v17 }
 0xafd   :  { %v1452_v19 = vsel %vm1449_vm0, %v1447_v56, %v1422_v18  ;;  %4592 = vmatprep.subr.bf16.mxu0 %v4591_v62  ;;  %v4595_v18 = vpack.c.bf16 %v1768_v0, %v1767_v48 }
 0xaff   :  { %v1440_v5 = vpop.permute.xlu1 %1439 }
 0xb00   :  { %v1438_v2 = vpop.permute.xlu0 %1437  ;;  %v1458_v21 = vsel %vm1454_vm1, %v1453_v7, %v1440_v5  ;;  %4594 = vmatpush3.bf16.msra.mxu0 %v4591_v62 }
 0xb01   :  { %v1457_v20 = vsel %vm1454_vm1, %v1452_v19, %v1438_v2  ;;  %4596 = vmatprep.subr.bf16.mxu0 %v4595_v18 }
 0xb02   :  { %4220 = vmatprep.mubr.msk.f32.mxu0 %vm222_vm13, %v1457_v20 }
 0xb03   :  { %4221 = vmatmul.mubr.msk.f32.gmra.mrb[26].mxu0 %vm222_vm13, %v1458_v21  ;;  %v1623_v21 = vsub.s32 2, %v5314_v59 }
 0xb04   :  { %4598 = vmatpush3.bf16.msra.mxu0 %v4595_v18 }
 0xbce   :  { %v4219_v22 = vpop.f32.mrb[24].mxu0 }
 0xbcf   :  { %v1551_v3 = vadd.f32 %v4219_v22, %v1466_v55  ;;  %v1545_v10 = vpop.f32.mrb[25].mxu0 }
 0xbd0   :  { %v1546_v23 = vadd.f32 %v1545_v10, %v1466_v55 }
 0xbd1   :  { %v1565_v9 = vadd.f32 %v1551_v3, %v5294_v52  ;;  %v1631_v3 = vsub.s32 3, %v5314_v59 }
 0xbd2   :  { %v1564_v24 = vadd.f32 %v1546_v23, %v5292_v51  ;;  %v5709_v23 = vrot.slane %v5642_v63, %v1623_v21 }
 0xbd3   :  { %v1571_v8 = vsel %vm222_vm13, %v1565_v9, 0.0 }
 0xbd4   :  { %1572 = vadd.xlane.f32.xlu1 %v1571_v8  ;;  %v1568_v26 = vsel %vm222_vm13, %v1564_v24, 0.0 }
 0xbd5   :  { %1569 = vadd.xlane.f32.xlu0 %v1568_v26 }
 0xbd6   :  { %v4222_v27 = vpop.f32.mrb[26].mxu0 }
 0xbd7   :  { %v1555_v28 = vpop.f32.mrb[27].mxu0  ;;  %v1561_v30 = vadd.f32 %v4222_v27, %v1466_v55 }
 0xbd8   :  { %v1556_v31 = vadd.f32 %v1555_v28, %v1466_v55  ;;  %v5715_v28 = vrot.slane %v5642_v63, %v1631_v3 }
 0xbd9   :  { %v1567_v13 = vadd.f32 %v1561_v30, %v5308_v58 }
 0xbda   :  { %v1566_v25 = vadd.f32 %v1556_v31, %v5306_v57 }
 0xbdb   :  { %v1577_v52 = vsel %vm222_vm13, %v1567_v13, 0.0 }
 0xbdc   :  { %v1574_v11 = vsel %vm222_vm13, %v1566_v25, 0.0 }
 0xbdd   :  { %1575 = vadd.xlane.f32.xlu0 %v1574_v11 }
 0xbe1   :  { %1578 = vadd.xlane.f32.xlu0 %v1577_v52 }
 0xc61   :  { %v1573_v51 = vpop.xlane.xlu1 %1572 }
 0xc62   :  { %v1582_v32 = vmul.f32 0.03125, %v1573_v51  ;;  %v1570_v33 = vpop.xlane.xlu0 %1569 }
 0xc63   :  { %v1581_v35 = vmul.f32 0.03125, %v1570_v33 }
 0xc64   :  { %v5654_v36 = vsub.f32 %v1565_v9, %v1582_v32 }
 0xc65   :  { %v5656_v38 = vsub.f32 %v1564_v24, %v1581_v35 }
 0xc66   :  { %v1590_v42 = vmul.f32 %v5654_v36, %v5654_v36 }
 0xc67   :  { %v1589_v57 = vmul.f32 %v5656_v38, %v5656_v38 }
 0xc68   :  { %v1596_v58 = vsel %vm222_vm13, %v1590_v42, 0.0 }
 0xc69   :  { %1597 = vadd.xlane.f32.xlu0 %v1596_v58  ;;  %v1593_v44 = vsel %vm222_vm13, %v1589_v57, 0.0  ;;  %v1769_v57 = vld [vmem:[%s6323_s8 + $0x30] sm:$0xff]  ;;  %v1770_v58 = vld [vmem:[%s6323_s8 + $0x38] sm:$0xff] }
 0xc6a   :  { %1594 = vadd.xlane.f32.xlu1 %v1593_v44  ;;  %v1576_v45 = vpop.xlane.xlu0 %1575  ;;  %v4599_v44 = vpack.c.bf16 %v1770_v58, %v1769_v57 }
 0xc6b   :  { %v1583_v46 = vmul.f32 0.03125, %v1576_v45  ;;  %v1771_v45 = vld [vmem:[%s6323_s8 + $0x40] sm:$0xff] }
 0xc6c   :  { %4600 = vmatprep.subr.bf16.mxu0 %v4599_v44 }
 0xc6d   :  { %v5664_v37 = vsub.f32 %v1566_v25, %v1583_v46  ;;  %4602 = vmatpush3.bf16.msra.mxu0 %v4599_v44  ;;  %v1772_v46 = vld [vmem:[%s6323_s8 + $0x48] sm:$0xff] }
 0xc6e   :  { %v1579_v43 = vpop.xlane.xlu0 %1578 }
 0xc6f   :  { %v1584_v47 = vmul.f32 0.03125, %v1579_v43  ;;  %v1591_v49 = vmul.f32 %v5664_v37, %v5664_v37  ;;  %v1773_v43 = vld [vmem:[%s6323_s8 + $0x50] sm:$0xff] }
 0xc71   :  { %v5668_v50 = vsub.f32 %v1567_v13, %v1584_v47  ;;  %v1599_v29 = vsel %vm222_vm13, %v1591_v49, 0.0  ;;  %v1774_v47 = vld [vmem:[%s6323_s8 + $0x58] sm:$0xff] }
 0xc72   :  { %1600 = vadd.xlane.f32.xlu1 %v1599_v29  ;;  %v4607_v49 = vpack.c.bf16 %v1774_v47, %v1773_v43  ;;  %v1776_v29 = vld [vmem:[%s6323_s8 + $0x68] sm:$0xff] }
 0xc73   :  { %v1592_v53 = vmul.f32 %v5668_v50, %v5668_v50 }
 0xc75   :  { %v1602_v34 = vsel %vm222_vm13, %v1592_v53, 0.0 }
 0xc76   :  { %1603 = vadd.xlane.f32.xlu0 %v1602_v34  ;;  %v1777_v34 = vld [vmem:[%s6323_s8 + $0x70] sm:$0xff] }
 0xc77   :  { %v4615_v39 = vpack.c.bf16 %v1778_v54, %v1777_v34 }
 0xcf6   :  { %v1598_v56 = vpop.xlane.xlu0 %1597 }
 0xcf7   :  { %v1606_v5 = vmul.f32 0.03125, %v1598_v56  ;;  %v1595_v4 = vpop.xlane.xlu1 %1594 }
 0xcf8   :  { %v1605_v19 = vmul.f32 0.03125, %v1595_v4 }
 0xcf9   :  { %v1610_v2 = vadd.f32 1e-05, %v1606_v5 }
 0xcfa   :  { %v1609_v7 = vadd.f32 1e-05, %v1605_v19 }
 0xcfb   :  { %4999 = vrsqrt.f32 %v1610_v2 }
 0xcfc   :  { %5001 = vrsqrt.f32 %v1609_v7 }
 0xcff   :  { %v1601_v20 = vpop.xlane.xlu1 %1600 }
 0xd00   :  { %v1607_v55 = vmul.f32 0.03125, %v1601_v20 }
 0xd02   :  { %v1611_v22 = vadd.f32 1e-05, %v1607_v55 }
 0xd03   :  { %v1604_v10 = vpop.xlane.xlu0 %1603 }
 0xd04   :  { %5003 = vrsqrt.f32 %v1611_v22  ;;  %v1608_v9 = vmul.f32 0.03125, %v1604_v10 }
 0xd05   :  { %v5000_v24 = vpop.eup %4999 }
 0xd06   :  { %v5002_v8 = vpop.eup %5001  ;;  %v1618_v26 = vmul.f32 %v5000_v24, %v5654_v36  ;;  %v1612_v27 = vadd.f32 1e-05, %v1608_v9 }
 0xd07   :  { %v1617_v30 = vmul.f32 %v5002_v8, %v5656_v38 }
 0xd08   :  { %v1626_v31 = vmul.f32 %v5709_v23, %v1618_v26  ;;  %5005 = vrsqrt.f32 %v1612_v27 }
 0xd09   :  { %v1625_v25 = vmul.f32 %v5709_v23, %v1617_v30 }
 0xd0a   :  { %v5724_v13 = vadd.f32 %v5715_v28, %v1626_v31 }
 0xd0b   :  { %v5721_v11 = vadd.f32 %v5715_v28, %v1625_v25 }
 0xd0d   :  { %4231 = vmatprep.mubr.msk.f32.mxu1 %vm222_vm13, %v5721_v11 }
 0xd0e   :  { %v5004_v52 = vpop.eup %5003  ;;  %4232 = vmatmul.mubr.msk.f32.vlgmr.msra.gmra.mrb[16].mxu1 %vm222_vm13, %v5724_v13 }
 0xd0f   :  { %v1619_v51 = vmul.f32 %v5004_v52, %v5664_v37  ;;  %v4603_v37 = vpack.c.bf16 %v1772_v46, %v1771_v45  ;;  %v1782_v52 = vrot.slane %v5642_v63, %v5775_v61 }
 0xd11   :  { %v1627_v32 = vmul.f32 %v5709_v23, %v1619_v51  ;;  %4604 = vmatprep.subr.bf16.mxu0 %v4603_v37 }
 0xd12   :  { %v5006_v33 = vpop.eup %5005  ;;  %4606 = vmatpush3.bf16.msra.mxu0 %v4603_v37 }
 0xd13   :  { %v5733_v35 = vadd.f32 %v5715_v28, %v1627_v32  ;;  %v1620_v36 = vmul.f32 %v5006_v33, %v5668_v50  ;;  %4608 = vmatprep.subr.bf16.mxu0 %v4607_v49  ;;  %v1775_v50 = vld [vmem:[%s6323_s8 + $0x60] sm:$0xff] }
 0xd14   :  { %v4611_v53 = vpack.c.bf16 %v1776_v29, %v1775_v50 }
 0xd15   :  { %4234 = vmatprep.mubr.msk.f32.mxu1 %vm222_vm13, %v5733_v35  ;;  %v1628_v38 = vmul.f32 %v5709_v23, %v1620_v36 }
 0xd16   :  { %4610 = vmatpush3.bf16.msra.mxu0 %v4607_v49 }
 0xd17   :  { %v5740_v42 = vadd.f32 %v5715_v28, %v1628_v38  ;;  %4612 = vmatprep.subr.bf16.mxu0 %v4611_v53 }
 0xd19   :  { %4235 = vmatmul.mubr.msk.f32.gmra.mrb[18].mxu1 %vm222_vm13, %v5740_v42 }
 0xd1a   :  { %4614 = vmatpush3.bf16.msra.mxu0 %v4611_v53 }
 0xd1b   :  { %4616 = vmatprep.subr.bf16.mxu0 %v4615_v39 }
 0xd1e   :  { %4618 = vmatpush3.bf16.msra.mxu0 %v4615_v39 }
 0xde1   :  { %v4233_v15 = vpop.f32.mrb[16].mxu1 }
 0xde2   :  { %v1729_v40 = vadd.f32 %v4233_v15, %v1644_v14  ;;  %v1723_v16 = vpop.f32.mrb[17].mxu1 }
 0xde3   :  { %v1724_v41 = vadd.f32 %v1723_v16, %v1644_v14 }
 0xde4   :  { %v1748_v17 = vmul.f32 0.70710677, %v1729_v40  ;;  %v1743_v55 = vmul.f32 0.5, %v1729_v40 }
 0xde5   :  { %v1747_v6 = vmul.f32 0.70710677, %v1724_v41  ;;  %v1742_v7 = vmul.f32 0.5, %v1724_v41 }
 0xde6   :  { %5007 = verf.f32 %v1748_v17 }
 0xde7   :  { %5009 = verf.f32 %v1747_v6 }
 0xdec   :  { %v4236_v62 = vpop.f32.mrb[18].mxu1 }
 0xded   :  { %v1739_v48 = vadd.f32 %v4236_v62, %v1644_v14  ;;  %v1733_v0 = vpop.f32.mrb[19].mxu1 }
 0xdee   :  { %v1734_v18 = vadd.f32 %v1733_v0, %v1644_v14 }
 0xdef   :  { %v1750_v56 = vmul.f32 0.70710677, %v1739_v48  ;;  %v1745_v30 = vmul.f32 0.5, %v1739_v48 }
 0xdf0   :  { %v5008_v5 = vpop.eup %5007  ;;  %v1749_v4 = vmul.f32 0.70710677, %v1734_v18  ;;  %v1744_v26 = vmul.f32 0.5, %v1734_v18  ;;  %v3742_v18 = vld [vmem:[%s6320_s5 + $0x20] sm:$0xff] }
 0xdf1   :  { %v5010_v19 = vpop.eup %5009  ;;  %v1756_v2 = vadd.f32 1.0, %v5008_v5  ;;  %5011 = verf.f32 %v1750_v56  ;;  %v3743_v56 = vld [vmem:[%s6320_s5 + $0x28] sm:$0xff] }
 0xdf2   :  { %v1755_v20 = vadd.f32 1.0, %v5010_v19  ;;  %5013 = verf.f32 %v1749_v4  ;;  %v4619_v5 = vpack.c.bf16 %v3743_v56, %v3742_v18  ;;  %v3744_v4 = vld [vmem:[%s6320_s5 + $0x30] sm:$0xff]  ;;  %v3745_v19 = vld [vmem:[%s6320_s5 + $0x38] sm:$0xff] }
 0xdf3   :  { %v1760_v10 = vmul.f32 %v1756_v2, %v1743_v55  ;;  %v4623_v2 = vpack.c.bf16 %v3745_v19, %v3744_v4 }
 0xdf4   :  { %v1759_v22 = vmul.f32 %v1755_v20, %v1742_v7  ;;  %4620 = vmatprep.subr.bf16.mxu1 %v4619_v5 }
 0xdf5   :  { %4622 = vmatpush3.bf16.msra.mxu1 %v4619_v5 }
 0xdf6   :  { %4269 = vmatprep.mubr.f32.mxu0 %v1759_v22  ;;  %4624 = vmatprep.subr.bf16.mxu1 %v4623_v2 }
 0xdf7   :  { %4270 = vmatmul.mubr.f32.vlgmr.msra.gmra.mrb[28].mxu0 %v1760_v10 }
 0xdf9   :  { %4626 = vmatpush3.bf16.msra.mxu1 %v4623_v2 }
 0xdfb   :  { %v5012_v9 = vpop.eup %5011 }
 0xdfc   :  { %v5014_v24 = vpop.eup %5013  ;;  %v1758_v8 = vadd.f32 1.0, %v5012_v9 }
 0xdfd   :  { %v1757_v27 = vadd.f32 1.0, %v5014_v24 }
 0xdfe   :  { %v1762_v25 = vmul.f32 %v1758_v8, %v1745_v30 }
 0xdff   :  { %v1761_v31 = vmul.f32 %v1757_v27, %v1744_v26 }
 0xe01   :  { %4272 = vmatprep.mubr.f32.mxu0 %v1761_v31 }
 0xe02   :  { %4273 = vmatmul.mubr.f32.gmra.mrb[30].mxu0 %v1762_v25 }
 0xeca   :  { %v4271_v51 = vpop.f32.mrb[28].mxu0 }
 0xecb   :  { %v1855_v32 = vadd.f32 %v4271_v51, %v1782_v52  ;;  %v1849_v33 = vpop.f32.mrb[29].mxu0 }
 0xecc   :  { %v1850_v36 = vadd.f32 %v1849_v33, %v1782_v52 }
 0xecd   :  { %v1869_v38 = vadd.f32 %v1855_v32, %v5724_v13 }
 0xece   :  { %v1868_v57 = vadd.f32 %v1850_v36, %v5721_v11 }
 0xecf   :  { %v1875_v58 = vsel %vm222_vm13, %v1869_v38, 0.0 }
 0xed0   :  { %1876 = vadd.xlane.f32.xlu0 %v1875_v58  ;;  %v1872_v44 = vsel %vm222_vm13, %v1868_v57, 0.0 }
 0xed1   :  { %1873 = vadd.xlane.f32.xlu1 %v1872_v44 }
 0xed5   :  { %v4274_v45 = vpop.f32.mrb[30].mxu0 }
 0xed6   :  { %v1865_v46 = vadd.f32 %v4274_v45, %v1782_v52  ;;  %v1859_v37 = vpop.f32.mrb[31].mxu0 }
 0xed7   :  { %v1860_v43 = vadd.f32 %v1859_v37, %v1782_v52 }
 0xed8   :  { %v1871_v63 = vadd.f32 %v1865_v46, %v5740_v42 }
 0xed9   :  { %v1870_v47 = vadd.f32 %v1860_v43, %v5733_v35 }
 0xeda   :  { %v1881_v49 = vsel %vm222_vm13, %v1871_v63, 0.0 }
 0xedb   :  { %1882 = vadd.xlane.f32.xlu0 %v1881_v49  ;;  %v1878_v13 = vsel %vm222_vm13, %v1870_v47, 0.0  ;;  %v3741_v49 = vld [vmem:[%s6324_s9 + $0x2] sm:$0x3] }
 0xedc   :  { %1879 = vadd.xlane.f32.xlu1 %v1878_v13  ;;  %v1944_v13 = vrot.slane %v3741_v49, %v5317_v60 }
 0xf5d   :  { %v1877_v11 = vpop.xlane.xlu0 %1876 }
 0xf5e   :  { %v1885_v50 = vmul.f32 0.03125, %v1877_v11  ;;  %v1874_v29 = vpop.xlane.xlu1 %1873 }
 0xf5f   :  { %v1884_v53 = vmul.f32 0.03125, %v1874_v29 }
 0xf60   :  { %v1889_v34 = vsub.f32 %v1869_v38, %v1885_v50 }
 0xf61   :  { %v1888_v54 = vsub.f32 %v1868_v57, %v1884_v53 }
 0xf62   :  { %v1893_v39 = vmul.f32 %v1889_v34, %v1889_v34 }
 0xf63   :  { %v1892_v1 = vmul.f32 %v1888_v54, %v1888_v54 }
 0xf64   :  { %v1899_v14 = vsel %vm222_vm13, %v1893_v39, 0.0 }
 0xf65   :  { %1900 = vadd.xlane.f32.xlu0 %v1899_v14  ;;  %v1896_v42 = vsel %vm222_vm13, %v1892_v1, 0.0 }
 0xf66   :  { %1897 = vadd.xlane.f32.xlu1 %v1896_v42 }
 0xf68   :  { %v1883_v35 = vpop.xlane.xlu0 %1882 }
 0xf69   :  { %v1887_v15 = vmul.f32 0.03125, %v1883_v35  ;;  %v1880_v40 = vpop.xlane.xlu1 %1879 }
 0xf6a   :  { %v1886_v16 = vmul.f32 0.03125, %v1880_v40 }
 0xf6b   :  { %v1891_v41 = vsub.f32 %v1871_v63, %v1887_v15 }
 0xf6c   :  { %v1890_v17 = vsub.f32 %v1870_v47, %v1886_v16 }
 0xf6d   :  { %v1895_v6 = vmul.f32 %v1891_v41, %v1891_v41 }
 0xf6e   :  { %v1894_v62 = vmul.f32 %v1890_v17, %v1890_v17 }
 0xf6f   :  { %v1905_v48 = vsel %vm222_vm13, %v1895_v6, 0.0 }
 0xf70   :  { %1906 = vadd.xlane.f32.xlu0 %v1905_v48  ;;  %v1902_v0 = vsel %vm222_vm13, %v1894_v62, 0.0 }
 0xf71   :  { %1903 = vadd.xlane.f32.xlu1 %v1902_v0 }
 0xff2   :  { %v1901_v7 = vpop.xlane.xlu0 %1900 }
 0xff3   :  { %v1909_v20 = vmul.f32 0.03125, %v1901_v7  ;;  %v1898_v55 = vpop.xlane.xlu1 %1897 }
 0xff4   :  { %v1908_v22 = vmul.f32 0.03125, %v1898_v55 }
 0xff5   :  { %v1913_v10 = vadd.f32 1e-05, %v1909_v20 }
 0xff6   :  { %v1912_v9 = vadd.f32 1e-05, %v1908_v22 }
 0xff7   :  { %5015 = vrsqrt.f32 %v1913_v10 }
 0xff8   :  { %5017 = vrsqrt.f32 %v1912_v9 }
 0xffd   :  { %v1907_v24 = vpop.xlane.xlu0 %1906 }
 0xffe   :  { %v1911_v8 = vmul.f32 0.03125, %v1907_v24  ;;  %v1904_v26 = vpop.xlane.xlu1 %1903 }
 0xfff   :  { %v1910_v27 = vmul.f32 0.03125, %v1904_v26 }
0x1000   :  { %v1915_v30 = vadd.f32 1e-05, %v1911_v8  ;;  %v5900_v8 = vld [vmem:[%s6317_s2 + $0x8] sm:$0xff] }
0x1001   :  { %v5016_v31 = vpop.eup %5015  ;;  %v1914_v25 = vadd.f32 1e-05, %v1910_v27 }
0x1002   :  { %v5018_v52 = vpop.eup %5017  ;;  %v1921_v51 = vmul.f32 %v5016_v31, %v1889_v34  ;;  %5019 = vrsqrt.f32 %v1915_v30 }
0x1003   :  { %5021 = vrsqrt.f32 %v1914_v25  ;;  %v1920_v32 = vmul.f32 %v5018_v52, %v1888_v54  ;;  %v5907_v52 = vld [vmem:[%s6317_s2] sm:$0xff] }
0x1004   :  { %v1925_v33 = vmul.f32 %v1921_v51, %v5709_v23 }
0x1005   :  { %v1924_v36 = vmul.f32 %v1920_v32, %v5709_v23 }
0x1006   :  { %v5813_v57 = vadd.f32 %v1925_v33, %v5715_v28 }
0x1007   :  { %v5810_v38 = vadd.f32 %v1924_v36, %v5715_v28 }
0x1009   :  { %4283 = vmatprep.mubr.msk.f32.mxu1 %vm222_vm13, %v5810_v38 }
0x100a   :  { %4284 = vmatmul.mubr.msk.f32.vlgmr.msra.gmra.mrb[20].mxu1 %vm222_vm13, %v5813_v57 }
0x100c   :  { %v5020_v58 = vpop.eup %5019 }
0x100d   :  { %v5022_v44 = vpop.eup %5021  ;;  %v1923_v45 = vmul.f32 %v5020_v58, %v1891_v41 }
0x100e   :  { %v1922_v46 = vmul.f32 %v5022_v44, %v1890_v17 }
0x100f   :  { %v1927_v37 = vmul.f32 %v1923_v45, %v5709_v23 }
0x1010   :  { %v1926_v43 = vmul.f32 %v1922_v46, %v5709_v23 }
0x1011   :  { %v5825_v47 = vadd.f32 %v1927_v37, %v5715_v28 }
0x1012   :  { %v5822_v63 = vadd.f32 %v1926_v43, %v5715_v28  ;;  %v5917_v43 = vld [vmem:[%s6317_s2 + $0x18] sm:$0xff] }
0x1014   :  { %4286 = vmatprep.mubr.msk.f32.mxu1 %vm222_vm13, %v5822_v63 }
0x1015   :  { %4287 = vmatmul.mubr.msk.f32.gmra.mrb[22].mxu1 %vm222_vm13, %v5825_v47 }
0x10dd   :  { %v4285_v11 = vpop.f32.mrb[20].mxu1 }
0x10de   :  { %v5835_v23 = vadd.f32 %v4285_v11, %v1944_v13  ;;  %v2023_v50 = vpop.f32.mrb[21].mxu1 }
0x10df   :  { %v5837_v29 = vadd.f32 %v2023_v50, %v1944_v13 }
0x10e1   :  { %4297 = vmatprep.mubr.msk.f32.mxu1 %vm332_vm14, %v5837_v29  ;;  %v5843_v28 = vpack.i.bf16 %v5835_v23, %v5837_v29 }
0x10e3   :  { %4856 = vrot.lane.b32.xlu1 %v5843_v28, %s5143_s3 }
0x10e7   :  { %4866 = vrot.lane.b32.xlu1 %v5843_v28, %s5144_s28 }
0x10e8   :  { %v4288_v53 = vpop.f32.mrb[22].mxu1 }
0x10e9   :  { %v5849_v34 = vadd.f32 %v4288_v53, %v1944_v13  ;;  %v2033_v54 = vpop.f32.mrb[23].mxu1  ;;  %v5928_v53 = vld [vmem:[%s6317_s2 + $0x10] sm:$0xff] }
0x10ea   :  { %v5851_v39 = vadd.f32 %v2033_v54, %v1944_v13 }
0x10ec   :  { %v5855_v1 = vpack.i.bf16 %v5849_v34, %v5851_v39 }
0x10ee   :  { %4871 = vrot.lane.b32.xlu1 %v5855_v1, %s5144_s28  ;;  %4861 = vrot.lane.b32.xlu0 %v5855_v1, %s5143_s3 }
0x10f2   :  { %2310 = vrot.lane.b32.xlu1 %v5835_v23, %s5145_s29  ;;  %2308 = vrot.lane.b32.xlu0 %v5837_v29, %s5145_s29 }
0x10f6   :  { %2314 = vrot.lane.b32.xlu1 %v5849_v34, %s5145_s29  ;;  %2312 = vrot.lane.b32.xlu0 %v5851_v39, %s5145_s29 }
0x10fa   :  { %4876 = vrot.lane.b32.xlu1 %v5843_v28, %s5146_s1 }
0x1155   :  { %v4857_v14 = vpop.permute.xlu1 %4856 }
0x1156   :  { %v4859_v42 = vunpack.i.h.bf16 %v4857_v14  ;;  %v4858_v35 = vunpack.i.l.bf16 %v4857_v14 }
0x1158   :  { %v4627_v15 = vpack.c.bf16 %v4859_v42, %v4858_v35 }
0x1159   :  { %v4867_v40 = vpop.permute.xlu1 %4866 }
0x115a   :  { %v4869_v16 = vunpack.i.h.bf16 %v4867_v40  ;;  %v4868_v41 = vunpack.i.l.bf16 %v4867_v40  ;;  %4629 = vmatprep.subr.msk.bf16.mxu1 %vm5361_vm15, %v4627_v15 }
0x115b   :  { %4632 = vmatpush3.bf16.xpose.msk.msra.mxu1 %vm5361_vm15, %v4627_v15 }
0x115c   :  { %v4647_v17 = vpack.c.bf16 %v4869_v16, %v4868_v41 }
0x115e   :  { %4649 = vmatprep.subr.msk.bf16.mxu0 %vm5361_vm15, %v4647_v17 }
0x115f   :  { %4652 = vmatpush3.bf16.xpose.msk.msra.mxu0 %vm5361_vm15, %v4647_v17 }
0x1160   :  { %v4872_v6 = vpop.permute.xlu1 %4871  ;;  %v4862_v62 = vpop.permute.xlu0 %4861 }
0x1161   :  { %v4874_v48 = vunpack.i.h.bf16 %v4872_v6  ;;  %v4873_v0 = vunpack.i.l.bf16 %v4872_v6  ;;  %v4864_v18 = vunpack.i.h.bf16 %v4862_v62  ;;  %v4863_v56 = vunpack.i.l.bf16 %v4862_v62 }
0x1163   :  { %v4653_v5 = vpack.c.bf16 %v4874_v48, %v4873_v0  ;;  %v4633_v4 = vpack.c.bf16 %v4864_v18, %v4863_v56 }
0x1164   :  { %v2311_v19 = vpop.permute.xlu1 %2310  ;;  %v2309_v2 = vpop.permute.xlu0 %2308 }
0x1165   :  { %4635 = vmatprep.subr.msk.bf16.mxu1 %vm5361_vm15, %v4633_v4  ;;  %4655 = vmatprep.subr.msk.bf16.mxu0 %vm5361_vm15, %v4653_v5 }
0x1166   :  { %4325 = vmatprep.mubr.msk.f32.mxu0 %vm332_vm14, %v2309_v2  ;;  %4638 = vmatpush3.bf16.xpose.msk.msra.mxu1 %vm5361_vm15, %v4633_v4 }
0x1167   :  { %4658 = vmatpush3.bf16.xpose.msk.msra.mxu0 %vm5361_vm15, %v4653_v5 }
0x1168   :  { %v2315_v7 = vpop.permute.xlu1 %2314  ;;  %v2313_v10 = vpop.permute.xlu0 %2312 }
0x116c   :  { %v4877_v20 = vpop.permute.xlu1 %4876 }
0x116d   :  { %v4879_v55 = vunpack.i.h.bf16 %v4877_v20  ;;  %v4878_v22 = vunpack.i.l.bf16 %v4877_v20  ;;  %4298 = vmatmul.mubr.msk.f32.vlgmr.msra.gmra.mrb[24].mxu1 %vm332_vm14, %v5835_v23 }
0x116e   :  { %4300 = vmatprep.mubr.msk.f32.mxu1 %vm332_vm14, %v5851_v39  ;;  %4326 = vmatmul.mubr.msk.f32.vlgmr.msra.gmra.mrb[32].mxu0 %vm332_vm14, %v2311_v19 }
0x116f   :  { %v4639_v9 = vpack.c.bf16 %v4879_v55, %v4878_v22  ;;  %4328 = vmatprep.mubr.msk.f32.mxu0 %vm332_vm14, %v2313_v10 }
0x1171   :  { %4301 = vmatmul.mubr.msk.f32.gmra.mrb[26].mxu1 %vm332_vm14, %v5849_v34  ;;  %4640 = vmatprep.subr.bf16.mxu1 %v4639_v9 }
0x1172   :  { %4642 = vmatpush3.bf16.msra.mxu1 %v4639_v9  ;;  %4329 = vmatmul.mubr.msk.f32.gmra.mrb[34].mxu0 %vm332_vm14, %v2315_v7 }
0x1240   :  { %v4299_v24 = vpop.f32.mrb[24].mxu1 }
0x1241   :  { %v2142_v26 = vadd.f32 %v5900_v8, %v4299_v24  ;;  %v2136_v27 = vpop.f32.mrb[25].mxu1  ;;  %v4327_v30 = vpop.f32.mrb[32].mxu0 }
0x1242   :  { %v2412_v31 = vadd.f32 %v5900_v8, %v4327_v30  ;;  %v2406_v25 = vpop.f32.mrb[33].mxu0  ;;  %v2137_v33 = vadd.f32 %v5907_v52, %v2136_v27 }
0x1243   :  { %v2407_v51 = vadd.f32 %v5907_v52, %v2406_v25  ;;  %v2158_v32 = vsel %vm222_vm13, %v2142_v26, -inf }
0x1244   :  { %2159 = vmax.xlane.f32.xlu1 %v2158_v32  ;;  %v4302_v36 = vpop.f32.mrb[26].mxu1  ;;  %v2428_v58 = vsel %vm222_vm13, %v2412_v31, -inf  ;;  %v2155_v13 = vsel %vm222_vm13, %v2137_v33, -inf }
0x1245   :  { %2429 = vmax.xlane.f32.xlu0 %v2428_v58  ;;  %v2146_v44 = vpop.f32.mrb[27].mxu1  ;;  %v4330_v45 = vpop.f32.mrb[34].mxu0  ;;  %v2425_v37 = vsel %vm222_vm13, %v2407_v51, -inf  ;;  %v2152_v49 = vadd.f32 %v5917_v43, %v4302_v36 }
0x1246   :  { %v2416_v46 = vpop.f32.mrb[35].mxu0  ;;  %v5922_v11 = vadd.f32 %v5917_v43, %v4330_v45  ;;  %v5931_v54 = vadd.f32 %v5928_v53, %v2146_v44 }
0x1247   :  { %v2164_v50 = vsel %vm222_vm13, %v2152_v49, -inf  ;;  %v5942_v35 = vadd.f32 %v5928_v53, %v2416_v46 }
0x1248   :  { %2426 = vmax.xlane.f32.xlu1 %v2425_v37  ;;  %v2434_v14 = vsel %vm222_vm13, %v5922_v11, -inf  ;;  %v2161_v42 = vsel %vm222_vm13, %v5931_v54, -inf }
0x1249   :  { %2156 = vmax.xlane.f32.xlu0 %v2155_v13  ;;  %v2431_v15 = vsel %vm222_vm13, %v5942_v35, -inf }
0x124d   :  { %2165 = vmax.xlane.f32.xlu0 %v2164_v50 }
0x1251   :  { %2435 = vmax.xlane.f32.xlu0 %v2434_v14 }
0x1255   :  { %2162 = vmax.xlane.f32.xlu0 %v2161_v42 }
0x1259   :  { %4886 = vrot.lane.b32.xlu1 %v5843_v28, %s5147_s17 }
0x126b   :  { %4881 = vrot.lane.b32.xlu0 %v5855_v1, %s5146_s1 }
0x127d   :  { %2432 = vmax.xlane.f32.xlu1 %v2431_v15 }
0x12d1   :  { %v2160_v40 = vpop.xlane.xlu1 %2159 }
0x12d2   :  { %v2168_v16 = vsub.f32 %v2142_v26, %v2160_v40  ;;  %v2430_v41 = vpop.xlane.xlu0 %2429 }
0x12d3   :  { %v2438_v17 = vsub.f32 %v2412_v31, %v2430_v41 }
0x12d4   :  { %v2173_v6 = vmul.f32 1.442695, %v2168_v16 }
0x12d5   :  { %v2443_v62 = vmul.f32 1.442695, %v2438_v17  ;;  %v2427_v48 = vpop.xlane.xlu1 %2426 }
0x12d6   :  { %5023 = vpow2.f32 %v2173_v6  ;;  %v2437_v0 = vsub.f32 %v2407_v51, %v2427_v48  ;;  %v2157_v18 = vpop.xlane.xlu0 %2156 }
0x12d7   :  { %v2167_v56 = vsub.f32 %v2137_v33, %v2157_v18  ;;  %5025 = vpow2.f32 %v2443_v62 }
0x12d8   :  { %v2441_v5 = vmul.f32 1.442695, %v2437_v0 }
0x12d9   :  { %v2171_v4 = vmul.f32 1.442695, %v2167_v56  ;;  %v4887_v26 = vpop.permute.xlu1 %4886 }
0x12da   :  { %v2166_v19 = vpop.xlane.xlu0 %2165  ;;  %v4889_v33 = vunpack.i.h.bf16 %v4887_v26  ;;  %v4888_v36 = vunpack.i.l.bf16 %v4887_v26 }
0x12db   :  { %5027 = vpow2.f32 %v2171_v4  ;;  %v2170_v2 = vsub.f32 %v2152_v49, %v2166_v19 }
0x12dc   :  { %5029 = vpow2.f32 %v2441_v5  ;;  %v4659_v37 = vpack.c.bf16 %v4889_v33, %v4888_v36 }
0x12dd   :  { %v2177_v7 = vmul.f32 1.442695, %v2170_v2 }
0x12de   :  { %v2436_v20 = vpop.xlane.xlu0 %2435 }
0x12df   :  { %5031 = vpow2.f32 %v2177_v7  ;;  %v2440_v49 = vsub.f32 %v5922_v11, %v2436_v20 }
0x12e0   :  { %v5946_v55 = vpop.eup %5023 }
0x12e1   :  { %v2182_v22 = vsel %vm222_vm13, %v5946_v55, 0.0  ;;  %v5950_v10 = vpop.eup %5025  ;;  %v2447_v50 = vmul.f32 1.442695, %v2440_v49 }
0x12e2   :  { %2183 = vadd.xlane.f32.xlu0 %v2182_v22  ;;  %v2163_v9 = vpop.xlane.xlu0 %2162  ;;  %v2452_v27 = vsel %vm222_vm13, %v5950_v10, 0.0 }
0x12e3   :  { %v2169_v13 = vsub.f32 %v5931_v54, %v2163_v9  ;;  %5033 = vpow2.f32 %v2447_v50 }
0x12e5   :  { %v5028_v24 = vpop.eup %5027  ;;  %v2175_v14 = vmul.f32 1.442695, %v2169_v13 }
0x12e6   :  { %2453 = vadd.xlane.f32.xlu0 %v2452_v27  ;;  %v4882_v30 = vpop.permute.xlu0 %4881  ;;  %v2179_v31 = vsel %vm222_vm13, %v5028_v24, 0.0  ;;  %v5955_v25 = vpop.eup %5029 }
0x12e7   :  { %v4884_v51 = vunpack.i.h.bf16 %v4882_v30  ;;  %v4883_v32 = vunpack.i.l.bf16 %v4882_v30  ;;  %2180 = vadd.xlane.f32.xlu1 %v2179_v31  ;;  %v2449_v45 = vsel %vm222_vm13, %v5955_v25, 0.0  ;;  %5035 = vpow2.f32 %v2175_v14 }
0x12e9   :  { %v5957_v58 = vpop.eup %5031  ;;  %v4643_v44 = vpack.c.bf16 %v4884_v51, %v4883_v32 }
0x12ea   :  { %v2188_v46 = vsel %vm222_vm13, %v5957_v58, 0.0 }
0x12eb   :  { %2450 = vadd.xlane.f32.xlu1 %v2449_v45  ;;  %2189 = vadd.xlane.f32.xlu0 %v2188_v46 }
0x12ec   :  { %4644 = vmatprep.subr.bf16.mxu1 %v4643_v44 }
0x12ed   :  { %4646 = vmatpush3.bf16.msra.mxu1 %v4643_v44  ;;  %v5969_v42 = vpop.eup %5033 }
0x12ee   :  { %4660 = vmatprep.subr.bf16.mxu1 %v4659_v37  ;;  %v2458_v40 = vsel %vm222_vm13, %v5969_v42, 0.0 }
0x12f1   :  { %v5036_v15 = vpop.eup %5035 }
0x12f2   :  { %v2185_v16 = vsel %vm222_vm13, %v5036_v15, 0.0 }
0x12fc   :  { %4896 = vrot.lane.b32.xlu1 %v5843_v28, %s5148_s18 }
0x1301   :  { %4891 = vrot.lane.b32.xlu0 %v5855_v1, %s5147_s17 }
0x130a   :  { %v2433_v11 = vpop.xlane.xlu1 %2432 }
0x130b   :  { %v2439_v54 = vsub.f32 %v5942_v35, %v2433_v11 }
0x130d   :  { %v2445_v41 = vmul.f32 1.442695, %v2439_v54 }
0x130f   :  { %5037 = vpow2.f32 %v2445_v41 }
0x1319   :  { %v5038_v17 = vpop.eup %5037 }
0x131a   :  { %v2455_v6 = vsel %vm222_vm13, %v5038_v17, 0.0 }
0x1320   :  { %2459 = vadd.xlane.f32.xlu0 %v2458_v40  ;;  %2186 = vadd.xlane.f32.xlu1 %v2185_v16 }
0x1331   :  { %4901 = vrot.lane.b32.xlu1 %v5855_v1, %s5148_s18 }
0x1336   :  { %2578 = vrot.lane.b32.xlu0 %v5837_v29, %s5149_s19 }
0x133a   :  { %2582 = vrot.lane.b32.xlu0 %v5851_v39, %s5149_s19 }
0x1355   :  { %2456 = vadd.xlane.f32.xlu1 %v2455_v6 }
0x1366   :  { %2580 = vrot.lane.b32.xlu1 %v5835_v23, %s5149_s19 }
0x136a   :  { %2584 = vrot.lane.b32.xlu1 %v5849_v34, %s5149_s19 }
0x136f   :  { %v2184_v62 = vpop.xlane.xlu0 %2183 }
0x1370   :  { %5039 = vrcp.f32 %v2184_v62 }
0x1373   :  { %v2454_v48 = vpop.xlane.xlu0 %2453 }
0x1374   :  { %v2181_v0 = vpop.xlane.xlu1 %2180 }
0x1375   :  { %5041 = vrcp.f32 %v2181_v0 }
0x1378   :  { %v2190_v18 = vpop.xlane.xlu0 %2189  ;;  %v2451_v56 = vpop.xlane.xlu1 %2450 }
0x1379   :  { %5043 = vrcp.f32 %v2451_v56 }
0x137a   :  { %v5040_v5 = vpop.eup %5039  ;;  %5045 = vrcp.f32 %v2190_v18 }
0x137b   :  { %v2196_v22 = vmul.f32 %v5040_v5, %v5946_v55 }
0x137c   :  { %v4892_v35 = vpop.permute.xlu0 %4891  ;;  %v4897_v7 = vpop.permute.xlu1 %4896 }
0x137d   :  { %v4894_v19 = vunpack.i.h.bf16 %v4892_v35  ;;  %v4893_v2 = vunpack.i.l.bf16 %v4892_v35  ;;  %v4899_v9 = vunpack.i.h.bf16 %v4897_v7  ;;  %v4898_v26 = vunpack.i.l.bf16 %v4897_v7 }
0x137f   :  { %v5042_v4 = vpop.eup %5041  ;;  %v4663_v27 = vpack.c.bf16 %v4894_v19, %v4893_v2  ;;  %v4667_v30 = vpack.c.bf16 %v4899_v9, %v4898_v26 }
0x1380   :  { %v2195_v20 = vmul.f32 %v5042_v4, %v5028_v24 }
0x1382   :  { %4311 = vmatprep.mubr.msk.f32.mxu1 %vm222_vm13, %v2195_v20 }
0x1383   :  { %4312 = vmatmul.mubr.msk.f32.vlgmr.msra.gmra.mrb[28].mxu1 %vm222_vm13, %v2196_v22  ;;  %v5044_v55 = vpop.eup %5043 }
0x1384   :  { %4662 = vmatpush3.bf16.msra.mxu1 %v4659_v37  ;;  %v5046_v24 = vpop.eup %5045  ;;  %v2465_v45 = vmul.f32 %v5044_v55, %v5955_v25 }
0x1385   :  { %4664 = vmatprep.subr.bf16.mxu1 %v4663_v27  ;;  %v2198_v36 = vmul.f32 %v5046_v24, %v5957_v58 }
0x1388   :  { %4666 = vmatpush3.bf16.msra.mxu1 %v4663_v27 }
0x1389   :  { %4669 = vmatprep.subr.msk.bf16.mxu1 %vm5361_vm15, %v4667_v30 }
0x13ad   :  { %v2187_v31 = vpop.xlane.xlu1 %2186  ;;  %v2460_v25 = vpop.xlane.xlu0 %2459 }
0x13ae   :  { %5047 = vrcp.f32 %v2187_v31 }
0x13af   :  { %5049 = vrcp.f32 %v2454_v48 }
0x13b0   :  { %5051 = vrcp.f32 %v2460_v25 }
0x13b1   :  { %v4902_v32 = vpop.permute.xlu1 %4901 }
0x13b2   :  { %v4904_v46 = vunpack.i.h.bf16 %v4902_v32  ;;  %v4903_v37 = vunpack.i.l.bf16 %v4902_v32 }
0x13b4   :  { %v4673_v13 = vpack.c.bf16 %v4904_v46, %v4903_v37 }
0x13b8   :  { %v5048_v51 = vpop.eup %5047 }
0x13b9   :  { %v2197_v33 = vmul.f32 %v5048_v51, %v5036_v15  ;;  %v5050_v44 = vpop.eup %5049 }
0x13ba   :  { %v2466_v49 = vmul.f32 %v5050_v44, %v5950_v10  ;;  %v5052_v50 = vpop.eup %5051  ;;  %v2579_v10 = vpop.permute.xlu0 %2578 }
0x13bb   :  { %4314 = vmatprep.mubr.msk.f32.mxu1 %vm222_vm13, %v2197_v33  ;;  %v2468_v40 = vmul.f32 %v5052_v50, %v5969_v42 }
0x13bc   :  { %4315 = vmatmul.mubr.msk.f32.gmra.mrb[30].mxu1 %vm222_vm13, %v2198_v36 }
0x13bd   :  { %4339 = vmatprep.mubr.msk.f32.mxu1 %vm222_vm13, %v2465_v45 }
0x13be   :  { %v2583_v11 = vpop.permute.xlu0 %2582 }
0x13c0   :  { %4340 = vmatmul.mubr.msk.f32.vlgmr.msra.gmra.mrb[32].mxu1 %vm222_vm13, %v2466_v49 }
0x13c1   :  { %4672 = vmatpush3.bf16.xpose.msk.msra.mxu1 %vm5361_vm15, %v4667_v30 }
0x13c2   :  { %4675 = vmatprep.subr.msk.bf16.mxu1 %vm5361_vm15, %v4673_v13 }
0x13c9   :  { %4678 = vmatpush3.bf16.xpose.msk.msra.mxu1 %vm5361_vm15, %v4673_v13 }
0x13e2   :  { %v2457_v58 = vpop.xlane.xlu1 %2456 }
0x13e3   :  { %5053 = vrcp.f32 %v2457_v58 }
0x13e6   :  { %v2581_v16 = vpop.permute.xlu1 %2580 }
0x13ea   :  { %v2585_v54 = vpop.permute.xlu1 %2584 }
0x13ed   :  { %v5054_v14 = vpop.eup %5053 }
0x13ee   :  { %v2467_v15 = vmul.f32 %v5054_v14, %v5038_v17 }
0x13f0   :  { %4342 = vmatprep.mubr.msk.f32.mxu1 %vm222_vm13, %v2467_v15 }
0x13f1   :  { %4343 = vmatmul.mubr.msk.f32.gmra.mrb[34].mxu1 %vm222_vm13, %v2468_v40 }
0x13f2   :  { %4353 = vmatprep.mubr.msk.f32.mxu1 %vm332_vm14, %v2579_v10 }
0x13f5   :  { %4354 = vmatmul.mubr.msk.f32.vlgmr.msra.gmra.mrb[36].mxu1 %vm332_vm14, %v2581_v16 }
0x13f6   :  { %4356 = vmatprep.mubr.msk.f32.mxu1 %vm332_vm14, %v2583_v11 }
0x13f9   :  { %4357 = vmatmul.mubr.msk.f32.gmra.mrb[38].mxu1 %vm332_vm14, %v2585_v54 }
0x1456   :  { %v6011_v41 = vpop.f32.mrb[28].mxu1 }
0x1457   :  { %v6013_v17 = vpop.f32.mrb[29].mxu1 }
0x148f   :  { %v6015_v42 = vpop.f32.mrb[30].mxu1 }
0x1490   :  { %v6017_v6 = vpop.f32.mrb[31].mxu1 }
0x1493   :  { %v6019_v62 = vpop.f32.mrb[32].mxu1 }
0x1494   :  { %v6021_v48 = vpop.f32.mrb[33].mxu1 }
0x14c4   :  { %v6023_v0 = vpop.f32.mrb[34].mxu1 }
0x14c5   :  { %v6025_v18 = vpop.f32.mrb[35].mxu1 }
0x14c8   :  { %v4355_v56 = vpop.f32.mrb[36].mxu1 }
0x14c9   :  { %v2682_v35 = vadd.f32 %v5900_v8, %v4355_v56  ;;  %v2676_v5 = vpop.f32.mrb[37].mxu1 }
0x14ca   :  { %v2677_v4 = vadd.f32 %v5907_v52, %v2676_v5 }
0x14cb   :  { %v2698_v19 = vsel %vm222_vm13, %v2682_v35, -inf }
0x14cc   :  { %2699 = vmax.xlane.f32.xlu1 %v2698_v19  ;;  %v4358_v2 = vpop.f32.mrb[38].mxu1  ;;  %v2695_v7 = vsel %vm222_vm13, %v2677_v4, -inf }
0x14cd   :  { %v2686_v20 = vpop.f32.mrb[39].mxu1  ;;  %2696 = vmax.xlane.f32.xlu0 %v2695_v7  ;;  %v2692_v9 = vadd.f32 %v5917_v43, %v4358_v2 }
0x14ce   :  { %v2687_v22 = vadd.f32 %v5928_v53, %v2686_v20 }
0x14cf   :  { %v2704_v27 = vsel %vm222_vm13, %v2692_v9, -inf }
0x14d0   :  { %v2701_v26 = vsel %vm222_vm13, %v2687_v22, -inf }
0x14d1   :  { %2702 = vmax.xlane.f32.xlu0 %v2701_v26 }
0x14d5   :  { %2705 = vmax.xlane.f32.xlu0 %v2704_v27 }
0x14dd   :  { %4906 = vrot.lane.b32.xlu1 %v5843_v28, %s5150_s20 }
0x14e1   :  { %4916 = vrot.lane.b32.xlu1 %v5843_v28, %s5151_s21 }
0x14e5   :  { %4921 = vrot.lane.b32.xlu1 %v5855_v1, %s5151_s21 }
0x1559   :  { %v2700_v30 = vpop.xlane.xlu1 %2699 }
0x155a   :  { %v2708_v31 = vsub.f32 %v2682_v35, %v2700_v30  ;;  %v2697_v55 = vpop.xlane.xlu0 %2696 }
0x155b   :  { %v2707_v24 = vsub.f32 %v2677_v4, %v2697_v55 }
0x155c   :  { %v2713_v51 = vmul.f32 1.442695, %v2708_v31 }
0x155d   :  { %v2711_v32 = vmul.f32 1.442695, %v2707_v24  ;;  %v4907_v33 = vpop.permute.xlu1 %4906 }
0x155e   :  { %5055 = vpow2.f32 %v2713_v51  ;;  %v4909_v36 = vunpack.i.h.bf16 %v4907_v33  ;;  %v4908_v44 = vunpack.i.l.bf16 %v4907_v33  ;;  %v2703_v25 = vpop.xlane.xlu0 %2702 }
0x155f   :  { %5057 = vpow2.f32 %v2711_v32  ;;  %v2709_v14 = vsub.f32 %v2687_v22, %v2703_v25 }
0x1560   :  { %v4679_v45 = vpack.c.bf16 %v4909_v36, %v4908_v44 }
0x1561   :  { %v2715_v10 = vmul.f32 1.442695, %v2709_v14 }
0x1562   :  { %4680 = vmatprep.subr.bf16.mxu0 %v4679_v45  ;;  %v2706_v58 = vpop.xlane.xlu0 %2705 }
0x1563   :  { %4682 = vmatpush3.bf16.msra.mxu0 %v4679_v45  ;;  %v2710_v50 = vsub.f32 %v2692_v9, %v2706_v58 }
0x1565   :  { %v2717_v15 = vmul.f32 1.442695, %v2710_v50 }
0x1567   :  { %5059 = vpow2.f32 %v2717_v15 }
0x1568   :  { %v5056_v46 = vpop.eup %5055  ;;  %5061 = vpow2.f32 %v2715_v10 }
0x1569   :  { %v5058_v37 = vpop.eup %5057  ;;  %v2722_v49 = vsel %vm222_vm13, %v5056_v46, 0.0 }
0x156a   :  { %2723 = vadd.xlane.f32.xlu0 %v2722_v49  ;;  %v2719_v13 = vsel %vm222_vm13, %v5058_v37, 0.0 }
0x156b   :  { %2720 = vadd.xlane.f32.xlu1 %v2719_v13 }
0x1571   :  { %v5060_v40 = vpop.eup %5059 }
0x1572   :  { %v5062_v16 = vpop.eup %5061  ;;  %v2728_v11 = vsel %vm222_vm13, %v5060_v40, 0.0 }
0x1573   :  { %v2725_v54 = vsel %vm222_vm13, %v5062_v16, 0.0 }
0x157c   :  { %2850 = vrot.lane.b32.xlu1 %v5835_v23, %s5152_s22  ;;  %v4917_v23 = vpop.permute.xlu1 %4916 }
0x157d   :  { %v4919_v19 = vunpack.i.h.bf16 %v4917_v23  ;;  %v4918_v2 = vunpack.i.l.bf16 %v4917_v23 }
0x157f   :  { %v4687_v9 = vpack.c.bf16 %v4919_v19, %v4918_v2 }
0x1580   :  { %4911 = vrot.lane.b32.xlu0 %v5855_v1, %s5150_s20  ;;  %v4922_v56 = vpop.permute.xlu1 %4921 }
0x1581   :  { %v4924_v26 = vunpack.i.h.bf16 %v4922_v56  ;;  %v4923_v27 = vunpack.i.l.bf16 %v4922_v56 }
0x1583   :  { %v4693_v31 = vpack.c.bf16 %v4924_v26, %v4923_v27 }
0x159f   :  { %2729 = vadd.xlane.f32.xlu0 %v2728_v11 }
0x15a0   :  { %2726 = vadd.xlane.f32.xlu1 %v2725_v54 }
0x15b1   :  { %2854 = vrot.lane.b32.xlu1 %v5849_v34, %s5152_s22 }
0x15b5   :  { %2848 = vrot.lane.b32.xlu0 %v5837_v29, %s5152_s22 }
0x15b9   :  { %2852 = vrot.lane.b32.xlu0 %v5851_v39, %s5152_s22 }
0x15f7   :  { %v2724_v35 = vpop.xlane.xlu0 %2723 }
0x15f8   :  { %5063 = vrcp.f32 %v2724_v35  ;;  %v2721_v5 = vpop.xlane.xlu1 %2720 }
0x15f9   :  { %5065 = vrcp.f32 %v2721_v5 }
0x15fb   :  { %v4912_v4 = vpop.permute.xlu0 %4911 }
0x15fc   :  { %v4914_v7 = vunpack.i.h.bf16 %v4912_v4  ;;  %v4913_v20 = vunpack.i.l.bf16 %v4912_v4  ;;  %v2851_v55 = vpop.permute.xlu1 %2850 }
0x15fe   :  { %v4683_v22 = vpack.c.bf16 %v4914_v7, %v4913_v20 }
0x1600   :  { %4684 = vmatprep.subr.bf16.mxu0 %v4683_v22 }
0x1601   :  { %4686 = vmatpush3.bf16.msra.mxu0 %v4683_v22 }
0x1602   :  { %v5064_v34 = vpop.eup %5063  ;;  %4689 = vmatprep.subr.msk.bf16.mxu0 %vm5361_vm15, %v4687_v9 }
0x1603   :  { %v5066_v29 = vpop.eup %5065  ;;  %v2736_v30 = vmul.f32 %v5064_v34, %v5056_v46 }
0x1604   :  { %v2735_v39 = vmul.f32 %v5066_v29, %v5058_v37 }
0x1606   :  { %4367 = vmatprep.mubr.msk.f32.mxu0 %vm222_vm13, %v2735_v39 }
0x1607   :  { %4368 = vmatmul.mubr.msk.f32.vlgmr.msra.gmra.mrb[36].mxu0 %vm222_vm13, %v2736_v30 }
0x160a   :  { %4692 = vmatpush3.bf16.xpose.msk.msra.mxu0 %vm5361_vm15, %v4687_v9 }
0x160b   :  { %4695 = vmatprep.subr.msk.bf16.mxu0 %vm5361_vm15, %v4693_v31 }
0x1612   :  { %4698 = vmatpush3.bf16.xpose.msk.msra.mxu0 %vm5361_vm15, %v4693_v31 }
0x162c   :  { %v2730_v24 = vpop.xlane.xlu0 %2729 }
0x162d   :  { %5067 = vrcp.f32 %v2730_v24  ;;  %v2727_v51 = vpop.xlane.xlu1 %2726 }
0x162e   :  { %5069 = vrcp.f32 %v2727_v51 }
0x1630   :  { %v2849_v44 = vpop.permute.xlu0 %2848 }
0x1631   :  { %v2855_v12 = vpop.permute.xlu1 %2854 }
0x1634   :  { %v2853_v46 = vpop.permute.xlu0 %2852 }
0x1637   :  { %v5068_v32 = vpop.eup %5067 }
0x1638   :  { %v5070_v33 = vpop.eup %5069  ;;  %v2738_v45 = vmul.f32 %v5068_v32, %v5060_v40 }
0x1639   :  { %v2737_v36 = vmul.f32 %v5070_v33, %v5062_v16 }
0x163b   :  { %4370 = vmatprep.mubr.msk.f32.mxu0 %vm222_vm13, %v2737_v36 }
0x163c   :  { %4371 = vmatmul.mubr.msk.f32.gmra.mrb[38].mxu0 %vm222_vm13, %v2738_v45 }
0x163d   :  { %4381 = vmatprep.mubr.msk.f32.mxu0 %vm332_vm14, %v2849_v44 }
0x1640   :  { %4382 = vmatmul.mubr.msk.f32.vlgmr.msra.gmra.mrb[40].mxu0 %vm332_vm14, %v2851_v55 }
0x1641   :  { %4384 = vmatprep.mubr.msk.f32.mxu0 %vm332_vm14, %v2853_v46 }
0x1644   :  { %4385 = vmatmul.mubr.msk.f32.gmra.mrb[42].mxu0 %vm332_vm14, %v2855_v12 }
0x16da   :  { %v4369_v37 = vpop.f32.mrb[36].mxu0 }
0x16db   :  { %v2829_v49 = vpop.f32.mrb[37].mxu0 }
0x170f   :  { %v4372_v13 = vpop.f32.mrb[38].mxu0 }
0x1710   :  { %v2839_v25 = vpop.f32.mrb[39].mxu0 }
0x1713   :  { %v4383_v58 = vpop.f32.mrb[40].mxu0 }
0x1714   :  { %v2952_v50 = vadd.f32 %v5900_v8, %v4383_v58  ;;  %v2946_v14 = vpop.f32.mrb[41].mxu0 }
0x1715   :  { %v2947_v15 = vadd.f32 %v5907_v52, %v2946_v14  ;;  %v3799_v14 = vld [vmem:[%s6321_s6 + $0x28] sm:$0xff] }
0x1716   :  { %v2968_v10 = vsel %vm222_vm13, %v2952_v50, -inf }
0x1717   :  { %2969 = vmax.xlane.f32.xlu1 %v2968_v10  ;;  %v4386_v40 = vpop.f32.mrb[42].mxu0  ;;  %v2965_v16 = vsel %vm222_vm13, %v2947_v15, -inf }
0x1718   :  { %v2956_v11 = vpop.f32.mrb[43].mxu0  ;;  %2966 = vmax.xlane.f32.xlu0 %v2965_v16  ;;  %v2962_v23 = vadd.f32 %v5917_v43, %v4386_v40  ;;  %v3801_v40 = vld [vmem:[%s6321_s6 + $0x38] sm:$0xff] }
0x1719   :  { %v2957_v54 = vadd.f32 %v5928_v53, %v2956_v11 }
0x171a   :  { %v2974_v8 = vsel %vm222_vm13, %v2962_v23, -inf }
0x171b   :  { %v2971_v56 = vsel %vm222_vm13, %v2957_v54, -inf }
0x171c   :  { %2972 = vmax.xlane.f32.xlu0 %v2971_v56 }
0x1720   :  { %2975 = vmax.xlane.f32.xlu0 %v2974_v8 }
0x17a4   :  { %v2970_v35 = vpop.xlane.xlu1 %2969 }
0x17a5   :  { %v2978_v52 = vsub.f32 %v2952_v50, %v2970_v35  ;;  %v2967_v5 = vpop.xlane.xlu0 %2966  ;;  %v3798_v50 = vld [vmem:[%s6321_s6 + $0x20] sm:$0xff] }
0x17a6   :  { %v2977_v4 = vsub.f32 %v2947_v15, %v2967_v5  ;;  %v3800_v15 = vld [vmem:[%s6321_s6 + $0x30] sm:$0xff]  ;;  %v4707_v10 = vpack.c.bf16 %v3799_v14, %v3798_v50 }
0x17a7   :  { %v2983_v19 = vmul.f32 1.442695, %v2978_v52  ;;  %v4711_v16 = vpack.c.bf16 %v3801_v40, %v3800_v15 }
0x17a8   :  { %v2981_v2 = vmul.f32 1.442695, %v2977_v4 }
0x17a9   :  { %5071 = vpow2.f32 %v2983_v19  ;;  %v2973_v7 = vpop.xlane.xlu0 %2972 }
0x17aa   :  { %5073 = vpow2.f32 %v2981_v2  ;;  %v2979_v20 = vsub.f32 %v2957_v54, %v2973_v7 }
0x17ac   :  { %v2985_v22 = vmul.f32 1.442695, %v2979_v20 }
0x17ad   :  { %v2976_v53 = vpop.xlane.xlu0 %2975 }
0x17ae   :  { %5075 = vpow2.f32 %v2985_v22  ;;  %v2980_v43 = vsub.f32 %v2962_v23, %v2976_v53 }
0x17b0   :  { %v2987_v9 = vmul.f32 1.442695, %v2980_v43 }
0x17b2   :  { %5077 = vpow2.f32 %v2987_v9 }
0x17b3   :  { %v5072_v34 = vpop.eup %5071 }
0x17b4   :  { %v5074_v29 = vpop.eup %5073  ;;  %v2992_v39 = vsel %vm222_vm13, %v5072_v34, 0.0 }
0x17b5   :  { %2993 = vadd.xlane.f32.xlu0 %v2992_v39  ;;  %v2989_v26 = vsel %vm222_vm13, %v5074_v29, 0.0 }
0x17b6   :  { %2990 = vadd.xlane.f32.xlu1 %v2989_v26 }
0x17b8   :  { %v5076_v27 = vpop.eup %5075 }
0x17b9   :  { %v2995_v30 = vsel %vm222_vm13, %v5076_v27, 0.0 }
0x17ba   :  { %2996 = vadd.xlane.f32.xlu1 %v2995_v30 }
0x17bc   :  { %v5078_v31 = vpop.eup %5077 }
0x17bd   :  { %v2998_v55 = vsel %vm222_vm13, %v5078_v31, 0.0 }
0x17be   :  { %2999 = vadd.xlane.f32.xlu0 %v2998_v55 }
0x17cb   :  { %4926 = vrot.lane.b32.xlu1 %v5843_v28, %s5153_s23 }
0x17cf   :  { %3122 = vrot.lane.b32.xlu1 %v6021_v48, %s5154_s24 }
0x17d3   :  { %3124 = vrot.lane.b32.xlu1 %v6019_v62, %s5154_s24 }
0x17d4   :  { %4931 = vrot.lane.b32.xlu0 %v5855_v1, %s5153_s23  ;;  %s6331_s23 = smov 24  }
0x17d7   :  { %3140 = vrot.lane.b32.xlu1 %v4369_v37, %s5155_s25 }
0x17d8   :  { %3138 = vrot.lane.b32.xlu0 %v2829_v49, %s5155_s25 }
0x17db   :  { %3128 = vrot.lane.b32.xlu1 %v6023_v0, %s5154_s24 }
0x17dc   :  { %3126 = vrot.lane.b32.xlu0 %v6025_v18, %s5154_s24 }
0x17df   :  { %3144 = vrot.lane.b32.xlu1 %v4372_v13, %s5155_s25 }
0x17e0   :  { %3142 = vrot.lane.b32.xlu0 %v2839_v25, %s5155_s25 }
0x1842   :  { %v2994_v62 = vpop.xlane.xlu0 %2993 }
0x1843   :  { %v2991_v28 = vpop.xlane.xlu1 %2990 }
0x1844   :  { %5079 = vrcp.f32 %v2991_v28 }
0x1845   :  { %5081 = vrcp.f32 %v2994_v62 }
0x1847   :  { %v2997_v48 = vpop.xlane.xlu1 %2996 }
0x1848   :  { %5083 = vrcp.f32 %v2997_v48 }
0x184b   :  { %v4927_v1 = vpop.permute.xlu1 %4926  ;;  %v3000_v24 = vpop.xlane.xlu0 %2999 }
0x184c   :  { %v4929_v51 = vunpack.i.h.bf16 %v4927_v1  ;;  %v4928_v32 = vunpack.i.l.bf16 %v4927_v1  ;;  %5085 = vrcp.f32 %v3000_v24 }
0x184e   :  { %v5080_v33 = vpop.eup %5079  ;;  %v4699_v0 = vpack.c.bf16 %v4929_v51, %v4928_v32 }
0x184f   :  { %v4932_v36 = vpop.permute.xlu0 %4931  ;;  %v3005_v44 = vmul.f32 %v5080_v33, %v5074_v29  ;;  %v5082_v12 = vpop.eup %5081 }
0x1850   :  { %v4934_v18 = vunpack.i.h.bf16 %v4932_v36  ;;  %v4933_v45 = vunpack.i.l.bf16 %v4932_v36  ;;  %4700 = vmatprep.subr.bf16.mxu1 %v4699_v0  ;;  %v3006_v49 = vmul.f32 %v5082_v12, %v5072_v34  ;;  %v3123_v8 = vpop.permute.xlu1 %3122 }
0x1851   :  { %4702 = vmatpush3.bf16.msra.mxu1 %v4699_v0  ;;  %4395 = vmatprep.mubr.msk.f32.mxu1 %vm222_vm13, %v3005_v44  ;;  %v3166_v20 = vsel %vm332_vm14, %v6013_v17, %v3123_v8 }
0x1852   :  { %v4703_v46 = vpack.c.bf16 %v4934_v18, %v4933_v45  ;;  %v5084_v37 = vpop.eup %5083 }
0x1853   :  { %v3007_v25 = vmul.f32 %v5084_v37, %v5076_v27  ;;  %v3139_v5 = vpop.permute.xlu0 %3138 }
0x1854   :  { %4704 = vmatprep.subr.bf16.mxu1 %v4703_v46  ;;  %v3125_v35 = vpop.permute.xlu1 %3124  ;;  %v3170_v43 = vsel %vm1449_vm0, %v3166_v20, %v3139_v5  ;;  %v3807_v5 = vld [vmem:[%s6322_s7 + $0x28] sm:$0xff]  ;;  %v3814_v20 = vld [vmem:[%s6323_s8 + $0x80] sm:$0xff] }
0x1855   :  { %4706 = vmatpush3.bf16.msra.mxu1 %v4703_v46  ;;  %v3167_v53 = vsel %vm332_vm14, %v6011_v41, %v3125_v35 }
0x1856   :  { %v5086_v13 = vpop.eup %5085  ;;  %4708 = vmatprep.subr.bf16.mxu1 %v4707_v10 }
0x1857   :  { %v3008_v58 = vmul.f32 %v5086_v13, %v5078_v31  ;;  %v3127_v19 = vpop.permute.xlu0 %3126 }
0x1858   :  { %4396 = vmatmul.mubr.msk.f32.vlgmr.msra.gmra.mrb[40].mxu1 %vm222_vm13, %v3006_v49  ;;  %v3141_v52 = vpop.permute.xlu1 %3140  ;;  %v3168_v26 = vsel %vm332_vm14, %v6017_v6, %v3127_v19  ;;  %v6142_v6 = vld [vmem:[%s6325_s10 + $0x4] sm:$0xf]  ;;  %v3808_v19 = vld [vmem:[%s6322_s7 + $0x30] sm:$0xff] }
0x1859   :  { %4398 = vmatprep.mubr.msk.f32.mxu1 %vm222_vm13, %v3007_v25  ;;  %4710 = vmatpush3.bf16.msra.mxu1 %v4707_v10  ;;  %v3171_v34 = vsel %vm1449_vm0, %v3167_v53, %v3141_v52  ;;  %v3806_v52 = vld [vmem:[%s6322_s7 + $0x20] sm:$0xff]  ;;  %v3816_v53 = vld [vmem:[%s6323_s8 + $0x90] sm:$0xff] }
0x185a   :  { %4712 = vmatprep.subr.bf16.mxu1 %v4711_v16 }
0x185b   :  { %v3143_v7 = vpop.permute.xlu0 %3142 }
0x185c   :  { %4399 = vmatmul.mubr.msk.f32.gmra.mrb[42].mxu1 %vm222_vm13, %v3008_v58  ;;  %v3129_v4 = vpop.permute.xlu1 %3128  ;;  %v3172_v27 = vsel %vm1449_vm0, %v3168_v26, %v3143_v7 }
0x185d   :  { %4714 = vmatpush3.bf16.msra.mxu1 %v4711_v16  ;;  %v3169_v41 = vsel %vm332_vm14, %v6015_v42, %v3129_v4  ;;  %v3186_v42 = vrot.slane %v6142_v6, %v5317_v60  ;;  %v4715_v4 = vpack.c.bf16 %v3807_v5, %v3806_v52 }
0x185f   :  { %4716 = vmatprep.subr.bf16.mxu0 %v4715_v4 }
0x1860   :  { %v3145_v2 = vpop.permute.xlu1 %3144  ;;  %4718 = vmatpush3.bf16.msra.mxu0 %v4715_v4 }
0x1861   :  { %v3173_v31 = vsel %vm1449_vm0, %v3169_v41, %v3145_v2  ;;  %v3809_v2 = vld [vmem:[%s6322_s7 + $0x38] sm:$0xff] }
0x1862   :  { %v4719_v7 = vpack.c.bf16 %v3809_v2, %v3808_v19 }
0x1864   :  { %4720 = vmatprep.subr.bf16.mxu0 %v4719_v7 }
0x1865   :  { %4722 = vmatpush3.bf16.msra.mxu0 %v4719_v7 }
0x192b   :  { %v4397_v11 = vpop.f32.mrb[40].mxu1 }
0x192c   :  { %3156 = vrot.lane.b32.xlu1 %v4397_v11, %s6331_s23  ;;  %v3099_v54 = vpop.f32.mrb[41].mxu1 }
0x192d   :  { %3154 = vrot.lane.b32.xlu0 %v3099_v54, %s6331_s23 }
0x192f   :  { %v4400_v23 = vpop.f32.mrb[42].mxu1 }
0x1930   :  { %3160 = vrot.lane.b32.xlu1 %v4400_v23, %s6331_s23  ;;  %v3109_v56 = vpop.f32.mrb[43].mxu1 }
0x1931   :  { %3158 = vrot.lane.b32.xlu0 %v3109_v56, %s6331_s23 }
0x199e   :  { %v3157_v22 = vpop.permute.xlu1 %3156 }
0x199f   :  { %v3155_v9 = vpop.permute.xlu0 %3154  ;;  %v3175_v39 = vsel %vm1454_vm1, %v3171_v34, %v3157_v22  ;;  %v3815_v22 = vld [vmem:[%s6323_s8 + $0x88] sm:$0xff] }
0x19a0   :  { %v3174_v29 = vsel %vm1454_vm1, %v3170_v43, %v3155_v9  ;;  %v4723_v43 = vpack.c.bf16 %v3815_v22, %v3814_v20  ;;  %v3817_v9 = vld [vmem:[%s6323_s8 + $0x98] sm:$0xff] }
0x19a1   :  { %4409 = vmatprep.mubr.msk.f32.mxu1 %vm222_vm13, %v3174_v29  ;;  %v4727_v34 = vpack.c.bf16 %v3817_v9, %v3816_v53  ;;  %v3818_v29 = vld [vmem:[%s6323_s8 + $0xa0] sm:$0xff] }
0x19a2   :  { %4410 = vmatmul.mubr.msk.f32.vlgmr.msra.gmra.mrb[44].mxu1 %vm222_vm13, %v3175_v39  ;;  %v3161_v17 = vpop.permute.xlu1 %3160  ;;  %v3819_v39 = vld [vmem:[%s6323_s8 + $0xa8] sm:$0xff]  ;;  %4724 = vmatprep.subr.bf16.mxu1 %v4723_v43 }
0x19a3   :  { %v3159_v30 = vpop.permute.xlu0 %3158  ;;  %v3177_v28 = vsel %vm1454_vm1, %v3173_v31, %v3161_v17  ;;  %4726 = vmatpush3.bf16.msra.mxu1 %v4723_v43  ;;  %v4731_v26 = vpack.c.bf16 %v3819_v39, %v3818_v29 }
0x19a4   :  { %v3176_v55 = vsel %vm1454_vm1, %v3172_v27, %v3159_v30  ;;  %4728 = vmatprep.subr.bf16.mxu1 %v4727_v34 }
0x19a5   :  { %4412 = vmatprep.mubr.msk.f32.mxu1 %vm222_vm13, %v3176_v55 }
0x19a6   :  { %4413 = vmatmul.mubr.msk.f32.gmra.mrb[46].mxu1 %vm222_vm13, %v3177_v28 }
0x19a7   :  { %4730 = vmatpush3.bf16.msra.mxu1 %v4727_v34 }
0x19a8   :  { %4732 = vmatprep.subr.bf16.mxu1 %v4731_v26 }
0x19ab   :  { %4734 = vmatpush3.bf16.msra.mxu1 %v4731_v26 }
0x1a75   :  { %v4411_v62 = vpop.f32.mrb[44].mxu1 }
0x1a76   :  { %v3271_v48 = vadd.f32 %v4411_v62, %v3186_v42  ;;  %v3265_v1 = vpop.f32.mrb[45].mxu1 }
0x1a77   :  { %v3266_v24 = vadd.f32 %v3265_v1, %v3186_v42 }
0x1a78   :  { %v3285_v51 = vadd.f32 %v3271_v48, %v5813_v57 }
0x1a79   :  { %v3284_v32 = vadd.f32 %v3266_v24, %v5810_v38  ;;  %v4414_v33 = vpop.f32.mrb[46].mxu1 }
0x1a7a   :  { %v3275_v0 = vpop.f32.mrb[47].mxu1  ;;  %v3291_v36 = vsel %vm222_vm13, %v3285_v51, 0.0  ;;  %v3281_v44 = vadd.f32 %v4414_v33, %v3186_v42 }
0x1a7b   :  { %v3276_v18 = vadd.f32 %v3275_v0, %v3186_v42  ;;  %3292 = vadd.xlane.f32.xlu1 %v3291_v36  ;;  %v3288_v45 = vsel %vm222_vm13, %v3284_v32, 0.0  ;;  %v6213_v36 = vrot.slane %v6142_v6, %v1631_v3 }
0x1a7c   :  { %3289 = vadd.xlane.f32.xlu0 %v3288_v45  ;;  %v3287_v46 = vadd.f32 %v3281_v44, %v5825_v47 }
0x1a7d   :  { %v3286_v60 = vadd.f32 %v3276_v18, %v5822_v63 }
0x1a7e   :  { %v3297_v57 = vsel %vm222_vm13, %v3287_v46, 0.0 }
0x1a7f   :  { %v3294_v12 = vsel %vm222_vm13, %v3286_v60, 0.0 }
0x1a80   :  { %3295 = vadd.xlane.f32.xlu0 %v3294_v12 }
0x1a84   :  { %3298 = vadd.xlane.f32.xlu0 %v3297_v57 }
0x1b08   :  { %v3293_v38 = vpop.xlane.xlu1 %3292 }
0x1b09   :  { %v3301_v37 = vmul.f32 0.03125, %v3293_v38  ;;  %v3290_v49 = vpop.xlane.xlu0 %3289 }
0x1b0a   :  { %v3300_v13 = vmul.f32 0.03125, %v3290_v49 }
0x1b0b   :  { %v6154_v25 = vsub.f32 %v3285_v51, %v3301_v37  ;;  %v6207_v51 = vrot.slane %v6142_v6, %v1623_v21 }
0x1b0c   :  { %v6156_v58 = vsub.f32 %v3284_v32, %v3300_v13  ;;  %v3820_v13 = vld [vmem:[%s6323_s8 + $0xb0] sm:$0xff] }
0x1b0d   :  { %v3296_v50 = vpop.xlane.xlu0 %3295  ;;  %v3309_v63 = vmul.f32 %v6154_v25, %v6154_v25 }
0x1b0e   :  { %v3302_v14 = vmul.f32 0.03125, %v3296_v50  ;;  %v3308_v47 = vmul.f32 %v6156_v58, %v6156_v58  ;;  %v3822_v50 = vld [vmem:[%s6323_s8 + $0xc0] sm:$0xff] }
0x1b0f   :  { %v3315_v15 = vsel %vm222_vm13, %v3309_v63, 0.0  ;;  %v3823_v63 = vld [vmem:[%s6323_s8 + $0xc8] sm:$0xff] }
0x1b10   :  { %v6163_v10 = vsub.f32 %v3286_v60, %v3302_v14  ;;  %3316 = vadd.xlane.f32.xlu0 %v3315_v15  ;;  %v3312_v40 = vsel %vm222_vm13, %v3308_v47, 0.0  ;;  %v4739_v14 = vpack.c.bf16 %v3823_v63, %v3822_v50  ;;  %v3824_v47 = vld [vmem:[%s6323_s8 + $0xd0] sm:$0xff]  ;;  %v3825_v15 = vld [vmem:[%s6323_s8 + $0xd8] sm:$0xff] }
0x1b11   :  { %3313 = vadd.xlane.f32.xlu1 %v3312_v40  ;;  %v3299_v16 = vpop.xlane.xlu0 %3298  ;;  %v3826_v40 = vld [vmem:[%s6323_s8 + $0xe0] sm:$0xff] }
0x1b12   :  { %v3303_v11 = vmul.f32 0.03125, %v3299_v16  ;;  %v3310_v54 = vmul.f32 %v6163_v10, %v6163_v10  ;;  %v3827_v16 = vld [vmem:[%s6323_s8 + $0xe8] sm:$0xff] }
0x1b14   :  { %v6168_v23 = vsub.f32 %v3287_v46, %v3303_v11  ;;  %v3318_v56 = vsel %vm222_vm13, %v3310_v54, 0.0  ;;  %v4747_v11 = vpack.c.bf16 %v3827_v16, %v3826_v40  ;;  %v3828_v54 = vld [vmem:[%s6323_s8 + $0xf0] sm:$0xff] }
0x1b15   :  { %3319 = vadd.xlane.f32.xlu1 %v3318_v56 }
0x1b16   :  { %v3311_v8 = vmul.f32 %v6168_v23, %v6168_v23 }
0x1b18   :  { %v3321_v35 = vsel %vm222_vm13, %v3311_v8, 0.0  ;;  %v5116_v8 = vld [vmem:[%s6324_s9 + $0x2] sm:$0x3] }
0x1b19   :  { %3322 = vadd.xlane.f32.xlu0 %v3321_v35  ;;  %v3364_v35 = vrot.slane %v5116_v8, %v5775_v61 }
0x1b9d   :  { %v3317_v17 = vpop.xlane.xlu0 %3316 }
0x1b9e   :  { %v3325_v41 = vmul.f32 0.03125, %v3317_v17  ;;  %v3314_v27 = vpop.xlane.xlu1 %3313 }
0x1b9f   :  { %v3324_v30 = vmul.f32 0.03125, %v3314_v27 }
0x1ba0   :  { %v3329_v31 = vadd.f32 1e-05, %v3325_v41 }
0x1ba1   :  { %v3328_v55 = vadd.f32 1e-05, %v3324_v30 }
0x1ba2   :  { %5087 = vrsqrt.f32 %v3329_v31  ;;  %v3320_v28 = vpop.xlane.xlu1 %3319 }
0x1ba3   :  { %5089 = vrsqrt.f32 %v3328_v55  ;;  %v3326_v42 = vmul.f32 0.03125, %v3320_v28 }
0x1ba5   :  { %v3330_v62 = vadd.f32 1e-05, %v3326_v42 }
0x1ba6   :  { %v3323_v48 = vpop.xlane.xlu0 %3322 }
0x1ba7   :  { %5091 = vrsqrt.f32 %v3330_v62  ;;  %v3327_v1 = vmul.f32 0.03125, %v3323_v48 }
0x1ba9   :  { %v3331_v24 = vadd.f32 1e-05, %v3327_v1 }
0x1bab   :  { %5093 = vrsqrt.f32 %v3331_v24 }
0x1bac   :  { %v5088_v32 = vpop.eup %5087 }
0x1bad   :  { %v5090_v33 = vpop.eup %5089  ;;  %v3337_v0 = vmul.f32 %v5088_v32, %v6154_v25  ;;  %v3821_v25 = vld [vmem:[%s6323_s8 + $0xb8] sm:$0xff] }
0x1bae   :  { %v3336_v44 = vmul.f32 %v5090_v33, %v6156_v58  ;;  %v4735_v58 = vpack.c.bf16 %v3821_v25, %v3820_v13  ;;  %v3502_v33 = vrot.slane %v6142_v6, %v5775_v61 }
0x1baf   :  { %v3345_v18 = vmul.f32 %v6207_v51, %v3337_v0 }
0x1bb0   :  { %v3344_v45 = vmul.f32 %v6207_v51, %v3336_v44  ;;  %4736 = vmatprep.subr.bf16.mxu1 %v4735_v58 }
0x1bb1   :  { %v5092_v60 = vpop.eup %5091  ;;  %v6223_v12 = vadd.f32 %v6213_v36, %v3345_v18  ;;  %4738 = vmatpush3.bf16.msra.mxu1 %v4735_v58 }
0x1bb2   :  { %v6219_v21 = vadd.f32 %v6213_v36, %v3344_v45  ;;  %v3338_v46 = vmul.f32 %v5092_v60, %v6163_v10  ;;  %4740 = vmatprep.subr.bf16.mxu1 %v4739_v14  ;;  %v4743_v10 = vpack.c.bf16 %v3825_v15, %v3824_v47 }
0x1bb4   :  { %4423 = vmatprep.mubr.msk.f32.mxu0 %vm222_vm13, %v6219_v21  ;;  %v3346_v59 = vmul.f32 %v6207_v51, %v3338_v46 }
0x1bb5   :  { %v5094_v3 = vpop.eup %5093  ;;  %4424 = vmatmul.mubr.msk.f32.vlgmr.msra.gmra.mrb[44].mxu0 %vm222_vm13, %v6223_v12  ;;  %4742 = vmatpush3.bf16.msra.mxu1 %v4739_v14 }
0x1bb6   :  { %v6231_v57 = vadd.f32 %v6213_v36, %v3346_v59  ;;  %v3339_v38 = vmul.f32 %v5094_v3, %v6168_v23  ;;  %4744 = vmatprep.subr.bf16.mxu1 %v4743_v10  ;;  %v3829_v23 = vld [vmem:[%s6323_s8 + $0xf8] sm:$0xff]  ;;  %s5157_s8 = smov [#allocation2]  }
0x1bb7   :  { %v4751_v56 = vpack.c.bf16 %v3829_v23, %v3828_v54  ;;  %s3661_s9 = sshll.u32 %s5157_s8, 4  ;;  %s3662_s9 = int_to_ptr.vmem [resolvable:$true] %s3661_s9 }
0x1bb8   :  { %4426 = vmatprep.mubr.msk.f32.mxu0 %vm222_vm13, %v6231_v57  ;;  %v3347_v37 = vmul.f32 %v6207_v51, %v3339_v38  ;;  %s5117_s2 = scalar_lea.vmem %s3662_s9, 512  ;;  %p5122_p1 = scmp.lt.s32.totalorder %s3662_s9, %s3662_s9 }
0x1bb9   :  { %4746 = vmatpush3.bf16.msra.mxu1 %v4743_v10  ;;  %p5118_p0 = scmp.ne.s32.totalorder %s3662_s9, %s5117_s2  ;;  %p5123_p2 = scmp.lt.s32.totalorder %s5117_s2, %s5117_s2 }
0x1bba   :  { %v6238_v49 = vadd.f32 %v6213_v36, %v3347_v37  ;;  %4748 = vmatprep.subr.bf16.mxu1 %v4747_v11 }
0x1bbb   :  { %p5124_p3 = por %p5123_p2, %p5122_p1 }
0x1bbc   :  { %4427 = vmatmul.mubr.msk.f32.gmra.mrb[46].mxu0 %vm222_vm13, %v6238_v49 }
0x1bbd   :  { %4750 = vmatpush3.bf16.msra.mxu1 %v4747_v11  ;;  %p5125_p4 = pnand %p5124_p3, %p5118_p0 }
0x1bbe   :  { %4752 = vmatprep.subr.bf16.mxu1 %v4751_v56 }
0x1bc1   :  { %4754 = vmatpush3.bf16.msra.mxu1 %v4751_v56 }
0x1c88   :  { %v4425_v52 = vpop.f32.mrb[44].mxu0 }
0x1c89   :  { %v3449_v5 = vadd.f32 %v4425_v52, %v3364_v35  ;;  %v3443_v4 = vpop.f32.mrb[45].mxu0 }
0x1c8a   :  { %v3444_v19 = vadd.f32 %v3443_v4, %v3364_v35 }
0x1c8b   :  { %v3467_v2 = vmul.f32 0.70710677, %v3449_v5  ;;  %v3463_v27 = vmul.f32 0.5, %v3449_v5 }
0x1c8c   :  { %v3466_v7 = vmul.f32 0.70710677, %v3444_v19  ;;  %v3462_v17 = vmul.f32 0.5, %v3444_v19 }
0x1c8d   :  { %5095 = verf.f32 %v3467_v2 }
0x1c8e   :  { %5097 = verf.f32 %v3466_v7 }
0x1c8f   :  { %v4428_v20 = vpop.f32.mrb[46].mxu0 }
0x1c90   :  { %v3459_v22 = vadd.f32 %v4428_v20, %v3364_v35  ;;  %v3453_v53 = vpop.f32.mrb[47].mxu0 }
0x1c91   :  { %v3454_v43 = vadd.f32 %v3453_v53, %v3364_v35 }
0x1c92   :  { %v3469_v9 = vmul.f32 0.70710677, %v3459_v22  ;;  %v3465_v1 = vmul.f32 0.5, %v3459_v22 }
0x1c93   :  { %v3468_v34 = vmul.f32 0.70710677, %v3454_v43  ;;  %v3464_v62 = vmul.f32 0.5, %v3454_v43 }
0x1c94   :  { %5099 = verf.f32 %v3469_v9 }
0x1c95   :  { %5101 = verf.f32 %v3468_v34 }
0x1c97   :  { %v5096_v29 = vpop.eup %5095 }
0x1c98   :  { %v5098_v39 = vpop.eup %5097  ;;  %v3475_v26 = vadd.f32 1.0, %v5096_v29 }
0x1c99   :  { %v3474_v41 = vadd.f32 1.0, %v5098_v39 }
0x1c9a   :  { %v3479_v31 = vmul.f32 %v3475_v26, %v3463_v27 }
0x1c9b   :  { %v3478_v30 = vmul.f32 %v3474_v41, %v3462_v17 }
0x1c9d   :  { %4461 = vmatprep.mubr.f32.mxu1 %v3478_v30 }
0x1c9e   :  { %v5100_v55 = vpop.eup %5099  ;;  %4462 = vmatmul.mubr.f32.vlgmr.msra.gmra.mrb[48].mxu1 %v3479_v31 }
0x1c9f   :  { %v5102_v28 = vpop.eup %5101  ;;  %v3477_v42 = vadd.f32 1.0, %v5100_v55 }
0x1ca0   :  { %v3476_v48 = vadd.f32 1.0, %v5102_v28 }
0x1ca1   :  { %v3481_v32 = vmul.f32 %v3477_v42, %v3465_v1 }
0x1ca2   :  { %v3480_v24 = vmul.f32 %v3476_v48, %v3464_v62 }
0x1ca4   :  { %4464 = vmatprep.mubr.f32.mxu1 %v3480_v24 }
0x1ca5   :  { %4465 = vmatmul.mubr.f32.gmra.mrb[50].mxu1 %v3481_v32 }
0x1d71   :  { %v4463_v0 = vpop.f32.mrb[48].mxu1 }
0x1d72   :  { %v3575_v44 = vadd.f32 %v4463_v0, %v3502_v33  ;;  %v3569_v18 = vpop.f32.mrb[49].mxu1 }
0x1d73   :  { %v3570_v45 = vadd.f32 %v3569_v18, %v3502_v33 }
0x1d74   :  { %v3589_v60 = vadd.f32 %v3575_v44, %v6223_v12 }
0x1d75   :  { %v3588_v46 = vadd.f32 %v3570_v45, %v6219_v21 }
0x1d76   :  { %v3595_v59 = vsel %vm222_vm13, %v3589_v60, 0.0 }
0x1d77   :  { %3596 = vadd.xlane.f32.xlu0 %v3595_v59  ;;  %v3592_v3 = vsel %vm222_vm13, %v3588_v46, 0.0 }
0x1d78   :  { %3593 = vadd.xlane.f32.xlu1 %v3592_v3  ;;  %v4466_v38 = vpop.f32.mrb[50].mxu1 }
0x1d79   :  { %v3585_v37 = vadd.f32 %v4466_v38, %v3502_v33  ;;  %v3579_v13 = vpop.f32.mrb[51].mxu1 }
0x1d7a   :  { %v3580_v25 = vadd.f32 %v3579_v13, %v3502_v33 }
0x1d7b   :  { %v3591_v61 = vadd.f32 %v3585_v37, %v6238_v49 }
0x1d7c   :  { %v3590_v6 = vadd.f32 %v3580_v25, %v6231_v57 }
0x1d7d   :  { %v3601_v58 = vsel %vm222_vm13, %v3591_v61, 0.0 }
0x1d7e   :  { %3602 = vadd.xlane.f32.xlu0 %v3601_v58  ;;  %v3598_v12 = vsel %vm222_vm13, %v3590_v6, 0.0 }
0x1d7f   :  { %3599 = vadd.xlane.f32.xlu1 %v3598_v12 }
0x1e04   :  { %v3597_v21 = vpop.xlane.xlu0 %3596 }
0x1e05   :  { %v3605_v50 = vmul.f32 0.03125, %v3597_v21  ;;  %v3594_v63 = vpop.xlane.xlu1 %3593 }
0x1e06   :  { %v3604_v14 = vmul.f32 0.03125, %v3594_v63 }
0x1e07   :  { %v3609_v47 = vsub.f32 %v3589_v60, %v3605_v50 }
0x1e08   :  { %v3608_v15 = vsub.f32 %v3588_v46, %v3604_v14 }
0x1e09   :  { %v3613_v10 = vmul.f32 %v3609_v47, %v3609_v47 }
0x1e0a   :  { %v3612_v40 = vmul.f32 %v3608_v15, %v3608_v15 }
0x1e0b   :  { %v3603_v16 = vpop.xlane.xlu0 %3602  ;;  %v3619_v11 = vsel %vm222_vm13, %v3613_v10, 0.0 }
0x1e0c   :  { %v3607_v49 = vmul.f32 0.03125, %v3603_v16  ;;  %v3600_v54 = vpop.xlane.xlu1 %3599  ;;  %3620 = vadd.xlane.f32.xlu0 %v3619_v11  ;;  %v3616_v57 = vsel %vm222_vm13, %v3612_v40, 0.0 }
0x1e0d   :  { %v3606_v23 = vmul.f32 0.03125, %v3600_v54  ;;  %3617 = vadd.xlane.f32.xlu1 %v3616_v57 }
0x1e0e   :  { %v3611_v56 = vsub.f32 %v3591_v61, %v3607_v49 }
0x1e0f   :  { %v3610_v8 = vsub.f32 %v3590_v6, %v3606_v23 }
0x1e10   :  { %v3615_v35 = vmul.f32 %v3611_v56, %v3611_v56 }
0x1e11   :  { %v3614_v52 = vmul.f32 %v3610_v8, %v3610_v8 }
0x1e12   :  { %v3625_v5 = vsel %vm222_vm13, %v3615_v35, 0.0 }
0x1e13   :  { %3626 = vadd.xlane.f32.xlu0 %v3625_v5  ;;  %v3622_v4 = vsel %vm222_vm13, %v3614_v52, 0.0 }
0x1e14   :  { %3623 = vadd.xlane.f32.xlu1 %v3622_v4 }
0x1e99   :  { %v3621_v19 = vpop.xlane.xlu0 %3620 }
0x1e9a   :  { %v3629_v2 = vmul.f32 0.03125, %v3621_v19  ;;  %v3618_v7 = vpop.xlane.xlu1 %3617 }
0x1e9b   :  { %v3628_v20 = vmul.f32 0.03125, %v3618_v7 }
0x1e9c   :  { %v3633_v22 = vadd.f32 1e-05, %v3629_v2 }
0x1e9d   :  { %v3632_v53 = vadd.f32 1e-05, %v3628_v20 }
0x1e9e   :  { %5103 = vrsqrt.f32 %v3633_v22 }
0x1e9f   :  { %5105 = vrsqrt.f32 %v3632_v53 }
0x1ea0   :  { %v3627_v43 = vpop.xlane.xlu0 %3626 }
0x1ea1   :  { %v3631_v9 = vmul.f32 0.03125, %v3627_v43  ;;  %v3624_v34 = vpop.xlane.xlu1 %3623 }
0x1ea2   :  { %v3630_v29 = vmul.f32 0.03125, %v3624_v34 }
0x1ea3   :  { %v3635_v39 = vadd.f32 1e-05, %v3631_v9 }
0x1ea4   :  { %v3634_v26 = vadd.f32 1e-05, %v3630_v29 }
0x1ea5   :  { %5107 = vrsqrt.f32 %v3635_v39 }
0x1ea6   :  { %5109 = vrsqrt.f32 %v3634_v26 }
0x1ea8   :  { %v5104_v17 = vpop.eup %5103 }
0x1ea9   :  { %v5106_v41 = vpop.eup %5105  ;;  %v3641_v27 = vmul.f32 %v5104_v17, %v3609_v47 }
0x1eaa   :  { %v3640_v30 = vmul.f32 %v5106_v41, %v3608_v15 }
0x1eab   :  { %v3645_v31 = vmul.f32 %v3641_v27, %v6207_v51 }
0x1eac   :  { %v3644_v55 = vmul.f32 %v3640_v30, %v6207_v51 }
0x1ead   :  { %v3649_v28 = vadd.f32 %v3645_v31, %v6213_v36 }
0x1eae   :  { %v3648_v42 = vadd.f32 %v3644_v55, %v6213_v36 }
0x1eaf   :  { %v5108_v62 = vpop.eup %5107  ;;  %3653 = vst.msk [vmem:[#allocation2 + $0x8] sm:$0xff] %vm222_vm13, %v3649_v28 }
0x1eb0   :  { %v5110_v48 = vpop.eup %5109  ;;  %3652 = vst.msk [vmem:[#allocation2] sm:$0xff] %vm222_vm13, %v3648_v42  ;;  %v3643_v1 = vmul.f32 %v5108_v62, %v3611_v56 }
0x1eb1   :  { %v3642_v24 = vmul.f32 %v5110_v48, %v3610_v8 }
0x1eb2   :  { %v3647_v32 = vmul.f32 %v3643_v1, %v6207_v51 }
0x1eb3   :  { %v3646_v33 = vmul.f32 %v3642_v24, %v6207_v51 }
0x1eb4   :  { %v3651_v0 = vadd.f32 %v3647_v32, %v6213_v36 }
0x1eb5   :  { %v3650_v44 = vadd.f32 %v3646_v33, %v6213_v36 }
0x1eb6   :  { %3655 = vst.msk [vmem:[#allocation2 + $0x18] sm:$0xff] %vm222_vm13, %v3651_v0 }
0x1eb7   :  { %3654 = vst.msk [vmem:[#allocation2 + $0x10] sm:$0xff] %vm222_vm13, %v3650_v44 }
0x1eb8   :  { %5128 = shalt.err (!%p5125_p4)
}
0x1eb9   :  { %s5129_s17 = scalar_lea.hbm %s6326_s11, 512 }
0x1eba   :  { %p5130_p5 = scmp.ne.s32.totalorder %s6326_s11, %s5129_s17  ;;  %p5133_p6 = scmp.lt.u32.totalorder %s5129_s17, %s6326_s11 }
0x1ebc   :  { %p5135_p7 = pnand %p5133_p6, %p5130_p5 }
0x1ebe   :  { %5138 = shalt.err (!%p5135_p7)
}
0x1ebf   :  { %s5158_s22 = smov 128  }
0x1ec0   :  { %3667 = dma.vmem_to_hbm [thread:$0]  %s3662_s9, 512, %s6326_s11, [#allocation3], %s5158_s22, %s5158_s22, %s5154_s24  }
0x1ec1   :  { %5139 = dma.done.wait [#allocation3], 512  }
0x1ec2   :  { %5140 = vsyncadd [#allocation3], 4294966784 }
0x1ec3   :  { %3671 = vsyncpa [#allocation3], 1 }

</bundles_post_ra>
